<compile_context>
chip_gen: v6e
topology: v6e:2x2x1
jax: 0.10.0
libtpu: 0.0.40
codegen_flags: <defaults>
</compile_context>

<pallas_src>
import functools

import jax
import jax.numpy as jnp
from jax.experimental import pallas as pl
from jax.experimental.pallas import tpu as pltpu


def _round_up(x, m):
    return ((x + m - 1) // m) * m


def _chip_tuning():
    """Per-generation tile caps; conservative defaults if detection fails."""
    try:
        kind = jax.devices()[0].device_kind.lower()
    except Exception:
        kind = ""
    if "7" in kind:                                   # v7x: 64 MiB VMEM, 2 TensorCores
        return dict(max_tok=256, max_rows=4096, vmem_limit=48 << 20, min_tiles=2)
    if any(s in kind for s in ("v5e", "v5 lite", "v5litepod", "v6e", "v6 lite")):
        return dict(max_tok=512, max_rows=8192, vmem_limit=64 << 20, min_tiles=1)
    # unknown / other (v4, v5p, ...): conservative VMEM caps, allow a 2-way split
    return dict(max_tok=256, max_rows=4096, vmem_limit=48 << 20, min_tiles=2)


def _choose_tok_tile(N, L, tuning):
    """Token tile: as large as the row cap allows, multiple of 16 (bf16 sublane
    packing), split into >=min_tiles tiles only when that feeds extra cores."""
    tok = min(tuning["max_tok"],
              max(16, (tuning["max_rows"] // max(L, 1)) // 16 * 16))
    tok = min(tok, _round_up(N, 16))
    if tuning["min_tiles"] > 1 and N >= 32:
        tok = min(tok, _round_up(-(-N // tuning["min_tiles"]), 16))
    return max(16, tok)


# ----------------------------- fused kernel --------------------------------- #

def imu_encoder_kernel(x_ref, w1_ref, b1_ref, w2_ref, b2_ref, w3_ref, b3_ref,
                       wp_ref, bp_ref, ws_ref, bs_ref, wh_ref, bh_ref,
                       out_ref, pad1_ref, pad2_ref, proj_ref, *, L, tok):
    """Fused forward for one tile of `tok` tokens.

    x_ref  : (L*tok, 24) bf16, rows l-major within the tile (row = l*tok + n),
             lanes = the 3 layer-1 conv taps pre-gathered on host:
             [x[l-1] | x[l] | x[l+1]], each 6 IMU channels zero-padded to 8.
    pad*_ref: (L*tok + 2*tok, 128) bf16 scratch; rows [tok, tok+R) hold the
             layer activation, top/bottom `tok` rows are a zero halo so the
             prev/next taps are plain shifted slices.
    proj_ref: (tok, L*256) bf16 scratch; lane block l*256:(l+1)*256 holds step l.
    out_ref : (tok, 128) f32; cols 0:3 translation, 3:7 unit quaternion, rest 0.
    """
    R = L * tok
    f32 = jnp.float32
    bf16 = jnp.bfloat16

    def lrelu(y):
        return jnp.maximum(y, 0.1 * y)            # LeakyReLU(0.1), f32

    # zero the halo rows (scratch contents are undefined on entry; cheap: 4 small stores)
    zhalo = jnp.zeros((tok, 128), bf16)
    pad1_ref[0:tok, :] = zhalo
    pad1_ref[tok + R:2 * tok + R, :] = zhalo
    pad2_ref[0:tok, :] = zhalo
    pad2_ref[tok + R:2 * tok + R, :] = zhalo

    # ---- layer 1: taps pre-gathered -> single K=24 dot, cout padded to 128 ----
    h1 = lrelu(jnp.dot(x_ref[...], w1_ref[...], preferred_element_type=f32)
               + b1_ref[...])                                   # (R, 128) f32
    pad1_ref[tok:tok + R, :] = h1.astype(bf16)                  # single bf16 cast+store

    # ---- layers 2 & 3: Conv1d(k=3, pad=1) + folded BN + LeakyReLU.
    #      taps = shifted slices of the halo'd scratch; lane-concat (128-aligned)
    #      folds the 3-tap sum into ONE K=384 MXU dot. ----
    def conv_layer(pad_ref, w_ref, b_ref):
        x3 = jnp.concatenate([pad_ref[0:R, :],                  # x[l-1] (halo -> 0)
                              pad_ref[tok:tok + R, :],          # x[l]
                              pad_ref[2 * tok:2 * tok + R, :]],  # x[l+1] (halo -> 0)
                             axis=-1)                           # (R, 384) bf16
        return lrelu(jnp.dot(x3, w_ref[...], preferred_element_type=f32)
                     + b_ref[...])

    h2 = conv_layer(pad1_ref, w2_ref, b2_ref)                   # (R, 128) f32
    pad2_ref[tok:tok + R, :] = h2.astype(bf16)
    h3 = conv_layer(pad2_ref, w3_ref, b3_ref).astype(bf16)      # (R, 256) bf16

    # ---- proj Linear(L*256 -> 256): lane-scatter h3 (vreg-aligned copies),
    #      then a single K=L*256 dot (no f32 accumulator RMW passes). ----
    for l in range(L):
        proj_ref[:, l * 256:(l + 1) * 256] = h3[l * tok:(l + 1) * tok, :]
    fi = (jnp.dot(proj_ref[...], wp_ref[...], preferred_element_type=f32)
          + bp_ref[...])                                        # (tok, 256) f32

    # ---- shared Linear(256->128)+ReLU, heads (3+4 packed into 128 lanes) ----
    feat = jnp.maximum(jnp.dot(fi.astype(bf16), ws_ref[...],
                               preferred_element_type=f32) + bs_ref[...], 0.0)
    o = (jnp.dot(feat.astype(bf16), wh_ref[...], preferred_element_type=f32)
         + bh_ref[...])                                         # (tok, 128) f32

    # ---- quaternion L2 normalization on columns 3:7 (f32, eps=1e-12 on norm) ----
    col = jax.lax.broadcasted_iota(jnp.int32, o.shape, 1)
    qmask = jnp.logical_and(col >= 3, col < 7)
    sumsq = jnp.sum(jnp.where(qmask, o * o, 0.0), axis=-1, keepdims=True)
    inv = jax.lax.rsqrt(jnp.maximum(sumsq, 1e-24))              # == 1/max(norm,1e-12)
    out_ref[...] = jnp.where(qmask, o * inv, o)


# --------------------------- parameter setup -------------------------------- #

def make_params(key, L):
    """Deterministic synthetic parameters, shapes as in the PyTorch module.
    Matmul weights are packed channels-last and cast to bf16; biases stay f32."""
    ks = jax.random.split(key, 16)

    def normal(k, shape, scale=0.1):
        return scale * jax.random.normal(k, shape, dtype=jnp.float32)

    # Conv1d weights, PyTorch layout (Cout, Cin, K)
    w1 = normal(ks[0], (64, 6, 3));    b1 = normal(ks[1], (64,))
    w2 = normal(ks[2], (128, 64, 3));  b2 = normal(ks[3], (128,))
    w3 = normal(ks[4], (256, 128, 3)); b3 = normal(ks[5], (256,))

    def bn_params(k, c):
        k1, k2, k3, k4 = jax.random.split(k, 4)
        gamma = 1.0 + 0.1 * jax.random.normal(k1, (c,), jnp.float32)
        beta = 0.05 * jax.random.normal(k2, (c,), jnp.float32)
        mean = 0.05 * jax.random.normal(k3, (c,), jnp.float32)
        var = 1.0 + 0.1 * jax.random.uniform(k4, (c,), jnp.float32)
        return gamma, beta, mean, var

    bn1 = bn_params(ks[6], 64)
    bn2 = bn_params(ks[7], 128)
    bn3 = bn_params(ks[8], 256)

    def fold_conv_bn(w, b, bnp, cin_pad, cout_pad=None):
        gamma, beta, mean, var = bnp
        scale = gamma / jnp.sqrt(var + 1e-5)            # BatchNorm1d eval, eps=1e-5
        wf = w * scale[:, None, None]
        bf = (b - mean) * scale + beta
        cout, cin, kk = w.shape
        wp = jnp.transpose(wf, (2, 1, 0))               # (K, Cin, Cout); k=0 -> x[l-1]
        if cin_pad > cin:
            wp = jnp.pad(wp, ((0, 0), (0, cin_pad - cin), (0, 0)))
        wp = wp.reshape(kk * cin_pad, cout)
        if cout_pad is not None and cout_pad > cout:
            wp = jnp.pad(wp, ((0, 0), (0, cout_pad - cout)))
            bf = jnp.pad(bf, (0, cout_pad - cout))
        return wp.astype(jnp.bfloat16), bf[None, :]

    # layer 1: taps pre-gathered on host (cin 6->8 pad), cout padded 64->128
    w1p, b1p = fold_conv_bn(w1, b1, bn1, cin_pad=8, cout_pad=128)   # (24,128),(1,128)
    # layer 2: consumes the 128-lane h1 (upper 64 lanes are zero) -> pad cin to 128
    w2p, b2p = fold_conv_bn(w2, b2, bn2, cin_pad=128)               # (384,128),(1,128)
    # layer 3: cin = 128 exactly
    w3p, b3p = fold_conv_bn(w3, b3, bn3, cin_pad=128)               # (384,256),(1,256)

    # proj: Linear(256*L -> 256). PyTorch flattens (N, 256, L) channel-major
    # (index c*L + l); the kernel builds lanes indexed l*256 + c, so permute.
    wproj_pt = normal(ks[9], (256, 256 * L))
    bproj = normal(ks[10], (256,))
    wproj = (wproj_pt.T.reshape(256, L, 256).transpose(1, 0, 2)
             .reshape(L * 256, 256).astype(jnp.bfloat16))

    # shared: Linear(256 -> 128) + ReLU
    wsh = normal(ks[11], (128, 256)).T.astype(jnp.bfloat16)         # (256, 128)
    bsh = normal(ks[12], (128,))[None, :]

    # heads: trans Linear(128->3), rot Linear(128->4) (weight*0.01, bias=[0,0,0,1]),
    # packed into a lane-dense (128, 128) weight (cols >= 7 are zero).
    wtr = normal(ks[13], (3, 128)); btr = normal(ks[14], (3,))
    wrot = 0.01 * normal(ks[15], (4, 128))
    brot = jnp.array([0.0, 0.0, 0.0, 1.0], jnp.float32)
    whead = jnp.zeros((128, 128), jnp.float32)
    whead = whead.at[:, 0:3].set(wtr.T).at[:, 3:7].set(wrot.T)
    bhead = jnp.zeros((1, 128), jnp.float32)
    bhead = bhead.at[0, 0:3].set(btr).at[0, 3:7].set(brot)

    return dict(w1=w1p, b1=b1p, w2=w2p, b2=b2p, w3=w3p, b3=b3p,
                wproj=wproj, bproj=bproj[None, :],
                wsh=wsh, bsh=bsh,
                whead=whead.astype(jnp.bfloat16), bhead=bhead)


# ------------------------------ forward ------------------------------------- #

def imu_encoder_only_forward(imu, params, seq_len):
    """Equivalent of IMUEncoderOnly.forward({'imu': imu}) -> {'poses': (B, n_steps, 7)}."""
    B, T, _ = imu.shape
    n_steps = seq_len - 1
    if T % n_steps != 0:
        raise ValueError(f"IMU samples {T} not divisible by {n_steps} transitions")
    L = T // n_steps
    N = B * n_steps

    tuning = _chip_tuning()
    tok = _choose_tok_tile(N, L, tuning)
    n_tiles = -(-N // tok)
    Npad = n_tiles * tok
    R = L * tok

    # tokens (N, L, 6) -> pad tokens to Npad, pad channels 6 -> 8
    x = imu.astype(jnp.float32).reshape(N, L, 6)
    x = jnp.pad(x, ((0, Npad - N), (0, 0), (0, 2)))             # (Npad, L, 8)

    # pre-gather the three layer-1 conv taps (zero-padded at token boundaries)
    z = jnp.zeros((Npad, 1, 8), jnp.float32)
    x_prev = jnp.concatenate([z, x[:, :-1, :]], axis=1)
    x_next = jnp.concatenate([x[:, 1:, :], z], axis=1)
    x_cat = jnp.concatenate([x_prev, x, x_next], axis=-1)       # (Npad, L, 24)

    # per-tile l-major rows: global row = tile*(L*tok) + l*tok + n_within_tile
    x_cat = (x_cat.reshape(n_tiles, tok, L, 24)
             .transpose(0, 2, 1, 3)
             .reshape(n_tiles * R, 24)
             .astype(jnp.bfloat16))

    const = lambda i: (0, 0)
    out = pl.pallas_call(
        functools.partial(imu_encoder_kernel, L=L, tok=tok),
        out_shape=jax.ShapeDtypeStruct((Npad, 128), jnp.float32),
        grid_spec=pltpu.PrefetchScalarGridSpec(
            num_scalar_prefetch=0,
            grid=(n_tiles,),
            in_specs=[
                pl.BlockSpec((R, 24), lambda i: (i, 0)),        # pre-gathered input
                pl.BlockSpec((24, 128), const),                 # w1 (cout padded)
                pl.BlockSpec((1, 128), const),                  # b1
                pl.BlockSpec((384, 128), const),                # w2 (taps concatenated)
                pl.BlockSpec((1, 128), const),                  # b2
                pl.BlockSpec((384, 256), const),                # w3 (taps concatenated)
                pl.BlockSpec((1, 256), const),                  # b3
                pl.BlockSpec((L * 256, 256), const),            # wproj
                pl.BlockSpec((1, 256), const),                  # bproj
                pl.BlockSpec((256, 128), const),                # wsh
                pl.BlockSpec((1, 128), const),                  # bsh
                pl.BlockSpec((128, 128), const),                # whead
                pl.BlockSpec((1, 128), const),                  # bhead
            ],
            out_specs=pl.BlockSpec((tok, 128), lambda i: (i, 0)),
            scratch_shapes=[
                pltpu.VMEM((R + 2 * tok, 128), jnp.bfloat16),   # conv2 input + zero halo
                pltpu.VMEM((R + 2 * tok, 128), jnp.bfloat16),   # conv3 input + zero halo
                pltpu.VMEM((tok, L * 256), jnp.bfloat16),       # proj operand
            ]),
        compiler_params=pltpu.CompilerParams(
            dimension_semantics=("parallel",),
            vmem_limit_bytes=tuning["vmem_limit"]),
    )(x_cat, params["w1"], params["b1"], params["w2"], params["b2"],
      params["w3"], params["b3"], params["wproj"], params["bproj"],
      params["wsh"], params["bsh"], params["whead"], params["bhead"])

    poses = out[:N, :7].reshape(B, n_steps, 7)
    return {"poses": poses}


# -------------------------------- main -------------------------------------- #

if __name__ == "__main__":
    seq_len = 21                 # module default -> n_steps = 20
    B = 3
    samples_per_interval = 11    # L
    T = (seq_len - 1) * samples_per_interval   # 220

    key = jax.random.PRNGKey(0)
    k_imu, k_par = jax.random.split(key)
    imu = jax.random.normal(k_imu, (B, T, 6), dtype=jnp.float32)

    params = make_params(k_par, samples_per_interval)

    out = imu_encoder_only_forward(imu, params, seq_len)
    poses = jax.block_until_ready(out["poses"])

    assert poses.shape == (B, seq_len - 1, 7), poses.shape
    assert bool(jnp.all(jnp.isfinite(poses)))
    qnorm = jnp.linalg.norm(poses[..., 3:7], axis=-1)
    assert bool(jnp.all(jnp.abs(qnorm - 1.0) < 1e-4)), "quaternions not unit-norm"

    print("KERNEL_OK")
</pallas_src>

<mosaic_0001>
module attributes {stable_mosaic.version = 11 : i64} {
  func.func @imu_encoder_kernel(%arg0: i32, %arg1: memref<352x24xbf16, #tpu.memory_space<vmem>>, %arg2: memref<24x128xbf16, #tpu.memory_space<vmem>>, %arg3: memref<1x128xf32, #tpu.memory_space<vmem>>, %arg4: memref<384x128xbf16, #tpu.memory_space<vmem>>, %arg5: memref<1x128xf32, #tpu.memory_space<vmem>>, %arg6: memref<384x256xbf16, #tpu.memory_space<vmem>>, %arg7: memref<1x256xf32, #tpu.memory_space<vmem>>, %arg8: memref<2816x256xbf16, #tpu.memory_space<vmem>>, %arg9: memref<1x256xf32, #tpu.memory_space<vmem>>, %arg10: memref<256x128xbf16, #tpu.memory_space<vmem>>, %arg11: memref<1x128xf32, #tpu.memory_space<vmem>>, %arg12: memref<128x128xbf16, #tpu.memory_space<vmem>>, %arg13: memref<1x128xf32, #tpu.memory_space<vmem>>, %arg14: memref<32x128xf32, #tpu.memory_space<vmem>>, %arg15: memref<416x128xbf16, #tpu.memory_space<vmem>>, %arg16: memref<416x128xbf16, #tpu.memory_space<vmem>>, %arg17: memref<32x2816xbf16, #tpu.memory_space<vmem>>) attributes {dimension_semantics = [#tpu.dimension_semantics<parallel>], iteration_bounds = array<i64: 2>, scalar_prefetch = 0 : i64, scratch_operands = 3 : i64, tpu.core_type = #tpu.core_type<tc>, window_params = [{transform_indices = @transform_0, window_bounds = array<i64: 352, 24>}, {pipeline_mode = #tpu.pipeline_mode<synchronous>, transform_indices = @transform_1, window_bounds = array<i64: 24, 128>}, {pipeline_mode = #tpu.pipeline_mode<synchronous>, transform_indices = @transform_2, window_bounds = array<i64: 1, 128>}, {pipeline_mode = #tpu.pipeline_mode<synchronous>, transform_indices = @transform_3, window_bounds = array<i64: 384, 128>}, {pipeline_mode = #tpu.pipeline_mode<synchronous>, transform_indices = @transform_4, window_bounds = array<i64: 1, 128>}, {pipeline_mode = #tpu.pipeline_mode<synchronous>, transform_indices = @transform_5, window_bounds = array<i64: 384, 256>}, {pipeline_mode = #tpu.pipeline_mode<synchronous>, transform_indices = @transform_6, window_bounds = array<i64: 1, 256>}, {pipeline_mode = #tpu.pipeline_mode<synchronous>, transform_indices = @transform_7, window_bounds = array<i64: 2816, 256>}, {pipeline_mode = #tpu.pipeline_mode<synchronous>, transform_indices = @transform_8, window_bounds = array<i64: 1, 256>}, {pipeline_mode = #tpu.pipeline_mode<synchronous>, transform_indices = @transform_9, window_bounds = array<i64: 256, 128>}, {pipeline_mode = #tpu.pipeline_mode<synchronous>, transform_indices = @transform_10, window_bounds = array<i64: 1, 128>}, {pipeline_mode = #tpu.pipeline_mode<synchronous>, transform_indices = @transform_11, window_bounds = array<i64: 128, 128>}, {pipeline_mode = #tpu.pipeline_mode<synchronous>, transform_indices = @transform_12, window_bounds = array<i64: 1, 128>}, {transform_indices = @transform_13, window_bounds = array<i64: 32, 128>}]} {
    %cst = arith.constant 0.000000e+00 : bf16
    %0 = vector.broadcast %cst : bf16 to vector<32x128xbf16>
    %c0 = arith.constant 0 : index
    %c0_0 = arith.constant 0 : index
    %1 = vector.load %arg15[%c0, %c0_0] : memref<416x128xbf16, #tpu.memory_space<vmem>>, vector<32x128xbf16>
    tpu.vector_store %arg15[%c0, %c0_0], %0 {strides = array<i32>} : memref<416x128xbf16, #tpu.memory_space<vmem>>, vector<32x128xbf16>,
    %c384 = arith.constant 384 : index
    %c0_1 = arith.constant 0 : index
    %2 = vector.load %arg15[%c384, %c0_1] : memref<416x128xbf16, #tpu.memory_space<vmem>>, vector<32x128xbf16>
    tpu.vector_store %arg15[%c384, %c0_1], %0 {strides = array<i32>} : memref<416x128xbf16, #tpu.memory_space<vmem>>, vector<32x128xbf16>,
    %c0_2 = arith.constant 0 : index
    %c0_3 = arith.constant 0 : index
    %3 = vector.load %arg16[%c0_2, %c0_3] : memref<416x128xbf16, #tpu.memory_space<vmem>>, vector<32x128xbf16>
    tpu.vector_store %arg16[%c0_2, %c0_3], %0 {strides = array<i32>} : memref<416x128xbf16, #tpu.memory_space<vmem>>, vector<32x128xbf16>,
    %c384_4 = arith.constant 384 : index
    %c0_5 = arith.constant 0 : index
    %4 = vector.load %arg16[%c384_4, %c0_5] : memref<416x128xbf16, #tpu.memory_space<vmem>>, vector<32x128xbf16>
    tpu.vector_store %arg16[%c384_4, %c0_5], %0 {strides = array<i32>} : memref<416x128xbf16, #tpu.memory_space<vmem>>, vector<32x128xbf16>,
    %c0_6 = arith.constant 0 : index
    %c0_7 = arith.constant 0 : index
    %5 = vector.load %arg1[%c0_6, %c0_7] : memref<352x24xbf16, #tpu.memory_space<vmem>>, vector<352x24xbf16>
    %c0_8 = arith.constant 0 : index
    %c0_9 = arith.constant 0 : index
    %6 = vector.load %arg2[%c0_8, %c0_9] : memref<24x128xbf16, #tpu.memory_space<vmem>>, vector<24x128xbf16>
    %cst_10 = arith.constant dense<0.000000e+00> : vector<352x128xf32>
    %7 = tpu.matmul %5, %6, %cst_10 {dimension_numbers = #tpu.dot_dimension_numbers<[1], [0], [0], [1], [0, 0, 1, 1], [], []>} : vector<352x24xbf16>, vector<24x128xbf16>, vector<352x128xf32> -> vector<352x128xf32>
    %c0_11 = arith.constant 0 : index
    %c0_12 = arith.constant 0 : index
    %8 = vector.load %arg3[%c0_11, %c0_12] : memref<1x128xf32, #tpu.memory_space<vmem>>, vector<1x128xf32>
    %9 = vector.broadcast %8 : vector<1x128xf32> to vector<352x128xf32>
    %10 = arith.addf %7, %9 : vector<352x128xf32>
    %cst_13 = arith.constant 1.000000e-01 : f32
    %11 = vector.broadcast %cst_13 : f32 to vector<352x128xf32>
    %12 = arith.mulf %11, %10 : vector<352x128xf32>
    %13 = arith.maximumf %10, %12 : vector<352x128xf32>
    %14 = arith.truncf %13 : vector<352x128xf32> to vector<352x128xbf16>
    %c32 = arith.constant 32 : index
    %c0_14 = arith.constant 0 : index
    %15 = vector.load %arg15[%c32, %c0_14] : memref<416x128xbf16, #tpu.memory_space<vmem>>, vector<352x128xbf16>
    tpu.vector_store %arg15[%c32, %c0_14], %14 {strides = array<i32>} : memref<416x128xbf16, #tpu.memory_space<vmem>>, vector<352x128xbf16>,
    %c0_15 = arith.constant 0 : index
    %c0_16 = arith.constant 0 : index
    %16 = vector.load %arg15[%c0_15, %c0_16] : memref<416x128xbf16, #tpu.memory_space<vmem>>, vector<352x128xbf16>
    %c32_17 = arith.constant 32 : index
    %c0_18 = arith.constant 0 : index
    %17 = vector.load %arg15[%c32_17, %c0_18] : memref<416x128xbf16, #tpu.memory_space<vmem>>, vector<352x128xbf16>
    %c64 = arith.constant 64 : index
    %c0_19 = arith.constant 0 : index
    %18 = vector.load %arg15[%c64, %c0_19] : memref<416x128xbf16, #tpu.memory_space<vmem>>, vector<352x128xbf16>
    %19 = tpu.concatenate %16, %17, %18 in 1 : vector<352x128xbf16>, vector<352x128xbf16>, vector<352x128xbf16> -> vector<352x384xbf16>
    %c0_20 = arith.constant 0 : index
    %c0_21 = arith.constant 0 : index
    %20 = vector.load %arg4[%c0_20, %c0_21] : memref<384x128xbf16, #tpu.memory_space<vmem>>, vector<384x128xbf16>
    %cst_22 = arith.constant dense<0.000000e+00> : vector<352x128xf32>
    %21 = tpu.matmul %19, %20, %cst_22 {dimension_numbers = #tpu.dot_dimension_numbers<[1], [0], [0], [1], [0, 0, 1, 1], [], []>} : vector<352x384xbf16>, vector<384x128xbf16>, vector<352x128xf32> -> vector<352x128xf32>
    %c0_23 = arith.constant 0 : index
    %c0_24 = arith.constant 0 : index
    %22 = vector.load %arg5[%c0_23, %c0_24] : memref<1x128xf32, #tpu.memory_space<vmem>>, vector<1x128xf32>
    %23 = vector.broadcast %22 : vector<1x128xf32> to vector<352x128xf32>
    %24 = arith.addf %21, %23 : vector<352x128xf32>
    %cst_25 = arith.constant 1.000000e-01 : f32
    %25 = vector.broadcast %cst_25 : f32 to vector<352x128xf32>
    %26 = arith.mulf %25, %24 : vector<352x128xf32>
    %27 = arith.maximumf %24, %26 : vector<352x128xf32>
    %28 = arith.truncf %27 : vector<352x128xf32> to vector<352x128xbf16>
    %c32_26 = arith.constant 32 : index
    %c0_27 = arith.constant 0 : index
    %29 = vector.load %arg16[%c32_26, %c0_27] : memref<416x128xbf16, #tpu.memory_space<vmem>>, vector<352x128xbf16>
    tpu.vector_store %arg16[%c32_26, %c0_27], %28 {strides = array<i32>} : memref<416x128xbf16, #tpu.memory_space<vmem>>, vector<352x128xbf16>,
    %c0_28 = arith.constant 0 : index
    %c0_29 = arith.constant 0 : index
    %30 = vector.load %arg16[%c0_28, %c0_29] : memref<416x128xbf16, #tpu.memory_space<vmem>>, vector<352x128xbf16>
    %c32_30 = arith.constant 32 : index
    %c0_31 = arith.constant 0 : index
    %31 = vector.load %arg16[%c32_30, %c0_31] : memref<416x128xbf16, #tpu.memory_space<vmem>>, vector<352x128xbf16>
    %c64_32 = arith.constant 64 : index
    %c0_33 = arith.constant 0 : index
    %32 = vector.load %arg16[%c64_32, %c0_33] : memref<416x128xbf16, #tpu.memory_space<vmem>>, vector<352x128xbf16>
    %33 = tpu.concatenate %30, %31, %32 in 1 : vector<352x128xbf16>, vector<352x128xbf16>, vector<352x128xbf16> -> vector<352x384xbf16>
    %c0_34 = arith.constant 0 : index
    %c0_35 = arith.constant 0 : index
    %34 = vector.load %arg6[%c0_34, %c0_35] : memref<384x256xbf16, #tpu.memory_space<vmem>>, vector<384x256xbf16>
    %cst_36 = arith.constant dense<0.000000e+00> : vector<352x256xf32>
    %35 = tpu.matmul %33, %34, %cst_36 {dimension_numbers = #tpu.dot_dimension_numbers<[1], [0], [0], [1], [0, 0, 1, 1], [], []>} : vector<352x384xbf16>, vector<384x256xbf16>, vector<352x256xf32> -> vector<352x256xf32>
    %c0_37 = arith.constant 0 : index
    %c0_38 = arith.constant 0 : index
    %36 = vector.load %arg7[%c0_37, %c0_38] : memref<1x256xf32, #tpu.memory_space<vmem>>, vector<1x256xf32>
    %37 = vector.broadcast %36 : vector<1x256xf32> to vector<352x256xf32>
    %38 = arith.addf %35, %37 : vector<352x256xf32>
    %cst_39 = arith.constant 1.000000e-01 : f32
    %39 = vector.broadcast %cst_39 : f32 to vector<352x256xf32>
    %40 = arith.mulf %39, %38 : vector<352x256xf32>
    %41 = arith.maximumf %38, %40 : vector<352x256xf32>
    %42 = arith.truncf %41 : vector<352x256xf32> to vector<352x256xbf16>
    %43 = vector.extract_strided_slice %42 {offsets = [0, 0], sizes = [32, 256], strides = [1, 1]} : vector<352x256xbf16> to vector<32x256xbf16>
    %c0_40 = arith.constant 0 : index
    %c0_41 = arith.constant 0 : index
    %44 = vector.load %arg17[%c0_40, %c0_41] : memref<32x2816xbf16, #tpu.memory_space<vmem>>, vector<32x256xbf16>
    tpu.vector_store %arg17[%c0_40, %c0_41], %43 {strides = array<i32>} : memref<32x2816xbf16, #tpu.memory_space<vmem>>, vector<32x256xbf16>,
    %45 = vector.extract_strided_slice %42 {offsets = [32, 0], sizes = [32, 256], strides = [1, 1]} : vector<352x256xbf16> to vector<32x256xbf16>
    %c0_42 = arith.constant 0 : index
    %c256 = arith.constant 256 : index
    %46 = vector.load %arg17[%c0_42, %c256] : memref<32x2816xbf16, #tpu.memory_space<vmem>>, vector<32x256xbf16>
    tpu.vector_store %arg17[%c0_42, %c256], %45 {strides = array<i32>} : memref<32x2816xbf16, #tpu.memory_space<vmem>>, vector<32x256xbf16>,
    %47 = vector.extract_strided_slice %42 {offsets = [64, 0], sizes = [32, 256], strides = [1, 1]} : vector<352x256xbf16> to vector<32x256xbf16>
    %c0_43 = arith.constant 0 : index
    %c512 = arith.constant 512 : index
    %48 = vector.load %arg17[%c0_43, %c512] : memref<32x2816xbf16, #tpu.memory_space<vmem>>, vector<32x256xbf16>
    tpu.vector_store %arg17[%c0_43, %c512], %47 {strides = array<i32>} : memref<32x2816xbf16, #tpu.memory_space<vmem>>, vector<32x256xbf16>,
    %49 = vector.extract_strided_slice %42 {offsets = [96, 0], sizes = [32, 256], strides = [1, 1]} : vector<352x256xbf16> to vector<32x256xbf16>
    %c0_44 = arith.constant 0 : index
    %c768 = arith.constant 768 : index
    %50 = vector.load %arg17[%c0_44, %c768] : memref<32x2816xbf16, #tpu.memory_space<vmem>>, vector<32x256xbf16>
    tpu.vector_store %arg17[%c0_44, %c768], %49 {strides = array<i32>} : memref<32x2816xbf16, #tpu.memory_space<vmem>>, vector<32x256xbf16>,
    %51 = vector.extract_strided_slice %42 {offsets = [128, 0], sizes = [32, 256], strides = [1, 1]} : vector<352x256xbf16> to vector<32x256xbf16>
    %c0_45 = arith.constant 0 : index
    %c1024 = arith.constant 1024 : index
    %52 = vector.load %arg17[%c0_45, %c1024] : memref<32x2816xbf16, #tpu.memory_space<vmem>>, vector<32x256xbf16>
    tpu.vector_store %arg17[%c0_45, %c1024], %51 {strides = array<i32>} : memref<32x2816xbf16, #tpu.memory_space<vmem>>, vector<32x256xbf16>,
    %53 = vector.extract_strided_slice %42 {offsets = [160, 0], sizes = [32, 256], strides = [1, 1]} : vector<352x256xbf16> to vector<32x256xbf16>
    %c0_46 = arith.constant 0 : index
    %c1280 = arith.constant 1280 : index
    %54 = vector.load %arg17[%c0_46, %c1280] : memref<32x2816xbf16, #tpu.memory_space<vmem>>, vector<32x256xbf16>
    tpu.vector_store %arg17[%c0_46, %c1280], %53 {strides = array<i32>} : memref<32x2816xbf16, #tpu.memory_space<vmem>>, vector<32x256xbf16>,
    %55 = vector.extract_strided_slice %42 {offsets = [192, 0], sizes = [32, 256], strides = [1, 1]} : vector<352x256xbf16> to vector<32x256xbf16>
    %c0_47 = arith.constant 0 : index
    %c1536 = arith.constant 1536 : index
    %56 = vector.load %arg17[%c0_47, %c1536] : memref<32x2816xbf16, #tpu.memory_space<vmem>>, vector<32x256xbf16>
    tpu.vector_store %arg17[%c0_47, %c1536], %55 {strides = array<i32>} : memref<32x2816xbf16, #tpu.memory_space<vmem>>, vector<32x256xbf16>,
    %57 = vector.extract_strided_slice %42 {offsets = [224, 0], sizes = [32, 256], strides = [1, 1]} : vector<352x256xbf16> to vector<32x256xbf16>
    %c0_48 = arith.constant 0 : index
    %c1792 = arith.constant 1792 : index
    %58 = vector.load %arg17[%c0_48, %c1792] : memref<32x2816xbf16, #tpu.memory_space<vmem>>, vector<32x256xbf16>
    tpu.vector_store %arg17[%c0_48, %c1792], %57 {strides = array<i32>} : memref<32x2816xbf16, #tpu.memory_space<vmem>>, vector<32x256xbf16>,
    %59 = vector.extract_strided_slice %42 {offsets = [256, 0], sizes = [32, 256], strides = [1, 1]} : vector<352x256xbf16> to vector<32x256xbf16>
    %c0_49 = arith.constant 0 : index
    %c2048 = arith.constant 2048 : index
    %60 = vector.load %arg17[%c0_49, %c2048] : memref<32x2816xbf16, #tpu.memory_space<vmem>>, vector<32x256xbf16>
    tpu.vector_store %arg17[%c0_49, %c2048], %59 {strides = array<i32>} : memref<32x2816xbf16, #tpu.memory_space<vmem>>, vector<32x256xbf16>,
    %61 = vector.extract_strided_slice %42 {offsets = [288, 0], sizes = [32, 256], strides = [1, 1]} : vector<352x256xbf16> to vector<32x256xbf16>
    %c0_50 = arith.constant 0 : index
    %c2304 = arith.constant 2304 : index
    %62 = vector.load %arg17[%c0_50, %c2304] : memref<32x2816xbf16, #tpu.memory_space<vmem>>, vector<32x256xbf16>
    tpu.vector_store %arg17[%c0_50, %c2304], %61 {strides = array<i32>} : memref<32x2816xbf16, #tpu.memory_space<vmem>>, vector<32x256xbf16>,
    %63 = vector.extract_strided_slice %42 {offsets = [320, 0], sizes = [32, 256], strides = [1, 1]} : vector<352x256xbf16> to vector<32x256xbf16>
    %c0_51 = arith.constant 0 : index
    %c2560 = arith.constant 2560 : index
    %64 = vector.load %arg17[%c0_51, %c2560] : memref<32x2816xbf16, #tpu.memory_space<vmem>>, vector<32x256xbf16>
    tpu.vector_store %arg17[%c0_51, %c2560], %63 {strides = array<i32>} : memref<32x2816xbf16, #tpu.memory_space<vmem>>, vector<32x256xbf16>,
    %c0_52 = arith.constant 0 : index
    %c0_53 = arith.constant 0 : index
    %65 = vector.load %arg17[%c0_52, %c0_53] : memref<32x2816xbf16, #tpu.memory_space<vmem>>, vector<32x2816xbf16>
    %c0_54 = arith.constant 0 : index
    %c0_55 = arith.constant 0 : index
    %66 = vector.load %arg8[%c0_54, %c0_55] : memref<2816x256xbf16, #tpu.memory_space<vmem>>, vector<2816x256xbf16>
    %cst_56 = arith.constant dense<0.000000e+00> : vector<32x256xf32>
    %67 = tpu.matmul %65, %66, %cst_56 {dimension_numbers = #tpu.dot_dimension_numbers<[1], [0], [0], [1], [0, 0, 1, 1], [], []>} : vector<32x2816xbf16>, vector<2816x256xbf16>, vector<32x256xf32> -> vector<32x256xf32>
    %c0_57 = arith.constant 0 : index
    %c0_58 = arith.constant 0 : index
    %68 = vector.load %arg9[%c0_57, %c0_58] : memref<1x256xf32, #tpu.memory_space<vmem>>, vector<1x256xf32>
    %69 = vector.broadcast %68 : vector<1x256xf32> to vector<32x256xf32>
    %70 = arith.addf %67, %69 : vector<32x256xf32>
    %71 = arith.truncf %70 : vector<32x256xf32> to vector<32x256xbf16>
    %c0_59 = arith.constant 0 : index
    %c0_60 = arith.constant 0 : index
    %72 = vector.load %arg10[%c0_59, %c0_60] : memref<256x128xbf16, #tpu.memory_space<vmem>>, vector<256x128xbf16>
    %cst_61 = arith.constant dense<0.000000e+00> : vector<32x128xf32>
    %73 = tpu.matmul %71, %72, %cst_61 {dimension_numbers = #tpu.dot_dimension_numbers<[1], [0], [0], [1], [0, 0, 1, 1], [], []>} : vector<32x256xbf16>, vector<256x128xbf16>, vector<32x128xf32> -> vector<32x128xf32>
    %c0_62 = arith.constant 0 : index
    %c0_63 = arith.constant 0 : index
    %74 = vector.load %arg11[%c0_62, %c0_63] : memref<1x128xf32, #tpu.memory_space<vmem>>, vector<1x128xf32>
    %75 = vector.broadcast %74 : vector<1x128xf32> to vector<32x128xf32>
    %76 = arith.addf %73, %75 : vector<32x128xf32>
    %cst_64 = arith.constant 0.000000e+00 : f32
    %77 = vector.broadcast %cst_64 : f32 to vector<32x128xf32>
    %78 = arith.maximumf %76, %77 : vector<32x128xf32>
    %79 = arith.truncf %78 : vector<32x128xf32> to vector<32x128xbf16>
    %c0_65 = arith.constant 0 : index
    %c0_66 = arith.constant 0 : index
    %80 = vector.load %arg12[%c0_65, %c0_66] : memref<128x128xbf16, #tpu.memory_space<vmem>>, vector<128x128xbf16>
    %cst_67 = arith.constant dense<0.000000e+00> : vector<32x128xf32>
    %81 = tpu.matmul %79, %80, %cst_67 {dimension_numbers = #tpu.dot_dimension_numbers<[1], [0], [0], [1], [0, 0, 1, 1], [], []>} : vector<32x128xbf16>, vector<128x128xbf16>, vector<32x128xf32> -> vector<32x128xf32>
    %c0_68 = arith.constant 0 : index
    %c0_69 = arith.constant 0 : index
    %82 = vector.load %arg13[%c0_68, %c0_69] : memref<1x128xf32, #tpu.memory_space<vmem>>, vector<1x128xf32>
    %83 = vector.broadcast %82 : vector<1x128xf32> to vector<32x128xf32>
    %84 = arith.addf %81, %83 : vector<32x128xf32>
    %85 = tpu.iota {dimensions = array<i32: 1>} : vector<32x128xi32>
    %c3_i32 = arith.constant 3 : i32
    %86 = vector.broadcast %c3_i32 : i32 to vector<32x128xi32>
    %87 = arith.cmpi sge, %85, %86 : vector<32x128xi32>
    %c7_i32 = arith.constant 7 : i32
    %88 = vector.broadcast %c7_i32 : i32 to vector<32x128xi32>
    %89 = arith.cmpi slt, %85, %88 : vector<32x128xi32>
    %90 = arith.andi %87, %89 : vector<32x128xi1>
    %91 = arith.mulf %84, %84 : vector<32x128xf32>
    %cst_70 = arith.constant 0.000000e+00 : f32
    %92 = vector.broadcast %cst_70 : f32 to vector<32x128xf32>
    %93 = arith.select %90, %91, %92 : vector<32x128xi1>, vector<32x128xf32>
    %cst_71 = arith.constant dense<0.000000e+00> : vector<32xf32>
    %94 = vector.multi_reduction <add>, %93, %cst_71 [1] : vector<32x128xf32> to vector<32xf32>
    %95 = vector.shape_cast %94 : vector<32xf32> to vector<32x1xf32>
    %cst_72 = arith.constant 1.000000e-24 : f32
    %96 = vector.broadcast %cst_72 : f32 to vector<32x1xf32>
    %97 = arith.maximumf %95, %96 : vector<32x1xf32>
    %98 = math.rsqrt %97 : vector<32x1xf32>
    %99 = vector.broadcast %98 : vector<32x1xf32> to vector<32x128xf32>
    %100 = arith.mulf %84, %99 : vector<32x128xf32>
    %101 = arith.select %90, %100, %84 : vector<32x128xi1>, vector<32x128xf32>
    %c0_73 = arith.constant 0 : index
    %c0_74 = arith.constant 0 : index
    %102 = vector.load %arg14[%c0_73, %c0_74] : memref<32x128xf32, #tpu.memory_space<vmem>>, vector<32x128xf32>
    tpu.vector_store %arg14[%c0_73, %c0_74], %101 {strides = array<i32>} : memref<32x128xf32, #tpu.memory_space<vmem>>, vector<32x128xf32>,
    return
  }
  func.func @transform_0(%arg0: i32) -> (i32, i32) {
    %c0_i32 = arith.constant 0 : i32
    %c0_i32_0 = arith.constant 0 : i32
    return %arg0, %c0_i32 : i32, i32
  }
  func.func @transform_1(%arg0: i32) -> (i32, i32) {
    %c0_i32 = arith.constant 0 : i32
    %c0_i32_0 = arith.constant 0 : i32
    %c0_i32_1 = arith.constant 0 : i32
    return %c0_i32, %c0_i32_0 : i32, i32
  }
  func.func @transform_2(%arg0: i32) -> (i32, i32) {
    %c0_i32 = arith.constant 0 : i32
    %c0_i32_0 = arith.constant 0 : i32
    %c0_i32_1 = arith.constant 0 : i32
    return %c0_i32, %c0_i32_0 : i32, i32
  }
  func.func @transform_3(%arg0: i32) -> (i32, i32) {
    %c0_i32 = arith.constant 0 : i32
    %c0_i32_0 = arith.constant 0 : i32
    %c0_i32_1 = arith.constant 0 : i32
    return %c0_i32, %c0_i32_0 : i32, i32
  }
  func.func @transform_4(%arg0: i32) -> (i32, i32) {
    %c0_i32 = arith.constant 0 : i32
    %c0_i32_0 = arith.constant 0 : i32
    %c0_i32_1 = arith.constant 0 : i32
    return %c0_i32, %c0_i32_0 : i32, i32
  }
  func.func @transform_5(%arg0: i32) -> (i32, i32) {
    %c0_i32 = arith.constant 0 : i32
    %c0_i32_0 = arith.constant 0 : i32
    %c0_i32_1 = arith.constant 0 : i32
    return %c0_i32, %c0_i32_0 : i32, i32
  }
  func.func @transform_6(%arg0: i32) -> (i32, i32) {
    %c0_i32 = arith.constant 0 : i32
    %c0_i32_0 = arith.constant 0 : i32
    %c0_i32_1 = arith.constant 0 : i32
    return %c0_i32, %c0_i32_0 : i32, i32
  }
  func.func @transform_7(%arg0: i32) -> (i32, i32) {
    %c0_i32 = arith.constant 0 : i32
    %c0_i32_0 = arith.constant 0 : i32
    %c0_i32_1 = arith.constant 0 : i32
    return %c0_i32, %c0_i32_0 : i32, i32
  }
  func.func @transform_8(%arg0: i32) -> (i32, i32) {
    %c0_i32 = arith.constant 0 : i32
    %c0_i32_0 = arith.constant 0 : i32
    %c0_i32_1 = arith.constant 0 : i32
    return %c0_i32, %c0_i32_0 : i32, i32
  }
  func.func @transform_9(%arg0: i32) -> (i32, i32) {
    %c0_i32 = arith.constant 0 : i32
    %c0_i32_0 = arith.constant 0 : i32
    %c0_i32_1 = arith.constant 0 : i32
    return %c0_i32, %c0_i32_0 : i32, i32
  }
  func.func @transform_10(%arg0: i32) -> (i32, i32) {
    %c0_i32 = arith.constant 0 : i32
    %c0_i32_0 = arith.constant 0 : i32
    %c0_i32_1 = arith.constant 0 : i32
    return %c0_i32, %c0_i32_0 : i32, i32
  }
  func.func @transform_11(%arg0: i32) -> (i32, i32) {
    %c0_i32 = arith.constant 0 : i32
    %c0_i32_0 = arith.constant 0 : i32
    %c0_i32_1 = arith.constant 0 : i32
    return %c0_i32, %c0_i32_0 : i32, i32
  }
  func.func @transform_12(%arg0: i32) -> (i32, i32) {
    %c0_i32 = arith.constant 0 : i32
    %c0_i32_0 = arith.constant 0 : i32
    %c0_i32_1 = arith.constant 0 : i32
    return %c0_i32, %c0_i32_0 : i32, i32
  }
  func.func @transform_13(%arg0: i32) -> (i32, i32) {
    %c0_i32 = arith.constant 0 : i32
    %c0_i32_0 = arith.constant 0 : i32
    return %arg0, %c0_i32 : i32, i32
  }
}

</mosaic_0001>

<bundles_post_ra>
// kernel: tpu_custom_call.1
= control target key start
LH: loop header
LB: loop body
LE: loop exit
PB: predicated region body
PF: predicated region fallthrough
CT: control target
= control target key end

     0   :  { %s12004_s0 = inlined_call_operand.vmem [shape: bf16[704,24], index: 0, kind: input, shape index: {}]   ;;  %s12005_s1 = inlined_call_operand.hbm [shape: bf16[24,128], index: 1, kind: input, shape index: {}]   ;;  %s12006_s2 = inlined_call_operand.hbm [shape: f32[1,128], index: 2, kind: input, shape index: {}]   ;;  %s12007_s3 = inlined_call_operand.hbm [shape: bf16[384,128], index: 3, kind: input, shape index: {}]   ;;  %s12008_s4 = inlined_call_operand.hbm [shape: f32[1,128], index: 4, kind: input, shape index: {}]   ;;  %s12009_s5 = inlined_call_operand.hbm [shape: bf16[384,256], index: 5, kind: input, shape index: {}]   ;;  %s12010_s6 = inlined_call_operand.hbm [shape: f32[1,256], index: 6, kind: input, shape index: {}]   ;;  %s12011_s7 = inlined_call_operand.hbm [shape: bf16[2816,256], index: 7, kind: input, shape index: {}]   ;;  %s12012_s8 = inlined_call_operand.hbm [shape: f32[1,256], index: 8, kind: input, shape index: {}]   ;;  %s12013_s9 = inlined_call_operand.hbm [shape: bf16[256,128], index: 9, kind: input, shape index: {}]   ;;  %s12014_s10 = inlined_call_operand.hbm [shape: f32[1,128], index: 10, kind: input, shape index: {}]   ;;  %s12015_s11 = inlined_call_operand.hbm [shape: bf16[128,128], index: 11, kind: input, shape index: {}]   ;;  %s12016_s12 = inlined_call_operand.hbm [shape: f32[1,128], index: 12, kind: input, shape index: {}]   ;;  %s12017_s13 = inlined_call_operand.hbm [shape: f32[64,128], index: 13, kind: output, shape index: {}]  }
   0x1   :  { %12032 = sst [smem:[#allocation58_spill]] %s12005_s1 }
   0x2   :  { %12033 = sst [smem:[#allocation59_spill]] %s12006_s2 }
   0x3   :  { %18 = vsyncpa [#allocation6], 0 }
   0x4   :  { %19 = vsyncpa [#allocation9], 0 }
   0x5   :  { %20 = vsyncpa [#allocation12], 0 }
   0x6   :  { %21 = vsyncpa [#allocation15], 0 }
   0x7   :  { %22 = vsyncpa [#allocation18], 0 }
   0x8   :  { %23 = vsyncpa [#allocation21], 0 }
   0x9   :  { %24 = vsyncpa [#allocation24], 0 }
   0xa   :  { %25 = vsyncpa [#allocation7], 0 }
   0xb   :  { %27 = vsyncpa [#allocation7 + $0x1], 0  ;;  %s10748_s25 = smov 0   ;;  %s10750_s26 = smov 0  }
   0xc   :  { %s10752_s27 = smov 0   ;;  %s10754_s28 = smov 0  }
   0xd LB: > { %12034 = sst [smem:[#allocation34_spill]] %s10652_s27  ;;  %s10769_s29 = sadd.s32 4294967295, %s10656_s28   ;;  %s10656_s28 = sphi %s10754_s28, %s12110_s28   ;;  %s10652_s27 = sphi %s10752_s27, %s12112_s27   ;;  %s10648_s26 = sphi %s10750_s26, %s12114_s26   ;;  %s10644_s25 = sphi %s10748_s25, %s12113_s25  }
   0xe   : > { %s7853_s30 = sadd.s32 4294967294, %s10656_s28   ;;  %s10773_s14 = sadd.s32 1, %s10656_s28  }
   0xf   : > { %12035 = sst [smem:[#allocation35_spill]] %s10773_s14  ;;  %s318_s15 = sadd.s32 1, %s10652_s27 }
  0x10   : > { %s315_s16 = ssub.s32 %s10656_s28, %s10773_s14  ;;  %p328_p0 = scmp.ne.s32.totalorder %s10652_s27, %s10648_s26 }
  0x11   : > { %p316_p1 = scmp.eq.s32.totalorder %s315_s16, 0  ;;  %p329_p2 = scmp.eq.s32.totalorder %s10769_s29, 1 }
  0x12   : > { %p334_p3 = scmp.ne.s32.totalorder %s10648_s26, %s10644_s25  ;;  %p335_p4 = scmp.eq.s32.totalorder %s7853_s30, 1 }
  0x13   : > { %s10784_s17 = scalar_select %p316_p1, %s10652_s27, %s318_s15  }
  0x14   : > { %p10786_p5 = por %p329_p2, %p328_p0  ;;  %p10790_p6 = por %p335_p4, %p334_p3 }
  0x15   : > { %12036 = sst [smem:[#allocation36_spill]] %s10784_s17  ;;  %p7854_p7 = scmp.ge.s32.totalorder %s10656_s28, 1 }
  0x16   : > { %s12037_s18 = scalar_select %p10786_p5, 1, 0 }
  0x17   : > { %s12038_s19 = scalar_select %p10790_p6, 1, 0 }
  0x18   : > { %p342_p8 = scmp.lt.s32.totalorder %s10656_s28, 3  ;;  %p12021_p9 = scmp.eq.s32.totalorder %s10769_s29, 0 }
  0x19   : > { %12039 = sst [smem:[#allocation37_spill]] %s12038_s19  ;;  %s10658_s21 = smov [#allocation8]  }
  0x1a   : > { %p10797_p10 = pnand %p7854_p7, %p342_p8  ;;  %s368_s22 = sshll.u32 %s10658_s21, 4  ;;  %s369_s22 = int_to_ptr.vmem [resolvable:$true] %s368_s22 }
  0x1b   : > { %s10659_s23 = smov [#allocation11]   ;;  %s10660_s15 = smov [#allocation14]  }
  0x1c   : > { %s12040_s20 = scalar_select %p10797_p10, 1, 0 }
  0x1d   : > { %p9366_p11 = pneg %p10797_p10  ;;  %s392_s24 = sshll.u32 %s10659_s23, 4  ;;  %s393_s24 = int_to_ptr.vmem [resolvable:$true] %s392_s24 }
  0x1e   : > { %s416_s16 = sshll.u32 %s10660_s15, 4  ;;  %s10267_s21 = scalar_lea.vmem %s369_s22, 16  ;;  %s10809_s16 = int_to_ptr.vmem [resolvable:$true] %s416_s16 }
  0x1f   : > { %p10805_p12 = pnand %p12021_p9, %p9366_p11  ;;  %p10268_p0 = scmp.ne.s32.totalorder %s369_s22, %s10267_s21 }
  0x20   : > { %s10274_s23 = scalar_lea.vmem %s369_s22, 32  ;;  %p10275_p3 = scmp.lt.s32.totalorder %s369_s22, %s369_s22 }
  0x21   : > { %p10813_p13 = pneg %p10805_p12  ;;  %p10276_p4 = scmp.lt.s32.totalorder %s10274_s23, %s10267_s21 }
  0x23   : > { %p10270_p1 = pnand %p10268_p0, %p10813_p13  ;;  %p10277_p7 = por %p10276_p4, %p10275_p3 }
  0x25   : > { %p10271_p2 = pneg %p10270_p1 }
  0x27   : > { %p10278_p8 = pnand %p10277_p7, %p10271_p2 }
  0x29   : > { %10281 = shalt.err (!%p10278_p8)
}
  0x2a   : > { %s12043_s2 = sld [smem:[#allocation59_spill]]  ;;  %s10293_s14 = scalar_lea.vmem %s393_s24, 16 }
  0x2b   : > { %p10294_p11 = scmp.ne.s32.totalorder %s393_s24, %s10293_s14  ;;  %s10300_s19 = scalar_lea.vmem %s393_s24, 32 }
  0x2c   : > { %p10301_p0 = scmp.lt.s32.totalorder %s393_s24, %s393_s24  ;;  %p10302_p1 = scmp.lt.s32.totalorder %s10300_s19, %s10293_s14 }
  0x2d   : > { %p10296_p9 = pnand %p10294_p11, %p10813_p13 }
  0x2e   : > { %p10303_p5 = por %p10302_p1, %p10301_p0 }
  0x2f   : > { %p10297_p6 = pneg %p10296_p9 }
  0x30   : > { %9372 = dma.hbm_to_vmem [thread:$0]  (!%p10805_p12), %s12043_s2, 16, %s369_s22, [#allocation9]  }
  0x31   : > { %p10304_p10 = pnand %p10303_p5, %p10297_p6 }
  0x33   : > { %10307 = shalt.err (!%p10304_p10)
}
  0x34   : > { %9378 = dma.hbm_to_vmem [thread:$0]  (!%p10805_p12), %s12008_s4, 16, %s393_s24, [#allocation12]  }
  0x35   : > { %s10319_s27 = scalar_lea.vmem %s10809_s16, 32  ;;  %p10327_p4 = scmp.lt.s32.totalorder %s10809_s16, %s10809_s16 }
  0x36   : > { %p10320_p2 = scmp.ne.s32.totalorder %s10809_s16, %s10319_s27  ;;  %p10328_p7 = scmp.lt.s32.totalorder %s10319_s27, %s10319_s27 }
  0x38   : > { %p10322_p9 = pnand %p10320_p2, %p10813_p13  ;;  %p10329_p5 = por %p10328_p7, %p10327_p4 }
  0x3a   : > { %p10323_p3 = pneg %p10322_p9 }
  0x3c   : > { %p10330_p6 = pnand %p10329_p5, %p10323_p3 }
  0x3e   : > { %10333 = shalt.err (!%p10330_p6)
}
  0x3f   : > { %9384 = dma.hbm_to_vmem [thread:$0]  (!%p10805_p12), %s12010_s6, 32, %s10809_s16, [#allocation15]  }
  0x40   : > { %s10661_s22 = smov [#allocation17]   ;;  %s10662_s15 = smov [#allocation20]  }
  0x41   : > { %s440_s24 = sshll.u32 %s10661_s22, 4  ;;  %s464_s21 = sshll.u32 %s10662_s15, 4  ;;  %s441_s24 = int_to_ptr.vmem [resolvable:$true] %s440_s24  ;;  %s465_s21 = int_to_ptr.vmem [resolvable:$true] %s464_s21 }
  0x42   : > { %s10345_s23 = scalar_lea.vmem %s441_s24, 32  ;;  %p10353_p0 = scmp.lt.s32.totalorder %s441_s24, %s441_s24 }
  0x43   : > { %p10346_p10 = scmp.ne.s32.totalorder %s441_s24, %s10345_s23  ;;  %p10354_p1 = scmp.lt.s32.totalorder %s10345_s23, %s10345_s23 }
  0x45   : > { %p10348_p8 = pnand %p10346_p10, %p10813_p13  ;;  %p10355_p2 = por %p10354_p1, %p10353_p0 }
  0x47   : > { %p10349_p11 = pneg %p10348_p8 }
  0x49   : > { %p10356_p9 = pnand %p10355_p2, %p10349_p11 }
  0x4b   : > { %10359 = shalt.err (!%p10356_p9)
}
  0x4c   : > { %9390 = dma.hbm_to_vmem [thread:$0]  (!%p10805_p12), %s12012_s8, 32, %s441_s24, [#allocation18]  }
  0x4d   : > { %s10371_s16 = scalar_lea.vmem %s465_s21, 16  ;;  %s10378_s19 = scalar_lea.vmem %s465_s21, 32 }
  0x4e   : > { %p10372_p3 = scmp.ne.s32.totalorder %s465_s21, %s10371_s16  ;;  %p10379_p5 = scmp.lt.s32.totalorder %s465_s21, %s465_s21 }
  0x4f   : > { %p10380_p6 = scmp.lt.s32.totalorder %s10378_s19, %s10371_s16 }
  0x50   : > { %p10374_p4 = pnand %p10372_p3, %p10813_p13 }
  0x51   : > { %p10381_p10 = por %p10380_p6, %p10379_p5 }
  0x52   : > { %p10375_p7 = pneg %p10374_p4 }
  0x54   : > { %p10382_p8 = pnand %p10381_p10, %p10375_p7 }
  0x56   : > { %10385 = shalt.err (!%p10382_p8)
}
  0x57   : > { %9396 = dma.hbm_to_vmem [thread:$0]  (!%p10805_p12), %s12014_s10, 16, %s465_s21, [#allocation21]  }
  0x58   : > { %s10663_s24 = smov [#allocation5]  }
  0x59   : > { %s354_s23 = sshll.u32 %s10663_s24, 4  ;;  %s355_s23 = int_to_ptr.vmem [resolvable:$true] %s354_s23 }
  0x5a   : > { %s10397_s27 = scalar_lea.vmem %s355_s23, 192  ;;  %p10405_p2 = scmp.lt.s32.totalorder %s355_s23, %s355_s23 }
  0x5b   : > { %p10398_p11 = scmp.ne.s32.totalorder %s355_s23, %s10397_s27  ;;  %p10406_p9 = scmp.lt.s32.totalorder %s10397_s27, %s10397_s27 }
  0x5d   : > { %p10400_p0 = pnand %p10398_p11, %p10813_p13  ;;  %p10407_p3 = por %p10406_p9, %p10405_p2 }
  0x5f   : > { %p10401_p1 = pneg %p10400_p0 }
  0x61   : > { %p10408_p4 = pnand %p10407_p3, %p10401_p1 }
  0x63   : > { %10411 = shalt.err (!%p10408_p4)
}
  0x64   : > { %s12025_s14 = smov 64   ;;  %s12027_s16 = smov 4  }
  0x65   : > { %s12044_s1 = sld [smem:[#allocation58_spill]]  ;;  %s10666_s22 = smov [#allocation10]  }
  0x66   : > { %s378_s15 = sshll.u32 %s10666_s22, 4  ;;  %s10667_s24 = smov [#allocation13]   ;;  %s379_s15 = int_to_ptr.vmem [resolvable:$true] %s378_s15 }
  0x67   : > { %s402_s2 = sshll.u32 %s10667_s24, 4  ;;  %s10423_s27 = scalar_lea.vmem %s379_s15, 3072  ;;  %s403_s2 = int_to_ptr.vmem [resolvable:$true] %s402_s2 }
  0x68   : > { %p10424_p7 = scmp.ne.s32.totalorder %s379_s15, %s10423_s27  ;;  %p10431_p10 = scmp.lt.s32.totalorder %s379_s15, %s379_s15 }
  0x69   : > { %p10432_p8 = scmp.lt.s32.totalorder %s10423_s27, %s10423_s27 }
  0x6a   : > { %p10426_p5 = pnand %p10424_p7, %p10813_p13 }
  0x6b   : > { %9369 = dma.hbm_to_vmem [thread:$0]  (!%p10805_p12), %s12044_s1, 192, %s355_s23, [#allocation6], %s12025_s14, %s12025_s14, %s12027_s16  }
  0x6c   : > { %p10427_p6 = pneg %p10426_p5  ;;  %p10433_p11 = por %p10432_p8, %p10431_p10 }
  0x6e   : > { %p10434_p0 = pnand %p10433_p11, %p10427_p6 }
  0x70   : > { %10437 = shalt.err (!%p10434_p0)
}
  0x71   : > { %9375 = dma.hbm_to_vmem [thread:$0]  (!%p10805_p12), %s12007_s3, 3072, %s379_s15, [#allocation9], %s12025_s14, %s12025_s14, %s12027_s16  }
  0x72   : > { %s10449_s19 = scalar_lea.vmem %s403_s2, 6144  ;;  %p10457_p3 = scmp.lt.s32.totalorder %s403_s2, %s403_s2 }
  0x73   : > { %p10450_p1 = scmp.ne.s32.totalorder %s403_s2, %s10449_s19  ;;  %p10458_p4 = scmp.lt.s32.totalorder %s10449_s19, %s10449_s19 }
  0x75   : > { %p10452_p2 = pnand %p10450_p1, %p10813_p13  ;;  %p10459_p7 = por %p10458_p4, %p10457_p3 }
  0x77   : > { %p10453_p9 = pneg %p10452_p2 }
  0x79   : > { %p10460_p5 = pnand %p10459_p7, %p10453_p9 }
  0x7b   : > { %10463 = shalt.err (!%p10460_p5)
}
  0x7c   : > { %s10668_s22 = smov 128   ;;  %s10669_s24 = smov 8  }
  0x7d   : > { %9381 = dma.hbm_to_vmem [thread:$0]  (!%p10805_p12), %s12009_s5, 6144, %s403_s2, [#allocation12], %s10668_s22, %s10668_s22, %s10669_s24  }
  0x7e   : > { %s10670_s15 = smov [#allocation16]   ;;  %s10671_s21 = smov [#allocation19]  }
  0x7f   : > { %s426_s23 = sshll.u32 %s10670_s15, 4  ;;  %s450_s14 = sshll.u32 %s10671_s21, 4  ;;  %s427_s23 = int_to_ptr.vmem [resolvable:$true] %s426_s23  ;;  %s451_s14 = int_to_ptr.vmem [resolvable:$true] %s450_s14 }
  0x80   : > { %s10475_s16 = scalar_lea.vmem %s427_s23, 45056  ;;  %p10483_p11 = scmp.lt.s32.totalorder %s427_s23, %s427_s23 }
  0x81   : > { %p10476_p6 = scmp.ne.s32.totalorder %s427_s23, %s10475_s16  ;;  %p10484_p0 = scmp.lt.s32.totalorder %s10475_s16, %s10475_s16 }
  0x83   : > { %p10478_p10 = pnand %p10476_p6, %p10813_p13  ;;  %p10485_p1 = por %p10484_p0, %p10483_p11 }
  0x85   : > { %p10479_p8 = pneg %p10478_p10 }
  0x87   : > { %p10486_p2 = pnand %p10485_p1, %p10479_p8 }
  0x89   : > { %10489 = shalt.err (!%p10486_p2)
}
  0x8a   : > { %9387 = dma.hbm_to_vmem [thread:$0]  (!%p10805_p12), %s12011_s7, 45056, %s427_s23, [#allocation15], %s10668_s22, %s10668_s22, %s10669_s24  }
  0x8b   : > { %s10501_s19 = scalar_lea.vmem %s451_s14, 2048  ;;  %p10509_p7 = scmp.lt.s32.totalorder %s451_s14, %s451_s14 }
  0x8c   : > { %p10502_p9 = scmp.ne.s32.totalorder %s451_s14, %s10501_s19  ;;  %p10510_p5 = scmp.lt.s32.totalorder %s10501_s19, %s10501_s19 }
  0x8e   : > { %p10504_p3 = pnand %p10502_p9, %p10813_p13  ;;  %p10511_p6 = por %p10510_p5, %p10509_p7 }
  0x90   : > { %p10505_p4 = pneg %p10504_p3 }
  0x92   : > { %p10512_p10 = pnand %p10511_p6, %p10505_p4 }
  0x94   : > { %10515 = shalt.err (!%p10512_p10)
}
  0x95   : > { %s12045_s16 = smov 4   ;;  %s12046_s27 = smov 64  }
  0x96   : > { %9393 = dma.hbm_to_vmem [thread:$0]  (!%p10805_p12), %s12013_s9, 2048, %s451_s14, [#allocation18], %s12046_s27, %s12046_s27, %s12045_s16  }
  0x97   : > { %s10672_s22 = smov [#allocation22]   ;;  %s10673_s23 = smov [#allocation23]  }
  0x98   : > { %s474_s24 = sshll.u32 %s10672_s22, 4  ;;  %s488_s1 = sshll.u32 %s10673_s23, 4  ;;  %s475_s24 = int_to_ptr.vmem [resolvable:$true] %s474_s24  ;;  %s489_s1 = int_to_ptr.vmem [resolvable:$true] %s488_s1 }
  0x99   : > { %s10527_s2 = scalar_lea.vmem %s475_s24, 1024  ;;  %p10535_p1 = scmp.lt.s32.totalorder %s475_s24, %s475_s24 }
  0x9a   : > { %p10528_p8 = scmp.ne.s32.totalorder %s475_s24, %s10527_s2  ;;  %p10536_p2 = scmp.lt.s32.totalorder %s10527_s2, %s10527_s2 }
  0x9c   : > { %p10530_p11 = pnand %p10528_p8, %p10813_p13  ;;  %p10537_p9 = por %p10536_p2, %p10535_p1 }
  0x9e   : > { %p10531_p0 = pneg %p10530_p11 }
  0xa0   : > { %p10538_p3 = pnand %p10537_p9, %p10531_p0 }
  0xa2   : > { %10541 = shalt.err (!%p10538_p3)
}
  0xa3   : > { %9399 = dma.hbm_to_vmem [thread:$0]  (!%p10805_p12), %s12015_s11, 1024, %s475_s24, [#allocation21], %s12046_s27, %s12046_s27, %s12045_s16  }
  0xa4   : > { %s10553_s15 = scalar_lea.vmem %s489_s1, 16  ;;  %s10560_s21 = scalar_lea.vmem %s489_s1, 32 }
  0xa5   : > { %p10554_p4 = scmp.ne.s32.totalorder %s489_s1, %s10553_s15  ;;  %p10561_p6 = scmp.lt.s32.totalorder %s489_s1, %s489_s1 }
  0xa6   : > { %p10562_p10 = scmp.lt.s32.totalorder %s10560_s21, %s10553_s15 }
  0xa7   : > { %p10556_p7 = pnand %p10554_p4, %p10813_p13 }
  0xa8   : > { %p10563_p8 = por %p10562_p10, %p10561_p6 }
  0xa9   : > { %p10557_p5 = pneg %p10556_p7 }
  0xab   : > { %p10564_p11 = pnand %p10563_p8, %p10557_p5 }
  0xad   : > { %10567 = shalt.err (!%p10564_p11)
}
  0xae   : > { %9402 = dma.hbm_to_vmem [thread:$0]  (!%p10805_p12), %s12016_s12, 16, %s489_s1, [#allocation24]  }
  0xaf   : > { %p12047_p0 = scmp.ne.s32.totalorder %s12040_s20, 0 }
  0xb1   : > { %510 = sbr.rel (%p12047_p0) target bundleno = 1982 (0x7be), region = 72 }
  0xb6   : > { %p12048_p1 = scmp.eq.s32.totalorder %s10769_s29, 0 }
  0xb8   : > { %10611 = dma.done.wait (%p12048_p1), [#allocation6], 192   ;;  %p12049_p13 = pmov %p12048_p1 }
  0xb9   : > { %p12050_p2 = pmov %p12048_p1 }
  0xba   : > { %10613 = vsyncadd (%p12049_p13), [#allocation6], 4294967104 }
  0xbb   : > { %10615 = dma.done.wait (%p12050_p2), [#allocation9], 3088   ;;  %p12051_p9 = pmov %p12048_p1 }
  0xbc   : > { %p12052_p3 = pmov %p12048_p1 }
  0xbd   : > { %10617 = vsyncadd (%p12051_p9), [#allocation9], 4294964208 }
  0xbe   : > { %10619 = dma.done.wait (%p12052_p3), [#allocation12], 6160   ;;  %p12053_p12 = pmov %p12048_p1 }
  0xbf   : > { %p12054_p4 = pmov %p12048_p1 }
  0xc0   : > { %10621 = vsyncadd (%p12053_p12), [#allocation12], 4294961136 }
  0xc1   : > { %10623 = dma.done.wait (%p12054_p4), [#allocation15], 45088   ;;  %p12055_p7 = pmov %p12048_p1 }
  0xc2   : > { %p12056_p5 = pmov %p12048_p1 }
  0xc3   : > { %10625 = vsyncadd (%p12055_p7), [#allocation15], 4294922208 }
  0xc4   : > { %10627 = dma.done.wait (%p12056_p5), [#allocation18], 2080   ;;  %p12057_p6 = pmov %p12048_p1 }
  0xc5   : > { %p12058_p10 = pmov %p12048_p1 }
  0xc6   : > { %10629 = vsyncadd (%p12057_p6), [#allocation18], 4294965216 }
  0xc7   : > { %10631 = dma.done.wait (%p12058_p10), [#allocation21], 1040   ;;  %p12059_p8 = pmov %p12048_p1 }
  0xc8   : > { %p12060_p11 = pmov %p12048_p1 }
  0xc9   : > { %10633 = vsyncadd (%p12059_p8), [#allocation21], 4294966256 }
  0xca   : > { %10635 = dma.done.wait (%p12060_p11), [#allocation24], 16   ;;  %p12061_p0 = pmov %p12048_p1 }
  0xcb   : > { %s598_s17 = smul.u32 44, %s10769_s29  ;;  %v10674_v0 = vmov 0   ;;  %vm862_vm0 = vcmask 1043456   ;;  %v9483_v1 = vld [vmem:[#allocation5 + $0x8] ss:$0 sps:$4 sm:$0xff]   ;;  %v9484_v2 = vld [vmem:[#allocation5] sm:$0xff]  }
  0xcc   : > { %10637 = vsyncadd (%p12061_p0), [#allocation24], 4294967280  ;;  %1950 = vmatprep.subr.bf16.mxu1 %v10674_v0  ;;  %606 = vst [vmem:[#allocation2] sm:$0xf] %v10674_v0  ;;  %vm795_vm1 = vcmask 195584   ;;  %9315 = vmatprep.subr.msk.bf16.mxu0 %vm862_vm0, %v9483_v1  ;;  %v864_v3 = vsel %vm862_vm0, %v9483_v1, 0 }
  0xcd   : > { %607 = vst [vmem:[#allocation2 + $0x4] sm:$0xf] %v10674_v0  ;;  %608 = vst [vmem:[#allocation2 + $0x8] sm:$0xf] %v10674_v0  ;;  %p599_p1 = scmp.lt.s32.totalorder %s598_s17, 87  ;;  %9188 = vmatpush3.bf16.msra.mxu0 %v864_v3  ;;  %v9505_v10 = vld [vmem:[#allocation10 + $0xb8] sm:$0xff]  }
  0xce   : > { %609 = vst [vmem:[#allocation2 + $0xc] sm:$0xf] %v10674_v0  ;;  %610 = vst [vmem:[#allocation2 + $0xc0] sm:$0xf] %v10674_v0  ;;  %9189 = vmatprep.subr.bf16.mxu0 %v9484_v2  ;;  %v9508_v12 = vld [vmem:[#allocation10 + $0xb0] sm:$0xff]   ;;  %v9509_v13 = vld [vmem:[#allocation10 + $0x38] sm:$0xff]  }
  0xcf   : > { %611 = vst [vmem:[#allocation2 + $0xc4] sm:$0xf] %v10674_v0  ;;  %612 = vst [vmem:[#allocation2 + $0xc8] sm:$0xf] %v10674_v0  ;;  %s12116_s17 = smov (!%p599_p1, %s598_s17), 87  ;;  %v9510_v14 = vld [vmem:[#allocation10 + $0x30] sm:$0xff]   ;;  %1951 = vmatpush1.bf16.msra.mxu1 %v9509_v13 }
  0xd0   : > { %613 = vst [vmem:[#allocation2 + $0xcc] sm:$0xf] %v10674_v0  ;;  %614 = vst [vmem:[#allocation3] sm:$0xf] %v10674_v0  ;;  %s7882_s20 = sshll.u32 %s12116_s17, 2  ;;  %v9511_v15 = vld [vmem:[#allocation10 + $0xa8] sm:$0xff]   ;;  %1952 = vmatprep.subr.bf16.mxu1 %v10674_v0 }
  0xd1   : > { %615 = vst [vmem:[#allocation3 + $0x4] sm:$0xf] %v10674_v0  ;;  %616 = vst [vmem:[#allocation3 + $0x8] sm:$0xf] %v10674_v0  ;;  %s10969_s27 = scalar_lea.vmem %s12004_s0, %s7882_s20  ;;  %9190 = vmatpush3.bf16.msra.mxu0 %v9484_v2  ;;  %v9514_v18 = vld [vmem:[#allocation10 + $0xa0] sm:$0xff]   ;;  %v9512_v19 = vld [vmem:[#allocation10 + $0x28] sm:$0xff]  }
  0xd2   : > { %617 = vst [vmem:[#allocation3 + $0xc] sm:$0xf] %v10674_v0  ;;  %618 = vst [vmem:[#allocation3 + $0xc0] sm:$0xf] %v10674_v0  ;;  %v9485_v4 = vld [vmem:[%s10969_s27] sm:$0xff]   ;;  %v9486_v5 = vld [vmem:[%s10969_s27 + $0x8] sm:$0xff]   ;;  %9235 = vmatprep.subr.bf16.mxu0 %v9505_v10 }
  0xd3   : > { %619 = vst [vmem:[#allocation3 + $0xc4] sm:$0xf] %v10674_v0  ;;  %620 = vst [vmem:[#allocation3 + $0xc8] sm:$0xf] %v10674_v0  ;;  %9191 = vmatprep.mubr.msk.bf16.mxu0 %vm795_vm1, %v9485_v4  ;;  %v9487_v6 = vld [vmem:[%s10969_s27 + $0x10] sm:$0xff]   ;;  %v9488_v7 = vld [vmem:[%s10969_s27 + $0x18] sm:$0xff]   ;;  %1953 = vmatpush1.bf16.msra.mxu1 %v9510_v14 }
  0xd4   : > { %621 = vst [vmem:[#allocation3 + $0xcc] sm:$0xf] %v10674_v0  ;;  %9192 = vmatmul.mubr.msk.bf16.vlgmr.msra.gmra.mxu0 %vm795_vm1, %v9486_v5  ;;  %v9489_v8 = vld [vmem:[%s10969_s27 + $0x20] sm:$0xff]   ;;  %v9490_v9 = vld [vmem:[%s10969_s27 + $0x28] sm:$0xff]   ;;  %v9491_v11 = vld [vmem:[%s10969_s27 + $0x30] sm:$0xff]   ;;  %1954 = vmatprep.subr.bf16.mxu1 %v10674_v0  ;;  %s595_s24 = sand.u32 1, %s10648_s26  }
  0xd5   : > { %9195 = vmatprep.mubr.msk.bf16.mxu0 %vm795_vm1, %v9487_v6  ;;  %9236 = vmatpush3.bf16.msra.mxu0 %v9505_v10  ;;  %v9492_v16 = vld [vmem:[%s10969_s27 + $0x38] sm:$0xff]   ;;  %v9493_v17 = vld [vmem:[%s10969_s27 + $0x40] sm:$0xff]   ;;  %v9494_v21 = vld [vmem:[%s10969_s27 + $0x48] sm:$0xff]   ;;  %s7881_s1 = sshll.u32 %s595_s24, 5  ;;  %s8786_s14 = sshll.u32 %s10769_s29, 9 }
  0xd6   : > { %9237 = vmatprep.subr.bf16.mxu0 %v9508_v12  ;;  %v9518_v20 = vld [vmem:[#allocation10 + $0x98] sm:$0xff]   ;;  %v9513_v22 = vld [vmem:[#allocation10 + $0x20] sm:$0xff]   ;;  %v9516_v25 = vld [vmem:[#allocation10 + $0x10] sm:$0xff]   ;;  %s597_s2 = scalar_lea.vmem [#allocation25], %s7881_s1  ;;  %s11958_s22 = scalar_lea.hbm %s12017_s13, %s8786_s14 }
  0xd7   : > { %1955 = vmatpush1.bf16.msra.mxu1 %v9512_v19  ;;  %v9495_v23 = vld [vmem:[%s10969_s27 + $0x50] sm:$0xff]   ;;  %v9515_v24 = vld [vmem:[#allocation10 + $0x18] sm:$0xff]   ;;  %v9496_v26 = vld [vmem:[%s10969_s27 + $0x58] sm:$0xff]   ;;  %s7674_s19 = sshll.u32 %s597_s2, 4  ;;  %s11964_s29 = scalar_lea.sflag [#allocation7], %s595_s24  ;;  %s11960_s19 = int_to_ptr.vmem [resolvable:$true] %s7674_s19 }
  0xd8   : > { %1956 = vmatprep.subr.bf16.mxu1 %v10674_v0  ;;  %v9497_v27 = vld [vmem:[%s10969_s27 + $0x60] sm:$0xff]   ;;  %v9517_v28 = vld [vmem:[#allocation10 + $0x8] sm:$0xff]   ;;  %v9519_v29 = vld [vmem:[#allocation10] sm:$0xff]   ;;  %s10568_s23 = scalar_lea.vmem %s11960_s19, 512  ;;  %p12107_p2 = scmp.ne.s32.totalorder %s12037_s18, 0 }
  0xd9   : > { %9238 = vmatpush3.bf16.msra.mxu0 %v9508_v12  ;;  %v9498_v30 = vld [vmem:[%s10969_s27 + $0x68] sm:$0xff]   ;;  %v9499_v31 = vld [vmem:[%s10969_s27 + $0x70] sm:$0xff]   ;;  %v9521_v33 = vld [vmem:[#allocation10 + $0x70] sm:$0xff]   ;;  %p10569_p13 = scmp.ne.s32.totalorder %s11960_s19, %s10568_s23  ;;  %s10675_s17 = smov [#allocation25]  }
  0xda   : > { %9239 = vmatprep.subr.bf16.mxu0 %v9511_v15  ;;  %v9520_v32 = vld [vmem:[#allocation10 + $0x78] sm:$0xff]   ;;  %v9500_v34 = vld [vmem:[%s10969_s27 + $0x78] sm:$0xff]   ;;  %v9503_v37 = vld [vmem:[%s10969_s27 + $0x90] sm:$0xff]   ;;  %s10572_s20 = sshll.u32 %s10675_s17, 4  ;;  %s10573_s20 = int_to_ptr.vmem [resolvable:$false] %s10572_s20 }
  0xdb   : > { %1957 = vmatpush1.bf16.msra.mxu1 %v9513_v22  ;;  %v9501_v35 = vld [vmem:[%s10969_s27 + $0x80] sm:$0xff]   ;;  %v9502_v36 = vld [vmem:[%s10969_s27 + $0x88] sm:$0xff]   ;;  %v9523_v38 = vld [vmem:[#allocation10 + $0x68] sm:$0xff]   ;;  %p10570_p9 = pnand %p10569_p13, %p12107_p2  ;;  %s10574_s30 = scalar_lea.vmem %s10573_s20, 1024 }
  0xdc   : > { %9196 = vmatmul.mubr.msk.bf16.gmra.mxu0 %vm795_vm1, %v9488_v7  ;;  %1958 = vmatprep.subr.bf16.mxu1 %v10674_v0  ;;  %v9504_v39 = vld [vmem:[%s10969_s27 + $0x98] sm:$0xff]   ;;  %v9506_v40 = vld [vmem:[%s10969_s27 + $0xa0] sm:$0xff]   ;;  %v9524_v41 = vld [vmem:[#allocation10 + $0x60] sm:$0xff]   ;;  %p10575_p12 = scmp.lt.s32.totalorder %s11960_s19, %s10573_s20  ;;  %p10576_p4 = scmp.lt.s32.totalorder %s10574_s30, %s10568_s23 }
  0xdd   : > { %9199 = vmatprep.mubr.msk.bf16.mxu0 %vm795_vm1, %v9489_v8  ;;  %9240 = vmatpush3.bf16.msra.mxu0 %v9511_v15  ;;  %v9522_v42 = vld [vmem:[#allocation10 + $0x90] sm:$0xff]   ;;  %v9525_v43 = vld [vmem:[#allocation10 + $0x58] sm:$0xff]   ;;  %v9526_v46 = vld [vmem:[#allocation10 + $0x88] sm:$0xff]   ;;  %p10571_p3 = pneg %p10570_p9 }
  0xde   : > { %9241 = vmatprep.subr.bf16.mxu0 %v9514_v18  ;;  %v9507_v44 = vld [vmem:[%s10969_s27 + $0xa8] sm:$0xff]   ;;  %v9527_v45 = vld [vmem:[#allocation10 + $0x50] sm:$0xff]   ;;  %v9528_v47 = vld [vmem:[#allocation10 + $0x48] sm:$0xff]   ;;  %p10577_p7 = por %p10576_p4, %p10575_p12 }
  0xdf   : > { %1959 = vmatpush1.bf16.msra.mxu1 %v9515_v24  ;;  %v9530_v48 = vld [vmem:[#allocation10 + $0x40] sm:$0xff]   ;;  %v11030_v51 = vld [vmem:[#allocation8] ss:$0 sm:$0xff] }
  0xe0   : > { %1960 = vmatprep.subr.bf16.mxu1 %v10674_v0  ;;  %v9529_v49 = vld [vmem:[#allocation10 + $0x80] sm:$0xff]   ;;  %p10578_p5 = pnand %p10577_p7, %p10571_p3 }
  0xe1   : > { %9242 = vmatpush3.bf16.msra.mxu0 %v9514_v18  ;;  %v9551_v50 = vld [vmem:[#allocation13 + $0x174] ss:$8 sps:$4 sm:$0xff]  }
  0xe2   : > { %9243 = vmatprep.subr.bf16.mxu0 %v9518_v20 }
  0xe3   : > { %1961 = vmatpush1.bf16.msra.mxu1 %v9516_v25 }
  0xe4   : > { %9200 = vmatmul.mubr.msk.bf16.gmra.mxu0 %vm795_vm1, %v9490_v9  ;;  %1962 = vmatprep.subr.bf16.mxu1 %v10674_v0 }
  0xe5   : > { %9203 = vmatprep.mubr.msk.bf16.mxu0 %vm795_vm1, %v9491_v11  ;;  %9244 = vmatpush3.bf16.msra.mxu0 %v9518_v20 }
  0xe6   : > { %9245 = vmatprep.subr.bf16.mxu0 %v9522_v42 }
  0xe7   : > { %1963 = vmatpush1.bf16.msra.mxu1 %v9517_v28 }
  0xe8   : > { %1964 = vmatprep.subr.bf16.mxu1 %v10674_v0 }
  0xe9   : > { %9246 = vmatpush3.bf16.msra.mxu0 %v9522_v42 }
  0xea   : > { %9247 = vmatprep.subr.bf16.mxu0 %v9526_v46 }
  0xeb   : > { %1965 = vmatpush1.bf16.msra.mxu1 %v9519_v29 }
  0xec   : > { %9204 = vmatmul.mubr.msk.bf16.gmra.mxu0 %vm795_vm1, %v9492_v16  ;;  %1966 = vmatprep.subr.bf16.mxu1 %v10674_v0 }
  0xed   : > { %9207 = vmatprep.mubr.msk.bf16.mxu0 %vm795_vm1, %v9493_v17  ;;  %9248 = vmatpush3.bf16.msra.mxu0 %v9526_v46 }
  0xee   : > { %9249 = vmatprep.subr.bf16.mxu0 %v9529_v49 }
  0xef   : > { %1967 = vmatpush2.bf16.msra.mxu1 %v9520_v32  ;;  %v9532_v32 = vld [vmem:[#allocation2] sm:$0xff]  }
  0xf0   : > { %1968 = vmatprep.subr.bf16.mxu1 %v10674_v0 }
  0xf1   : > { %9250 = vmatpush3.bf16.msra.mxu0 %v9529_v49 }
  0xf3   : > { %1969 = vmatpush2.bf16.msra.mxu1 %v9521_v33  ;;  %v9549_v33 = vld [vmem:[#allocation13 + $0x170] ss:$8 sps:$4 sm:$0xff]  }
  0xf4   : > { %9208 = vmatmul.mubr.msk.bf16.gmra.mxu0 %vm795_vm1, %v9494_v21  ;;  %1970 = vmatprep.subr.bf16.mxu1 %v10674_v0 }
  0xf5   : > { %9211 = vmatprep.mubr.msk.bf16.mxu0 %vm795_vm1, %v9495_v23 }
  0xf7   : > { %1971 = vmatpush2.bf16.msra.mxu1 %v9523_v38 }
  0xf8   : > { %1972 = vmatprep.subr.bf16.mxu1 %v10674_v0 }
  0xfb   : > { %1973 = vmatpush2.bf16.msra.mxu1 %v9524_v41 }
  0xfc   : > { %9212 = vmatmul.mubr.msk.bf16.gmra.mxu0 %vm795_vm1, %v9496_v26  ;;  %1974 = vmatprep.subr.bf16.mxu1 %v10674_v0 }
  0xfd   : > { %9215 = vmatprep.mubr.msk.bf16.mxu0 %vm795_vm1, %v9497_v27 }
  0xff   : > { %1975 = vmatpush2.bf16.msra.mxu1 %v9525_v43 }
 0x100   : > { %1976 = vmatprep.subr.bf16.mxu1 %v10674_v0 }
 0x103   : > { %1977 = vmatpush2.bf16.msra.mxu1 %v9527_v45 }
 0x104   : > { %9216 = vmatmul.mubr.msk.bf16.gmra.mxu0 %vm795_vm1, %v9498_v30  ;;  %1978 = vmatprep.subr.bf16.mxu1 %v10674_v0 }
 0x105   : > { %9219 = vmatprep.mubr.msk.bf16.mxu0 %vm795_vm1, %v9499_v31 }
 0x107   : > { %1979 = vmatpush2.bf16.msra.mxu1 %v9528_v47  ;;  %v9556_v47 = vld [vmem:[#allocation13 + $0x160] ss:$8 sps:$4 sm:$0xff]  }
 0x108   : > { %1980 = vmatprep.subr.bf16.mxu1 %v10674_v0 }
 0x10b   : > { %1981 = vmatpush2.bf16.msra.mxu1 %v9530_v48 }
 0x10c   : > { %9220 = vmatmul.mubr.msk.bf16.gmra.mxu0 %vm795_vm1, %v9500_v34  ;;  %3597 = vmatprep.subr.bf16.mxu1 %v9551_v50 }
 0x10d   : > { %9223 = vmatprep.mubr.msk.bf16.mxu0 %vm795_vm1, %v9501_v35 }
 0x114   : > { %9224 = vmatmul.mubr.msk.bf16.gmra.mxu0 %vm795_vm1, %v9502_v36 }
 0x115   : > { %9227 = vmatprep.mubr.msk.bf16.mxu0 %vm795_vm1, %v9503_v37 }
 0x11c   : > { %9228 = vmatmul.mubr.msk.bf16.gmra.mxu0 %vm795_vm1, %v9504_v39  ;;  %v9558_v39 = vld [vmem:[#allocation13 + $0x164] ss:$8 sps:$4 sm:$0xff]  }
 0x11d   : > { %9231 = vmatprep.mubr.msk.bf16.mxu0 %vm795_vm1, %v9506_v40 }
 0x124   : > { %9232 = vmatmul.mubr.msk.bf16.gmra.mxu0 %vm795_vm1, %v9507_v44 }
 0x194   : > { %v9193_v52 = vpop.f32.mrf.mxu0 }
 0x195   : > { %v909_v53 = vadd.f32 %v9193_v52, %v11030_v51 }
 0x196   : > { %v900_v54 = vpop.f32.mrf.mxu0 }
 0x197   : > { %v901_v55 = vadd.f32 %v11030_v51, %v900_v54  ;;  %v1077_v57 = vmul.f32 0.1, %v909_v53  ;;  %v9568_v54 = vld [vmem:[#allocation13 + $0x154] ss:$8 sps:$4 sm:$0xff]  }
 0x198   : > { %v9194_v56 = vpop.f32.mrf.mxu0 }
 0x199   : > { %v912_v58 = vadd.f32 %v9194_v56, %v11030_v51  ;;  %v1075_v60 = vmul.f32 0.1, %v901_v55  ;;  %v1121_v1 = vmax.f32 %v909_v53, %v1077_v57  ;;  %v9535_v53 = vld [vmem:[#allocation2 + $0x8] sm:$0xff]  }
 0x19a   : > { %v903_v59 = vpop.f32.mrf.mxu0  ;;  %v9566_v57 = vld [vmem:[#allocation13 + $0x150] ss:$8 sps:$4 sm:$0xff]  }
 0x19b   : > { %v1078_v61 = vmul.f32 0.1, %v912_v58  ;;  %v904_v62 = vadd.f32 %v11030_v51, %v903_v59  ;;  %v1119_v6 = vmax.f32 %v901_v55, %v1075_v60 }
 0x19c   : > { %v9197_v63 = vpop.f32.mrf.mxu0 }
 0x19d   : > { %v1122_v2 = vmax.f32 %v912_v58, %v1078_v61  ;;  %v1076_v3 = vmul.f32 0.1, %v904_v62  ;;  %v925_v4 = vadd.f32 %v9197_v63, %v11030_v51  ;;  %v9576_v61 = vld [vmem:[#allocation13 + $0x144] ss:$8 sps:$4 sm:$0xff]  }
 0x19e   : > { %v916_v5 = vpop.f32.mrf.mxu0 }
 0x19f   : > { %v8795_v7 = vpack.c.bf16 %v1122_v2, %v1121_v1  ;;  %v1120_v8 = vmax.f32 %v904_v62, %v1076_v3  ;;  %v917_v9 = vadd.f32 %v11030_v51, %v916_v5  ;;  %v1081_v12 = vmul.f32 0.1, %v925_v4 }
 0x1a0   : > { %v9198_v10 = vpop.f32.mrf.mxu0 }
 0x1a1   : > { %9008 = vst [vmem:[#allocation2 + $0x18] sm:$0xff] %v8795_v7   ;;  %v8790_v11 = vpack.c.bf16 %v1120_v8, %v1119_v6  ;;  %v928_v13 = vadd.f32 %v9198_v10, %v11030_v51  ;;  %v1079_v15 = vmul.f32 0.1, %v917_v9  ;;  %v1125_v19 = vmax.f32 %v925_v4, %v1081_v12  ;;  %v9581_v10 = vld [vmem:[#allocation13 + $0x70] ss:$8 sps:$4 sm:$0xff]  }
 0x1a2   : > { %v919_v14 = vpop.f32.mrf.mxu0 }
 0x1a3   : > { %9007 = vst [vmem:[#allocation2 + $0x10] sm:$0xff] %v8790_v11   ;;  %v1082_v16 = vmul.f32 0.1, %v928_v13  ;;  %v920_v17 = vadd.f32 %v11030_v51, %v919_v14  ;;  %v1123_v24 = vmax.f32 %v917_v9, %v1079_v15  ;;  %v9583_v11 = vld [vmem:[#allocation13 + $0x74] ss:$8 sps:$4 sm:$0xff]  }
 0x1a4   : > { %v9201_v18 = vpop.f32.mrf.mxu0  ;;  %v9574_v14 = vld [vmem:[#allocation13 + $0x140] ss:$8 sps:$4 sm:$0xff]   ;;  %3344 = vmatprep.subr.bf16.mxu0 %v9583_v11 }
 0x1a5   : > { %v1126_v20 = vmax.f32 %v928_v13, %v1082_v16  ;;  %v1080_v21 = vmul.f32 0.1, %v920_v17  ;;  %v941_v22 = vadd.f32 %v9201_v18, %v11030_v51 }
 0x1a6   : > { %v932_v23 = vpop.f32.mrf.mxu0 }
 0x1a7   : > { %v8805_v25 = vpack.c.bf16 %v1126_v20, %v1125_v19  ;;  %v1124_v26 = vmax.f32 %v920_v17, %v1080_v21  ;;  %v933_v27 = vadd.f32 %v11030_v51, %v932_v23  ;;  %v1085_v30 = vmul.f32 0.1, %v941_v22 }
 0x1a8   : > { %v9202_v28 = vpop.f32.mrf.mxu0  ;;  %v11047_v40 = vld [vmem:[#allocation2 + $0x18] sm:$0xff]  }
 0x1a9   : > { %9010 = vst [vmem:[#allocation2 + $0x28] sm:$0xff] %v8805_v25   ;;  %v8800_v29 = vpack.c.bf16 %v1124_v26, %v1123_v24  ;;  %v944_v31 = vadd.f32 %v9202_v28, %v11030_v51  ;;  %v1083_v36 = vmul.f32 0.1, %v933_v27  ;;  %v1129_v42 = vmax.f32 %v941_v22, %v1085_v30 }
 0x1aa   : > { %v935_v34 = vpop.f32.mrf.mxu0  ;;  %v11043_v35 = vld [vmem:[#allocation2 + $0x10] sm:$0xff]  }
 0x1ab   : > { %9009 = vst [vmem:[#allocation2 + $0x20] sm:$0xff] %v8800_v29   ;;  %v1086_v37 = vmul.f32 0.1, %v944_v31  ;;  %v936_v38 = vadd.f32 %v11030_v51, %v935_v34  ;;  %1982 = vmatprep.mubr.bf16.mxu1 %v11043_v35  ;;  %v1127_v48 = vmax.f32 %v933_v27, %v1083_v36  ;;  %v9587_v34 = vld [vmem:[#allocation13 + $0x130] ss:$8 sps:$4 sm:$0xff]  }
 0x1ac   : > { %v9205_v41 = vpop.f32.mrf.mxu0  ;;  %1983 = vmatmul.mubr.bf16.vlgmr.msra.gmra.mxu1 %v9532_v32  ;;  %v9589_v36 = vld [vmem:[#allocation13 + $0x134] ss:$8 sps:$4 sm:$0xff]  }
 0x1ad   : > { %v1130_v43 = vmax.f32 %v944_v31, %v1086_v37  ;;  %v1084_v44 = vmul.f32 0.1, %v936_v38  ;;  %v957_v45 = vadd.f32 %v9205_v41, %v11030_v51  ;;  %1990 = vmatprep.mubr.bf16.mxu1 %v11047_v40  ;;  %3598 = vmatpush1.bf16.msra.mxu1 %v9549_v33  ;;  %v9592_v41 = vld [vmem:[#allocation13 + $0x64] ss:$8 sps:$4 sm:$0xff]  }
 0x1ae   : > { %v948_v46 = vpop.f32.mrf.mxu0  ;;  %3599 = vmatprep.subr.bf16.mxu1 %v9558_v39  ;;  %v9590_v39 = vld [vmem:[#allocation13 + $0x60] ss:$8 sps:$4 sm:$0xff]  }
 0x1af   : > { %v8815_v49 = vpack.c.bf16 %v1130_v43, %v1129_v42  ;;  %v1128_v50 = vmax.f32 %v936_v38, %v1084_v44  ;;  %v949_v52 = vadd.f32 %v11030_v51, %v948_v46  ;;  %v1089_v55 = vmul.f32 0.1, %v957_v45 }
 0x1b0   : > { %v9206_v56 = vpop.f32.mrf.mxu0  ;;  %v9536_v1 = vld [vmem:[#allocation2 + $0x28] sm:$0xff]  }
 0x1b1   : > { %9012 = vst [vmem:[#allocation2 + $0x38] sm:$0xff] %v8815_v49   ;;  %v8810_v58 = vpack.c.bf16 %v1128_v50, %v1127_v48  ;;  %v1087_v59 = vmul.f32 0.1, %v949_v52  ;;  %v960_v60 = vadd.f32 %v9206_v56, %v11030_v51  ;;  %3600 = vmatpush1.bf16.msra.mxu1 %v9556_v47  ;;  %v1133_v3 = vmax.f32 %v957_v45, %v1089_v55  ;;  %v11061_v27 = vld [vmem:[#allocation2 + $0x28] sm:$0xff]  }
 0x1b2   : > { %v9534_v62 = vld [vmem:[#allocation2 + $0x20] sm:$0xff]   ;;  %v951_v63 = vpop.f32.mrf.mxu0  ;;  %3601 = vmatprep.subr.bf16.mxu1 %v9568_v54 }
 0x1b3   : > { %9011 = vst [vmem:[#allocation2 + $0x30] sm:$0xff] %v8810_v58   ;;  %v952_v2 = vadd.f32 %v11030_v51, %v951_v63  ;;  %9251 = vmatprep.mubr.bf16.mxu0 %v9534_v62  ;;  %v11054_v4 = vld [vmem:[#allocation2 + $0x20] sm:$0xff]   ;;  %v1090_v5 = vmul.f32 0.1, %v960_v60  ;;  %v1131_v7 = vmax.f32 %v949_v52, %v1087_v59 }
 0x1b4   : > { %v9209_v6 = vpop.f32.mrf.mxu0  ;;  %1991 = vmatmul.mubr.bf16.gmra.mxu1 %v9535_v53  ;;  %9252 = vmatmul.mubr.bf16.vlgmr.msra.gmra.mxu0 %v9536_v1  ;;  %v9594_v63 = vld [vmem:[#allocation13 + $0x50] ss:$8 sps:$4 sm:$0xff]   ;;  %v9596_v1 = vld [vmem:[#allocation13 + $0x54] ss:$8 sps:$4 sm:$0xff]  }
 0x1b5   : > { %v1088_v8 = vmul.f32 0.1, %v952_v2  ;;  %v973_v9 = vadd.f32 %v9209_v6, %v11030_v51  ;;  %1998 = vmatprep.mubr.bf16.mxu1 %v11054_v4  ;;  %v1134_v12 = vmax.f32 %v960_v60, %v1090_v5  ;;  %3602 = vmatpush1.bf16.msra.mxu1 %v9566_v57 }
 0x1b6   : > { %v964_v13 = vpop.f32.mrf.mxu0  ;;  %3603 = vmatprep.subr.bf16.mxu1 %v9576_v61  ;;  %3345 = vmatpush1.bf16.msra.mxu0 %v9581_v10 }
 0x1b7   : > { %v1132_v15 = vmax.f32 %v952_v2, %v1088_v8  ;;  %v965_v16 = vadd.f32 %v11030_v51, %v964_v13  ;;  %v8825_v17 = vpack.c.bf16 %v1134_v12, %v1133_v3  ;;  %v1093_v18 = vmul.f32 0.1, %v973_v9  ;;  %3346 = vmatprep.subr.bf16.mxu0 %v9592_v41 }
 0x1b8   : > { %v9210_v19 = vpop.f32.mrf.mxu0  ;;  %v9539_v25 = vld [vmem:[#allocation2 + $0x38] sm:$0xff]  }
 0x1b9   : > { %v8820_v20 = vpack.c.bf16 %v1132_v15, %v1131_v7  ;;  %v1091_v21 = vmul.f32 0.1, %v965_v16  ;;  %v976_v22 = vadd.f32 %v9210_v19, %v11030_v51  ;;  %9014 = vst [vmem:[#allocation2 + $0x48] sm:$0xff] %v8825_v17   ;;  %3604 = vmatpush1.bf16.msra.mxu1 %v9574_v14  ;;  %v1137_v28 = vmax.f32 %v973_v9, %v1093_v18  ;;  %v9601_v7 = vld [vmem:[#allocation13 + $0x44] ss:$8 sps:$4 sm:$0xff]  }
 0x1ba   : > { %v9538_v23 = vld [vmem:[#allocation2 + $0x30] sm:$0xff]   ;;  %v967_v24 = vpop.f32.mrf.mxu0  ;;  %3605 = vmatprep.subr.bf16.mxu1 %v9589_v36  ;;  %3347 = vmatpush1.bf16.msra.mxu0 %v9590_v39  ;;  %v11077_v18 = vld [vmem:[#allocation2 + $0x38] sm:$0xff]  }
 0x1bb   : > { %9013 = vst [vmem:[#allocation2 + $0x40] sm:$0xff] %v8820_v20   ;;  %v968_v26 = vadd.f32 %v11030_v51, %v967_v24  ;;  %9255 = vmatprep.mubr.bf16.mxu0 %v9538_v23  ;;  %v1094_v29 = vmul.f32 0.1, %v976_v22  ;;  %v1135_v31 = vmax.f32 %v965_v16, %v1091_v21  ;;  %v11069_v56 = vld [vmem:[#allocation2 + $0x30] sm:$0xff]   ;;  %3348 = vmatprep.subr.bf16.mxu0 %v9596_v1 }
 0x1bc   : > { %v9213_v30 = vpop.f32.mrf.mxu0  ;;  %1999 = vmatmul.mubr.bf16.gmra.mxu1 %v11043_v35  ;;  %9256 = vmatmul.mubr.bf16.gmra.mxu0 %v9539_v25  ;;  %v9603_v25 = vld [vmem:[#allocation13 + $0x30] ss:$8 sps:$4 sm:$0xff]  }
 0x1bd   : > { %v1092_v32 = vmul.f32 0.1, %v968_v26  ;;  %v989_v33 = vadd.f32 %v9213_v30, %v11030_v51  ;;  %2006 = vmatprep.mubr.bf16.mxu1 %v11061_v27  ;;  %v1138_v37 = vmax.f32 %v976_v22, %v1094_v29  ;;  %3606 = vmatpush1.bf16.msra.mxu1 %v9587_v34 }
 0x1be   : > { %v980_v38 = vpop.f32.mrf.mxu0  ;;  %3349 = vmatpush1.bf16.msra.mxu0 %v9594_v63  ;;  %v9618_v63 = vld [vmem:[#allocation13 + $0x4] ss:$8 sps:$4 sm:$0xff]  }
 0x1bf   : > { %v1136_v42 = vmax.f32 %v968_v26, %v1092_v32  ;;  %v1097_v43 = vmul.f32 0.1, %v989_v33  ;;  %v981_v44 = vadd.f32 %v11030_v51, %v980_v38  ;;  %v8835_v45 = vpack.c.bf16 %v1138_v37, %v1137_v28  ;;  %3350 = vmatprep.subr.bf16.mxu0 %v9601_v7  ;;  %v9605_v26 = vld [vmem:[#allocation13 + $0x34] ss:$8 sps:$4 sm:$0xff]   ;;  %v9606_v28 = vld [vmem:[#allocation13 + $0x120] ss:$8 sps:$4 sm:$0xff]  }
 0x1c0   : > { %v9214_v35 = vpop.f32.mrf.mxu0  ;;  %v9543_v47 = vld [vmem:[#allocation2 + $0x48] sm:$0xff]  }
 0x1c1   : > { %v8830_v46 = vpack.c.bf16 %v1136_v42, %v1135_v31  ;;  %v992_v48 = vadd.f32 %v9214_v35, %v11030_v51  ;;  %9016 = vst [vmem:[#allocation2 + $0x58] sm:$0xff] %v8835_v45   ;;  %v1141_v52 = vmax.f32 %v989_v33, %v1097_v43  ;;  %v1095_v53 = vmul.f32 0.1, %v981_v44  ;;  %v9608_v33 = vld [vmem:[#allocation13 + $0x124] ss:$8 sps:$4 sm:$0xff]  }
 0x1c2   : > { %v9542_v49 = vld [vmem:[#allocation2 + $0x40] sm:$0xff]   ;;  %v983_v50 = vpop.f32.mrf.mxu0  ;;  %3607 = vmatprep.subr.bf16.mxu1 %v9608_v33 }
 0x1c3   : > { %9015 = vst [vmem:[#allocation2 + $0x50] sm:$0xff] %v8830_v46   ;;  %v1098_v54 = vmul.f32 0.1, %v992_v48  ;;  %v984_v55 = vadd.f32 %v11030_v51, %v983_v50  ;;  %9259 = vmatprep.mubr.bf16.mxu0 %v9542_v49  ;;  %v1139_v58 = vmax.f32 %v981_v44, %v1095_v53  ;;  %3608 = vmatpush1.bf16.msra.mxu1 %v9606_v28  ;;  %v9610_v50 = vld [vmem:[#allocation13 + $0x20] ss:$8 sps:$4 sm:$0xff]  }
 0x1c4   : > { %v9217_v57 = vpop.f32.mrf.mxu0  ;;  %2007 = vmatmul.mubr.bf16.gmra.mxu1 %v11047_v40  ;;  %9260 = vmatmul.mubr.bf16.gmra.mxu0 %v9543_v47  ;;  %v9599_v40 = vld [vmem:[#allocation13 + $0x40] ss:$8 sps:$4 sm:$0xff]  }
 0x1c5   : > { %v1142_v59 = vmax.f32 %v992_v48, %v1098_v54  ;;  %v1096_v60 = vmul.f32 0.1, %v984_v55  ;;  %v1005_v61 = vadd.f32 %v9217_v57, %v11030_v51  ;;  %2014 = vmatprep.mubr.bf16.mxu1 %v11069_v56  ;;  %3351 = vmatpush1.bf16.msra.mxu0 %v9599_v40  ;;  %v9615_v54 = vld [vmem:[#allocation13 + $0x14] ss:$8 sps:$4 sm:$0xff]  }
 0x1c6   : > { %v996_v62 = vpop.f32.mrf.mxu0  ;;  %3352 = vmatprep.subr.bf16.mxu0 %v9605_v26 }
 0x1c7   : > { %v8845_v2 = vpack.c.bf16 %v1142_v59, %v1141_v52  ;;  %v1140_v3 = vmax.f32 %v984_v55, %v1096_v60  ;;  %v1101_v5 = vmul.f32 0.1, %v1005_v61  ;;  %v997_v6 = vadd.f32 %v11030_v51, %v996_v62  ;;  %v9612_v52 = vld [vmem:[#allocation13 + $0x24] ss:$8 sps:$4 sm:$0xff]   ;;  %v9613_v60 = vld [vmem:[#allocation13 + $0x10] ss:$8 sps:$4 sm:$0xff]  }
 0x1c8   : > { %v9218_v8 = vpop.f32.mrf.mxu0  ;;  %v9547_v10 = vld [vmem:[#allocation2 + $0x58] sm:$0xff]  }
 0x1c9   : > { %9018 = vst [vmem:[#allocation2 + $0x68] sm:$0xff] %v8845_v2   ;;  %v8840_v9 = vpack.c.bf16 %v1140_v3, %v1139_v58  ;;  %v1008_v11 = vadd.f32 %v9218_v8, %v11030_v51  ;;  %v1145_v14 = vmax.f32 %v1005_v61, %v1101_v5  ;;  %v1099_v15 = vmul.f32 0.1, %v997_v6  ;;  %3353 = vmatpush1.bf16.msra.mxu0 %v9603_v25 }
 0x1ca   : > { %v9546_v12 = vld [vmem:[#allocation2 + $0x50] sm:$0xff]   ;;  %v999_v13 = vpop.f32.mrf.mxu0  ;;  %3354 = vmatprep.subr.bf16.mxu0 %v9612_v52 }
 0x1cb   : > { %9017 = vst [vmem:[#allocation2 + $0x60] sm:$0xff] %v8840_v9   ;;  %v1102_v16 = vmul.f32 0.1, %v1008_v11  ;;  %v1000_v17 = vadd.f32 %v11030_v51, %v999_v13  ;;  %9263 = vmatprep.mubr.bf16.mxu0 %v9546_v12  ;;  %v1143_v20 = vmax.f32 %v997_v6, %v1099_v15 }
 0x1cc   : > { %v9221_v19 = vpop.f32.mrf.mxu0  ;;  %2015 = vmatmul.mubr.bf16.gmra.mxu1 %v11054_v4  ;;  %9264 = vmatmul.mubr.bf16.gmra.mxu0 %v9547_v10  ;;  %v11083_v4 = vld [vmem:[#allocation2 + $0x40] sm:$0xff]   ;;  %v9616_v10 = vld [vmem:[#allocation13] ss:$8 sps:$4 sm:$0xff]  }
 0x1cd   : > { %v1146_v21 = vmax.f32 %v1008_v11, %v1102_v16  ;;  %v1100_v22 = vmul.f32 0.1, %v1000_v17  ;;  %v1021_v23 = vadd.f32 %v9221_v19, %v11030_v51  ;;  %2022 = vmatprep.mubr.bf16.mxu1 %v11077_v18  ;;  %3355 = vmatpush1.bf16.msra.mxu0 %v9610_v50  ;;  %v9621_v11 = vld [vmem:[#allocation13 + $0xf4] ss:$8 sps:$4 sm:$0xff]   ;;  %v9622_v16 = vld [vmem:[#allocation13 + $0x110] ss:$8 sps:$4 sm:$0xff]  }
 0x1ce   : > { %v1012_v24 = vpop.f32.mrf.mxu0  ;;  %3356 = vmatprep.subr.bf16.mxu0 %v9615_v54 }
 0x1cf   : > { %v8855_v29 = vpack.c.bf16 %v1146_v21, %v1145_v14  ;;  %v1144_v30 = vmax.f32 %v1000_v17, %v1100_v22  ;;  %v1105_v31 = vmul.f32 0.1, %v1021_v23  ;;  %v1013_v32 = vadd.f32 %v11030_v51, %v1012_v24  ;;  %v9624_v17 = vld [vmem:[#allocation13 + $0x114] ss:$8 sps:$4 sm:$0xff]   ;;  %v9619_v24 = vld [vmem:[#allocation13 + $0xf0] ss:$8 sps:$4 sm:$0xff]  }
 0x1d0   : > { %v9554_v34 = vld [vmem:[#allocation2 + $0x68] sm:$0xff]   ;;  %v9222_v36 = vpop.f32.mrf.mxu0  ;;  %3609 = vmatprep.subr.bf16.mxu1 %v9624_v17  ;;  %v9639_v17 = vld [vmem:[#allocation13 + $0x104] ss:$8 sps:$4 sm:$0xff]  }
 0x1d1   : > { %9020 = vst [vmem:[#allocation2 + $0x78] sm:$0xff] %v8855_v29   ;;  %v8850_v37 = vpack.c.bf16 %v1144_v30, %v1143_v20  ;;  %v1103_v38 = vmul.f32 0.1, %v1013_v32  ;;  %v1024_v39 = vadd.f32 %v9222_v36, %v11030_v51  ;;  %v1149_v43 = vmax.f32 %v1021_v23, %v1105_v31  ;;  %3357 = vmatpush1.bf16.msra.mxu0 %v9613_v60 }
 0x1d2   : > { %v9553_v41 = vld [vmem:[#allocation2 + $0x60] sm:$0xff]   ;;  %v1015_v42 = vpop.f32.mrf.mxu0  ;;  %3358 = vmatprep.subr.bf16.mxu0 %v9618_v63  ;;  %3610 = vmatpush1.bf16.msra.mxu1 %v9622_v16  ;;  %v9627_v63 = vld [vmem:[#allocation13 + $0xe4] ss:$8 sps:$4 sm:$0xff]   ;;  %v9637_v16 = vld [vmem:[#allocation13 + $0x100] ss:$8 sps:$4 sm:$0xff]  }
 0x1d3   : > { %9019 = vst [vmem:[#allocation2 + $0x70] sm:$0xff] %v8850_v37   ;;  %v1106_v44 = vmul.f32 0.1, %v1024_v39  ;;  %v1016_v45 = vadd.f32 %v11030_v51, %v1015_v42  ;;  %9267 = vmatprep.mubr.bf16.mxu0 %v9553_v41  ;;  %v1147_v46 = vmax.f32 %v1013_v32, %v1103_v38  ;;  %3611 = vmatprep.subr.bf16.mxu1 %v9639_v17 }
 0x1d4   : > { %v9225_v35 = vpop.f32.mrf.mxu0  ;;  %2023 = vmatmul.mubr.bf16.gmra.mxu1 %v11061_v27  ;;  %9268 = vmatmul.mubr.bf16.gmra.mxu0 %v9554_v34  ;;  %v11091_v27 = vld [vmem:[#allocation2 + $0x48] sm:$0xff]  }
 0x1d5   : > { %v1150_v47 = vmax.f32 %v1024_v39, %v1106_v44  ;;  %v1104_v48 = vmul.f32 0.1, %v1016_v45  ;;  %v1037_v49 = vadd.f32 %v9225_v35, %v11030_v51  ;;  %2030 = vmatprep.mubr.bf16.mxu1 %v11083_v4  ;;  %3359 = vmatpush1.bf16.msra.mxu0 %v9616_v10 }
 0x1d6   : > { %v1028_v53 = vpop.f32.mrf.mxu0  ;;  %3360 = vmatprep.subr.bf16.mxu0 %v9621_v11  ;;  %v9631_v11 = vld [vmem:[#allocation13 + $0xc0] ss:$8 sps:$4 sm:$0xff]   ;;  %3612 = vmatpush1.bf16.msra.mxu1 %v9637_v16 }
 0x1d7   : > { %v8865_v55 = vpack.c.bf16 %v1150_v47, %v1149_v43  ;;  %v1148_v57 = vmax.f32 %v1016_v45, %v1104_v48  ;;  %v1109_v58 = vmul.f32 0.1, %v1037_v49  ;;  %v1029_v59 = vadd.f32 %v11030_v51, %v1028_v53  ;;  %v9555_v47 = vld [vmem:[#allocation2 + $0x58] sm:$0xff]  }
 0x1d8   : > { %v9561_v61 = vld [vmem:[#allocation2 + $0x78] sm:$0xff]   ;;  %v9226_v62 = vpop.f32.mrf.mxu0 }
 0x1d9   : > { %9022 = vst [vmem:[#allocation2 + $0x88] sm:$0xff] %v8865_v55   ;;  %v8860_v1 = vpack.c.bf16 %v1148_v57, %v1147_v46  ;;  %v1107_v2 = vmul.f32 0.1, %v1029_v59  ;;  %v1040_v3 = vadd.f32 %v9226_v62, %v11030_v51  ;;  %v1153_v7 = vmax.f32 %v1037_v49, %v1109_v58  ;;  %3361 = vmatpush2.bf16.msra.mxu0 %v9619_v24  ;;  %v9625_v62 = vld [vmem:[#allocation13 + $0xe0] ss:$8 sps:$4 sm:$0xff]  }
 0x1da   : > { %v9560_v5 = vld [vmem:[#allocation2 + $0x70] sm:$0xff]   ;;  %v1031_v6 = vpop.f32.mrf.mxu0  ;;  %3362 = vmatprep.subr.bf16.mxu0 %v9627_v63 }
 0x1db   : > { %9021 = vst [vmem:[#allocation2 + $0x80] sm:$0xff] %v8860_v1   ;;  %v1110_v8 = vmul.f32 0.1, %v1040_v3  ;;  %v1032_v40 = vadd.f32 %v11030_v51, %v1031_v6  ;;  %9271 = vmatprep.mubr.bf16.mxu0 %v9560_v5  ;;  %v1151_v12 = vmax.f32 %v1029_v59, %v1107_v2  ;;  %v9648_v24 = vld [vmem:[#allocation13 + $0x84] ss:$8 sps:$4 sm:$0xff]  }
 0x1dc   : > { %v9229_v9 = vpop.f32.mrf.mxu0  ;;  %2031 = vmatmul.mubr.bf16.gmra.mxu1 %v11069_v56  ;;  %9272 = vmatmul.mubr.bf16.gmra.mxu0 %v9561_v61  ;;  %v11099_v56 = vld [vmem:[#allocation2 + $0x50] sm:$0xff]  }
 0x1dd   : > { %v1154_v13 = vmax.f32 %v1040_v3, %v1110_v8  ;;  %v1108_v14 = vmul.f32 0.1, %v1032_v40  ;;  %v1053_v15 = vadd.f32 %v9229_v9, %v11030_v51  ;;  %2038 = vmatprep.mubr.bf16.mxu1 %v11091_v27  ;;  %v9559_v3 = vld [vmem:[#allocation2 + $0x60] sm:$0xff]   ;;  %3363 = vmatpush2.bf16.msra.mxu0 %v9625_v62  ;;  %v9562_v8 = vld [vmem:[#allocation2 + $0x68] sm:$0xff]  }
 0x1de   : > { %v1044_v19 = vpop.f32.mrf.mxu0 }
 0x1df   : > { %v8875_v20 = vpack.c.bf16 %v1154_v13, %v1153_v7  ;;  %v1152_v21 = vmax.f32 %v1032_v40, %v1108_v14  ;;  %v1113_v22 = vmul.f32 0.1, %v1053_v15  ;;  %v1045_v23 = vadd.f32 %v11030_v51, %v1044_v19  ;;  %v9598_v40 = vld [vmem:[#allocation2 + $0xc0] sm:$0xff]   ;;  %v9642_v19 = vld [vmem:[#allocation13 + $0xa4] ss:$8 sps:$4 sm:$0xff]  }
 0x1e0   : > { %v9565_v25 = vld [vmem:[#allocation2 + $0x88] sm:$0xff]   ;;  %v9230_v26 = vpop.f32.mrf.mxu0 }
 0x1e1   : > { %9024 = vst [vmem:[#allocation2 + $0x98] sm:$0xff] %v8875_v20   ;;  %v8870_v28 = vpack.c.bf16 %v1152_v21, %v1151_v12  ;;  %v1111_v29 = vmul.f32 0.1, %v1045_v23  ;;  %v1056_v30 = vadd.f32 %v9230_v26, %v11030_v51  ;;  %v1157_v33 = vmax.f32 %v1053_v15, %v1113_v22  ;;  %v9633_v12 = vld [vmem:[#allocation13 + $0xc4] ss:$8 sps:$4 sm:$0xff]   ;;  %v9573_v26 = vld [vmem:[#allocation2 + $0x88] sm:$0xff]  }
 0x1e2   : > { %v9564_v31 = vld [vmem:[#allocation2 + $0x80] sm:$0xff]   ;;  %v1047_v32 = vpop.f32.mrf.mxu0  ;;  %v9563_v15 = vld [vmem:[#allocation2 + $0x70] sm:$0xff]  }
 0x1e3   : > { %9023 = vst [vmem:[#allocation2 + $0x90] sm:$0xff] %v8870_v28   ;;  %v1114_v34 = vmul.f32 0.1, %v1056_v30  ;;  %v1048_v36 = vadd.f32 %v11030_v51, %v1047_v32  ;;  %9275 = vmatprep.mubr.bf16.mxu0 %v9564_v31  ;;  %v1155_v38 = vmax.f32 %v1045_v23, %v1111_v29  ;;  %v9636_v13 = vld [vmem:[#allocation13 + $0xb4] ss:$8 sps:$4 sm:$0xff]   ;;  %v9569_v23 = vld [vmem:[#allocation2 + $0x78] sm:$0xff]  }
 0x1e4   : > { %v9233_v37 = vpop.f32.mrf.mxu0  ;;  %2039 = vmatmul.mubr.bf16.gmra.mxu1 %v11077_v18  ;;  %9276 = vmatmul.mubr.bf16.gmra.mxu0 %v9565_v25  ;;  %v9634_v14 = vld [vmem:[#allocation13 + $0xb0] ss:$8 sps:$4 sm:$0xff]   ;;  %v9640_v20 = vld [vmem:[#allocation13 + $0xa0] ss:$8 sps:$4 sm:$0xff]   ;;  %v9645_v21 = vld [vmem:[#allocation13 + $0x94] ss:$8 sps:$4 sm:$0xff]  }
 0x1e5   : > { %v1158_v39 = vmax.f32 %v1056_v30, %v1114_v34  ;;  %v1112_v41 = vmul.f32 0.1, %v1048_v36  ;;  %v1069_v42 = vadd.f32 %v9233_v37, %v11030_v51  ;;  %2046 = vmatprep.mubr.bf16.mxu1 %v11099_v56  ;;  %v9643_v22 = vld [vmem:[#allocation13 + $0x90] ss:$8 sps:$4 sm:$0xff]  }
 0x1e6   : > { %v1060_v43 = vpop.f32.mrf.mxu0  ;;  %v9570_v25 = vld [vmem:[#allocation2 + $0x80] sm:$0xff]  }
 0x1e7   : > { %v8885_v44 = vpack.c.bf16 %v1158_v39, %v1157_v33  ;;  %v1156_v45 = vmax.f32 %v1048_v36, %v1112_v41  ;;  %v1117_v35 = vmul.f32 0.1, %v1069_v42  ;;  %v1061_v46 = vadd.f32 %v11030_v51, %v1060_v43  ;;  %v9663_v32 = vld [vmem:[#allocation16 + $0x74] ss:$8 sps:$4 sm:$0xff]  }
 0x1e8   : > { %v9572_v48 = vld [vmem:[#allocation2 + $0x98] sm:$0xff]   ;;  %v9234_v49 = vpop.f32.mrf.mxu0  ;;  %v11113_v39 = vld [vmem:[#allocation11] ss:$0 sm:$0xff] }
 0x1e9   : > { %9026 = vst [vmem:[#allocation2 + $0xa8] sm:$0xff] %v8885_v44   ;;  %v8880_v50 = vpack.c.bf16 %v1156_v45, %v1155_v38  ;;  %v1115_v18 = vmul.f32 0.1, %v1061_v46  ;;  %v1072_v52 = vadd.f32 %v9234_v49, %v11030_v51  ;;  %v1161_v55 = vmax.f32 %v1069_v42, %v1117_v35  ;;  %v9580_v29 = vld [vmem:[#allocation2 + $0x98] sm:$0xff]  }
 0x1ea   : > { %v9571_v53 = vld [vmem:[#allocation2 + $0x90] sm:$0xff]   ;;  %v1063_v54 = vpop.f32.mrf.mxu0 }
 0x1eb   : > { %9025 = vst [vmem:[#allocation2 + $0xa0] sm:$0xff] %v8880_v50   ;;  %v1118_v57 = vmul.f32 0.1, %v1072_v52  ;;  %v1064_v58 = vadd.f32 %v11030_v51, %v1063_v54  ;;  %9279 = vmatprep.mubr.bf16.mxu0 %v9571_v53  ;;  %v1159_v59 = vmax.f32 %v1061_v46, %v1115_v18  ;;  %v9628_v51 = vld [vmem:[#allocation13 + $0xd0] ss:$8 sps:$4 sm:$0xff]   ;;  %v9577_v28 = vld [vmem:[#allocation2 + $0x90] sm:$0xff]  }
 0x1ec   : > { %2047 = vmatmul.mubr.bf16.gmra.mxu1 %v11083_v4  ;;  %9280 = vmatmul.mubr.bf16.gmra.mxu0 %v9572_v48  ;;  %v9630_v4 = vld [vmem:[#allocation13 + $0xd4] ss:$8 sps:$4 sm:$0xff]  }
 0x1ed   : > { %v1162_v60 = vmax.f32 %v1072_v52, %v1118_v57  ;;  %v1116_v61 = vmul.f32 0.1, %v1064_v58  ;;  %2054 = vmatprep.mubr.bf16.mxu1 %v9555_v47  ;;  %3364 = vmatprep.subr.bf16.mxu0 %v9630_v4 }
 0x1ee   : > { %3365 = vmatpush2.bf16.msra.mxu0 %v9628_v51 }
 0x1ef   : > { %v8895_v1 = vpack.c.bf16 %v1162_v60, %v1161_v55  ;;  %v1160_v2 = vmax.f32 %v1064_v58, %v1116_v61  ;;  %3366 = vmatprep.subr.bf16.mxu0 %v9633_v12  ;;  %v9697_v60 = vld [vmem:[#allocation16 + $0x174] ss:$8 sps:$4 sm:$0xff]  }
 0x1f0   : > { %v9579_v6 = vld [vmem:[#allocation2 + $0xa8] sm:$0xff]   ;;  %6775 = vmatprep.subr.bf16.mxu1 %v9697_v60 }
 0x1f1   : > { %9028 = vst [vmem:[#allocation2 + $0xb8] sm:$0xff] %v8895_v1   ;;  %v8890_v5 = vpack.c.bf16 %v1160_v2, %v1159_v59  ;;  %v9593_v31 = vld [vmem:[#allocation2 + $0xa8] sm:$0xff]  }
 0x1f2   : > { %v9578_v7 = vld [vmem:[#allocation2 + $0xa0] sm:$0xff]   ;;  %3367 = vmatpush2.bf16.msra.mxu0 %v9631_v11 }
 0x1f3   : > { %9027 = vst [vmem:[#allocation2 + $0xb0] sm:$0xff] %v8890_v5   ;;  %9283 = vmatprep.mubr.bf16.mxu0 %v9578_v7  ;;  %3368 = vmatprep.subr.bf16.mxu0 %v9636_v13  ;;  %v9584_v30 = vld [vmem:[#allocation2 + $0xa0] sm:$0xff]  }
 0x1f4   : > { %2055 = vmatmul.mubr.bf16.gmra.mxu1 %v11091_v27  ;;  %9284 = vmatmul.mubr.bf16.gmra.mxu0 %v9579_v6  ;;  %v9602_v27 = vld [vmem:[#allocation2 + $0xc8] sm:$0xff]  }
 0x1f5   : > { %2062 = vmatprep.mubr.bf16.mxu1 %v9559_v3 }
 0x1f6   : > { %3369 = vmatpush2.bf16.msra.mxu0 %v9634_v14 }
 0x1f7   : > { %3370 = vmatprep.subr.bf16.mxu0 %v9642_v19 }
 0x1f8   : > { %v9586_v9 = vld [vmem:[#allocation2 + $0xb8] sm:$0xff]  }
 0x1f9   : > { %v9609_v34 = vld [vmem:[#allocation2 + $0xb8] sm:$0xff]  }
 0x1fa   : > { %v9585_v10 = vld [vmem:[#allocation2 + $0xb0] sm:$0xff]   ;;  %3371 = vmatpush2.bf16.msra.mxu0 %v9640_v20 }
 0x1fb   : > { %9287 = vmatprep.mubr.bf16.mxu0 %v9585_v10  ;;  %3372 = vmatprep.subr.bf16.mxu0 %v9645_v21  ;;  %v9597_v33 = vld [vmem:[#allocation2 + $0xb0] sm:$0xff]  }
 0x1fc   : > { %2063 = vmatmul.mubr.bf16.gmra.mxu1 %v11099_v56  ;;  %9288 = vmatmul.mubr.bf16.gmra.mxu0 %v9586_v9  ;;  %v9646_v56 = vld [vmem:[#allocation13 + $0x80] ss:$8 sps:$4 sm:$0xff]  }
 0x1fd   : > { %2070 = vmatprep.mubr.bf16.mxu1 %v9562_v8  ;;  %9291 = vmatprep.mubr.bf16.mxu0 %v9598_v40 }
 0x1fe   : > { %3373 = vmatpush2.bf16.msra.mxu0 %v9643_v22 }
 0x1ff   : > { %3374 = vmatprep.subr.bf16.mxu0 %v9648_v24 }
 0x202   : > { %3375 = vmatpush2.bf16.msra.mxu0 %v9646_v56 }
 0x203   : > { %6722 = vmatprep.subr.bf16.mxu0 %v9663_v32 }
 0x204   : > { %2071 = vmatmul.mubr.bf16.gmra.mxu1 %v9555_v47  ;;  %9292 = vmatmul.mubr.bf16.gmra.mxu0 %v9602_v27 }
 0x205   : > { %2078 = vmatprep.mubr.bf16.mxu1 %v9563_v15 }
 0x20c   : > { %2079 = vmatmul.mubr.bf16.gmra.mxu1 %v9559_v3 }
 0x20d   : > { %2086 = vmatprep.mubr.bf16.mxu1 %v9569_v23 }
 0x214   : > { %2087 = vmatmul.mubr.bf16.gmra.mxu1 %v9562_v8 }
 0x215   : > { %2094 = vmatprep.mubr.bf16.mxu1 %v9570_v25 }
 0x21c   : > { %2095 = vmatmul.mubr.bf16.gmra.mxu1 %v9563_v15 }
 0x21d   : > { %2102 = vmatprep.mubr.bf16.mxu1 %v9573_v26 }
 0x224   : > { %2103 = vmatmul.mubr.bf16.gmra.mxu1 %v9569_v23 }
 0x225   : > { %2110 = vmatprep.mubr.bf16.mxu1 %v9577_v28 }
 0x22c   : > { %2111 = vmatmul.mubr.bf16.gmra.mxu1 %v9570_v25 }
 0x22d   : > { %2118 = vmatprep.mubr.bf16.mxu1 %v9580_v29 }
 0x234   : > { %2119 = vmatmul.mubr.bf16.gmra.mxu1 %v9573_v26 }
 0x235   : > { %2126 = vmatprep.mubr.bf16.mxu1 %v9584_v30 }
 0x23c   : > { %2127 = vmatmul.mubr.bf16.gmra.mxu1 %v9577_v28 }
 0x23d   : > { %2134 = vmatprep.mubr.bf16.mxu1 %v9593_v31 }
 0x244   : > { %2135 = vmatmul.mubr.bf16.gmra.mxu1 %v9580_v29  ;;  %v9650_v29 = vld [vmem:[#allocation3] sm:$0xff]  }
 0x245   : > { %2142 = vmatprep.mubr.bf16.mxu1 %v9597_v33 }
 0x24c   : > { %2143 = vmatmul.mubr.bf16.gmra.mxu1 %v9584_v30  ;;  %v9661_v30 = vld [vmem:[#allocation16 + $0x70] ss:$8 sps:$4 sm:$0xff]  }
 0x24d   : > { %2150 = vmatprep.mubr.bf16.mxu1 %v9609_v34 }
 0x254   : > { %2151 = vmatmul.mubr.bf16.gmra.mxu1 %v9593_v31  ;;  %v9670_v31 = vld [vmem:[#allocation16 + $0x64] ss:$8 sps:$4 sm:$0xff]  }
 0x255   : > { %3629 = vmatprep.mubr.bf16.mxu1 %v10674_v0 }
 0x26c   : > { %v1984_v36 = vpop.f32.mrf.mxu1 }
 0x26d   : > { %v1985_v44 = vadd.f32 %v11113_v39, %v1984_v36 }
 0x26e   : > { %v1986_v37 = vpop.f32.mrf.mxu1 }
 0x270   : > { %v1987_v38 = vpop.f32.mrf.mxu1 }
 0x271   : > { %v1988_v18 = vadd.f32 %v11113_v39, %v1987_v38 }
 0x272   : > { %v1989_v41 = vpop.f32.mrf.mxu1 }
 0x274   : > { %v1992_v42 = vpop.f32.mrf.mxu1  ;;  %v9253_v43 = vpop.f32.mrf.mxu0 }
 0x275   : > { %v1993_v45 = vadd.f32 %v11113_v39, %v1992_v42 }
 0x276   : > { %v1994_v35 = vpop.f32.mrf.mxu1  ;;  %v2193_v46 = vpop.f32.mrf.mxu0 }
 0x277   : > { %v2202_v47 = vadd.f32 %v9253_v43, %v1993_v45  ;;  %v2194_v48 = vadd.f32 %v2193_v46, %v1985_v44  ;;  %v9668_v45 = vld [vmem:[#allocation16 + $0x60] ss:$8 sps:$4 sm:$0xff]  }
 0x278   : > { %v1995_v49 = vpop.f32.mrf.mxu1  ;;  %v9254_v50 = vpop.f32.mrf.mxu0 }
 0x279   : > { %v1996_v52 = vadd.f32 %v11113_v39, %v1995_v49  ;;  %v2370_v53 = vmul.f32 0.1, %v2202_v47  ;;  %v2368_v57 = vmul.f32 0.1, %v2194_v48 }
 0x27a   : > { %v1997_v54 = vpop.f32.mrf.mxu1  ;;  %v2196_v55 = vpop.f32.mrf.mxu0 }
 0x27b   : > { %v2205_v58 = vadd.f32 %v9254_v50, %v1996_v52  ;;  %v2197_v59 = vadd.f32 %v2196_v55, %v1988_v18  ;;  %v2414_v3 = vmax.f32 %v2202_v47, %v2370_v53  ;;  %v2412_v7 = vmax.f32 %v2194_v48, %v2368_v57  ;;  %v9675_v48 = vld [vmem:[#allocation16 + $0x54] ss:$8 sps:$4 sm:$0xff]   ;;  %v9653_v18 = vld [vmem:[#allocation3 + $0x8] sm:$0xff]   ;;  %v9673_v54 = vld [vmem:[#allocation16 + $0x50] ss:$8 sps:$4 sm:$0xff]  }
 0x27c   : > { %v2000_v61 = vpop.f32.mrf.mxu1  ;;  %v9257_v62 = vpop.f32.mrf.mxu0  ;;  %v9681_v55 = vld [vmem:[#allocation16 + $0x44] ss:$8 sps:$4 sm:$0xff]   ;;  %v9695_v57 = vld [vmem:[#allocation16 + $0x170] ss:$8 sps:$4 sm:$0xff]  }
 0x27d   : > { %v2371_v63 = vmul.f32 0.1, %v2205_v58  ;;  %v2369_v1 = vmul.f32 0.1, %v2197_v59  ;;  %v2001_v2 = vadd.f32 %v11113_v39, %v2000_v61 }
 0x27e   : > { %v2002_v5 = vpop.f32.mrf.mxu1  ;;  %v2209_v6 = vpop.f32.mrf.mxu0 }
 0x27f   : > { %v2415_v51 = vmax.f32 %v2205_v58, %v2371_v63  ;;  %v2413_v4 = vmax.f32 %v2197_v59, %v2369_v1  ;;  %v2210_v8 = vadd.f32 %v2209_v6, %v2001_v2  ;;  %v9706_v2 = vld [vmem:[#allocation16 + $0x164] ss:$8 sps:$4 sm:$0xff]  }
 0x280   : > { %v2003_v40 = vpop.f32.mrf.mxu1  ;;  %v9258_v9 = vpop.f32.mrf.mxu0 }
 0x281   : > { %v8905_v10 = vpack.c.bf16 %v2415_v51, %v2414_v3  ;;  %v8900_v11 = vpack.c.bf16 %v2413_v4, %v2412_v7  ;;  %v2004_v12 = vadd.f32 %v11113_v39, %v2003_v40  ;;  %v2372_v14 = vmul.f32 0.1, %v2210_v8  ;;  %v9679_v7 = vld [vmem:[#allocation16 + $0x40] ss:$8 sps:$4 sm:$0xff]   ;;  %v9687_v40 = vld [vmem:[#allocation16 + $0x34] ss:$8 sps:$4 sm:$0xff]  }
 0x282   : > { %v2005_v13 = vpop.f32.mrf.mxu1  ;;  %v2212_v27 = vpop.f32.mrf.mxu0 }
 0x283   : > { %9030 = vst [vmem:[#allocation3 + $0x18] sm:$0xff] %v8905_v10   ;;  %9029 = vst [vmem:[#allocation3 + $0x10] sm:$0xff] %v8900_v11   ;;  %v2213_v15 = vadd.f32 %v2212_v27, %v2004_v12  ;;  %v2416_v22 = vmax.f32 %v2210_v8, %v2372_v14  ;;  %v9715_v12 = vld [vmem:[#allocation16 + $0x154] ss:$8 sps:$4 sm:$0xff]   ;;  %v9685_v14 = vld [vmem:[#allocation16 + $0x30] ss:$8 sps:$4 sm:$0xff]  }
 0x284   : > { %v2008_v16 = vpop.f32.mrf.mxu1  ;;  %v11121_v17 = vpop.f32.mrf.mxu0 }
 0x285   : > { %v2373_v19 = vmul.f32 0.1, %v2213_v15  ;;  %v2009_v20 = vadd.f32 %v11113_v39, %v2008_v16  ;;  %v9713_v16 = vld [vmem:[#allocation16 + $0x150] ss:$8 sps:$4 sm:$0xff]  }
 0x286   : > { %v2010_v21 = vpop.f32.mrf.mxu1  ;;  %v2225_v25 = vpop.f32.mrf.mxu0 }
 0x287   : > { %v2417_v23 = vmax.f32 %v2213_v15, %v2373_v19  ;;  %v2218_v24 = vadd.f32 %v9257_v62, %v2009_v20  ;;  %v9692_v15 = vld [vmem:[#allocation16 + $0x24] ss:$8 sps:$4 sm:$0xff]  }
 0x288   : > { %v2011_v56 = vpop.f32.mrf.mxu1  ;;  %v9262_v41 = vpop.f32.mrf.mxu0 }
 0x289   : > { %v8910_v26 = vpack.c.bf16 %v2417_v23, %v2416_v22  ;;  %v2012_v28 = vadd.f32 %v11113_v39, %v2011_v56  ;;  %v2374_v34 = vmul.f32 0.1, %v2218_v24  ;;  %v9723_v56 = vld [vmem:[#allocation16 + $0x144] ss:$8 sps:$4 sm:$0xff]  }
 0x28a   : > { %v2013_v32 = vpop.f32.mrf.mxu1  ;;  %v11125_v33 = vld [vmem:[#allocation3 + $0x10] sm:$0xff]   ;;  %v11128_v38 = vld [vmem:[#allocation3 + $0x18] sm:$0xff]   ;;  %v2228_v50 = vpop.f32.mrf.mxu0 }
 0x28b   : > { %9031 = vst [vmem:[#allocation3 + $0x20] sm:$0xff] %v8910_v26   ;;  %v2221_v36 = vadd.f32 %v9258_v9, %v2012_v28  ;;  %3376 = vmatprep.mubr.bf16.mxu0 %v11125_v33  ;;  %v2418_v35 = vmax.f32 %v2218_v24, %v2374_v34  ;;  %v9704_v9 = vld [vmem:[#allocation16 + $0x160] ss:$8 sps:$4 sm:$0xff]   ;;  %v9701_v34 = vld [vmem:[#allocation16 + $0x14] ss:$8 sps:$4 sm:$0xff]  }
 0x28c   : > { %v2016_v37 = vpop.f32.mrf.mxu1  ;;  %3377 = vmatmul.mubr.bf16.vlgmr.msra.gmra.mxu0 %v9650_v29  ;;  %v11135_v1 = vpop.f32.mrf.mxu0  ;;  %v9690_v29 = vld [vmem:[#allocation16 + $0x20] ss:$8 sps:$4 sm:$0xff]  }
 0x28d   : > { %v2375_v42 = vmul.f32 0.1, %v2221_v36  ;;  %v2017_v43 = vadd.f32 %v11113_v39, %v2016_v37  ;;  %3386 = vmatprep.mubr.bf16.mxu0 %v11128_v38  ;;  %6723 = vmatpush1.bf16.msra.mxu0 %v9661_v30 }
 0x28e   : > { %v2018_v44 = vpop.f32.mrf.mxu1  ;;  %6724 = vmatprep.subr.bf16.mxu0 %v9670_v31  ;;  %v2241_v11 = vpop.f32.mrf.mxu0 }
 0x28f   : > { %v2419_v46 = vmax.f32 %v2221_v36, %v2375_v42  ;;  %v2226_v47 = vadd.f32 %v2225_v25, %v2017_v43  ;;  %v9721_v36 = vld [vmem:[#allocation16 + $0x140] ss:$8 sps:$4 sm:$0xff]   ;;  %v9699_v43 = vld [vmem:[#allocation16 + $0x10] ss:$8 sps:$4 sm:$0xff]   ;;  %v9710_v44 = vld [vmem:[#allocation16 + $0x4] ss:$8 sps:$4 sm:$0xff]  }
 0x290   : > { %v2019_v49 = vpop.f32.mrf.mxu1  ;;  %v11144_v24 = vpop.f32.mrf.mxu0 }
 0x291   : > { %v8915_v52 = vpack.c.bf16 %v2419_v46, %v2418_v35  ;;  %v2020_v53 = vadd.f32 %v11113_v39, %v2019_v49  ;;  %6725 = vmatpush1.bf16.msra.mxu0 %v9668_v45  ;;  %v2376_v60 = vmul.f32 0.1, %v2226_v47 }
 0x292   : > { %v2021_v58 = vpop.f32.mrf.mxu1  ;;  %v9652_v59 = vld [vmem:[#allocation3 + $0x20] sm:$0xff]   ;;  %6726 = vmatprep.subr.bf16.mxu0 %v9675_v48 }
 0x293   : > { %9032 = vst [vmem:[#allocation3 + $0x28] sm:$0xff] %v8915_v52   ;;  %v2229_v61 = vadd.f32 %v2228_v50, %v2020_v53  ;;  %3630 = vmatmul.mubr.bf16.vlgmr.msra.gmra.mxu1 %v9652_v59  ;;  %v11133_v63 = vld [vmem:[#allocation3 + $0x20] sm:$0xff]   ;;  %v2420_v51 = vmax.f32 %v2226_v47, %v2376_v60 }
 0x294   : > { %v2024_v62 = vpop.f32.mrf.mxu1  ;;  %3387 = vmatmul.mubr.bf16.gmra.mxu0 %v9653_v18  ;;  %3639 = vmatprep.mubr.bf16.mxu1 %v10674_v0  ;;  %v9730_v18 = vld [vmem:[#allocation16 + $0x130] ss:$8 sps:$4 sm:$0xff]   ;;  %v9732_v52 = vld [vmem:[#allocation16 + $0x134] ss:$8 sps:$4 sm:$0xff]   ;;  %v9741_v58 = vld [vmem:[#allocation16 + $0x124] ss:$8 sps:$4 sm:$0xff]  }
 0x295   : > { %v2377_v3 = vmul.f32 0.1, %v2229_v61  ;;  %v2025_v5 = vadd.f32 %v11113_v39, %v2024_v62  ;;  %3396 = vmatprep.mubr.bf16.mxu0 %v11133_v63  ;;  %6727 = vmatpush1.bf16.msra.mxu0 %v9673_v54  ;;  %v9718_v62 = vld [vmem:[#allocation16 + $0xf4] ss:$8 sps:$4 sm:$0xff]  }
 0x296   : > { %v2026_v6 = vpop.f32.mrf.mxu1  ;;  %6728 = vmatprep.subr.bf16.mxu0 %v9681_v55  ;;  %6776 = vmatpush1.bf16.msra.mxu1 %v9695_v57  ;;  %v9708_v57 = vld [vmem:[#allocation16] ss:$8 sps:$4 sm:$0xff]  }
 0x297   : > { %v2421_v4 = vmax.f32 %v2229_v61, %v2377_v3  ;;  %v2234_v8 = vadd.f32 %v11121_v17, %v2025_v5  ;;  %6777 = vmatprep.subr.bf16.mxu1 %v9706_v2  ;;  %v9716_v6 = vld [vmem:[#allocation16 + $0xf0] ss:$8 sps:$4 sm:$0xff]  }
 0x298   : > { %v2027_v10 = vpop.f32.mrf.mxu1 }
 0x299   : > { %v8920_v13 = vpack.c.bf16 %v2421_v4, %v2420_v51  ;;  %v2028_v27 = vadd.f32 %v11113_v39, %v2027_v10  ;;  %6729 = vmatpush1.bf16.msra.mxu0 %v9679_v7  ;;  %v2378_v21 = vmul.f32 0.1, %v2234_v8  ;;  %v9728_v7 = vld [vmem:[#allocation16 + $0xe4] ss:$8 sps:$4 sm:$0xff]   ;;  %v9739_v51 = vld [vmem:[#allocation16 + $0x120] ss:$8 sps:$4 sm:$0xff]  }
 0x29a   : > { %v2029_v19 = vpop.f32.mrf.mxu1  ;;  %v9655_v20 = vld [vmem:[#allocation3 + $0x28] sm:$0xff]   ;;  %6730 = vmatprep.subr.bf16.mxu0 %v9687_v40  ;;  %6778 = vmatpush1.bf16.msra.mxu1 %v9704_v9 }
 0x29b   : > { %9033 = vst [vmem:[#allocation3 + $0x30] sm:$0xff] %v8920_v13   ;;  %v2237_v17 = vadd.f32 %v9262_v41, %v2028_v27  ;;  %3640 = vmatmul.mubr.bf16.gmra.mxu1 %v9655_v20  ;;  %v11142_v23 = vld [vmem:[#allocation3 + $0x28] sm:$0xff]   ;;  %6779 = vmatprep.subr.bf16.mxu1 %v9715_v12  ;;  %v2422_v30 = vmax.f32 %v2234_v8, %v2378_v21  ;;  %v2244_v41 = vpop.f32.mrf.mxu0  ;;  %v9736_v21 = vld [vmem:[#allocation16 + $0xd4] ss:$8 sps:$4 sm:$0xff]  }
 0x29c   : > { %v2032_v22 = vpop.f32.mrf.mxu1  ;;  %3397 = vmatmul.mubr.bf16.gmra.mxu0 %v11125_v33  ;;  %3649 = vmatprep.mubr.bf16.mxu1 %v10674_v0 }
 0x29d   : > { %v2379_v25 = vmul.f32 0.1, %v2237_v17  ;;  %v2033_v26 = vadd.f32 %v11113_v39, %v2032_v22  ;;  %3406 = vmatprep.mubr.bf16.mxu0 %v11142_v23  ;;  %6731 = vmatpush1.bf16.msra.mxu0 %v9685_v14  ;;  %v11153_v50 = vpop.f32.mrf.mxu0  ;;  %v9726_v14 = vld [vmem:[#allocation16 + $0xe0] ss:$8 sps:$4 sm:$0xff]  }
 0x29e   : > { %v2034_v28 = vpop.f32.mrf.mxu1  ;;  %6732 = vmatprep.subr.bf16.mxu0 %v9692_v15  ;;  %6780 = vmatpush1.bf16.msra.mxu1 %v9713_v16  ;;  %v9749_v15 = vld [vmem:[#allocation16 + $0x114] ss:$8 sps:$4 sm:$0xff]  }
 0x29f   : > { %v2423_v31 = vmax.f32 %v2237_v17, %v2379_v25  ;;  %v2242_v32 = vadd.f32 %v2241_v11, %v2033_v26  ;;  %6781 = vmatprep.subr.bf16.mxu1 %v9723_v56  ;;  %v2257_v3 = vpop.f32.mrf.mxu0  ;;  %v9747_v17 = vld [vmem:[#allocation16 + $0x110] ss:$8 sps:$4 sm:$0xff]   ;;  %v9745_v26 = vld [vmem:[#allocation16 + $0xc4] ss:$8 sps:$4 sm:$0xff]  }
 0x2a0   : > { %v2035_v37 = vpop.f32.mrf.mxu1  ;;  %v9734_v25 = vld [vmem:[#allocation16 + $0xd0] ss:$8 sps:$4 sm:$0xff]  }
 0x2a1   : > { %v8925_v42 = vpack.c.bf16 %v2423_v31, %v2422_v30  ;;  %v2036_v33 = vadd.f32 %v11113_v39, %v2035_v37  ;;  %6733 = vmatpush1.bf16.msra.mxu0 %v9690_v29  ;;  %v2380_v46 = vmul.f32 0.1, %v2242_v32  ;;  %v9270_v11 = vpop.f32.mrf.mxu0 }
 0x2a2   : > { %v2037_v45 = vpop.f32.mrf.mxu1  ;;  %v9657_v35 = vld [vmem:[#allocation3 + $0x30] sm:$0xff]   ;;  %6734 = vmatprep.subr.bf16.mxu0 %v9701_v34  ;;  %6782 = vmatpush1.bf16.msra.mxu1 %v9721_v36 }
 0x2a3   : > { %9034 = vst [vmem:[#allocation3 + $0x38] sm:$0xff] %v8925_v42   ;;  %v2245_v47 = vadd.f32 %v2244_v41, %v2036_v33  ;;  %3650 = vmatmul.mubr.bf16.gmra.mxu1 %v9657_v35  ;;  %v11151_v49 = vld [vmem:[#allocation3 + $0x30] sm:$0xff]   ;;  %v2424_v59 = vmax.f32 %v2242_v32, %v2380_v46  ;;  %6783 = vmatprep.subr.bf16.mxu1 %v9732_v52  ;;  %v9743_v33 = vld [vmem:[#allocation16 + $0xc0] ss:$8 sps:$4 sm:$0xff]  }
 0x2a4   : > { %v2040_v48 = vpop.f32.mrf.mxu1  ;;  %3407 = vmatmul.mubr.bf16.gmra.mxu0 %v11128_v38  ;;  %3659 = vmatprep.mubr.bf16.mxu1 %v10674_v0  ;;  %v9753_v35 = vld [vmem:[#allocation16 + $0xb4] ss:$8 sps:$4 sm:$0xff]   ;;  %v9751_v52 = vld [vmem:[#allocation16 + $0xb0] ss:$8 sps:$4 sm:$0xff]  }
 0x2a5   : > { %v2381_v53 = vmul.f32 0.1, %v2245_v47  ;;  %v2041_v54 = vadd.f32 %v11113_v39, %v2040_v48  ;;  %3416 = vmatprep.mubr.bf16.mxu0 %v11151_v49  ;;  %6735 = vmatpush1.bf16.msra.mxu0 %v9699_v43 }
 0x2a6   : > { %v2042_v55 = vpop.f32.mrf.mxu1  ;;  %6736 = vmatprep.subr.bf16.mxu0 %v9710_v44  ;;  %6784 = vmatpush1.bf16.msra.mxu1 %v9730_v18 }
 0x2a7   : > { %v2425_v60 = vmax.f32 %v2245_v47, %v2381_v53  ;;  %v2250_v61 = vadd.f32 %v11135_v1, %v2041_v54  ;;  %6785 = vmatprep.subr.bf16.mxu1 %v9741_v58 }
 0x2a8   : > { %v2043_v2 = vpop.f32.mrf.mxu1 }
 0x2a9   : > { %v8930_v5 = vpack.c.bf16 %v2425_v60, %v2424_v59  ;;  %v2044_v38 = vadd.f32 %v11113_v39, %v2043_v2  ;;  %6737 = vmatpush1.bf16.msra.mxu0 %v9708_v57  ;;  %v2382_v40 = vmul.f32 0.1, %v2250_v61  ;;  %v9755_v59 = vld [vmem:[#allocation16 + $0x100] ss:$8 sps:$4 sm:$0xff]   ;;  %v9757_v60 = vld [vmem:[#allocation16 + $0x104] ss:$8 sps:$4 sm:$0xff]  }
 0x2aa   : > { %v2045_v4 = vpop.f32.mrf.mxu1  ;;  %v9659_v8 = vld [vmem:[#allocation3 + $0x38] sm:$0xff]   ;;  %6738 = vmatprep.subr.bf16.mxu0 %v9718_v62  ;;  %6786 = vmatpush1.bf16.msra.mxu1 %v9739_v51  ;;  %v9760_v2 = vld [vmem:[#allocation16 + $0xa4] ss:$8 sps:$4 sm:$0xff]  }
 0x2ab   : > { %9035 = vst [vmem:[#allocation3 + $0x40] sm:$0xff] %v8930_v5   ;;  %v2253_v1 = vadd.f32 %v11144_v24, %v2044_v38  ;;  %3660 = vmatmul.mubr.bf16.gmra.mxu1 %v9659_v8  ;;  %v11162_v10 = vld [vmem:[#allocation3 + $0x38] sm:$0xff]   ;;  %v2426_v16 = vmax.f32 %v2250_v61, %v2382_v40  ;;  %v2260_v24 = vpop.f32.mrf.mxu0  ;;  %6787 = vmatprep.subr.bf16.mxu1 %v9749_v15  ;;  %v9758_v5 = vld [vmem:[#allocation16 + $0xa0] ss:$8 sps:$4 sm:$0xff]  }
 0x2ac   : > { %v2048_v9 = vpop.f32.mrf.mxu1  ;;  %3417 = vmatmul.mubr.bf16.gmra.mxu0 %v11133_v63  ;;  %3669 = vmatprep.mubr.bf16.mxu1 %v10674_v0  ;;  %v9763_v38 = vld [vmem:[#allocation16 + $0x1f4] ss:$8 sps:$4 sm:$0xff]  }
 0x2ad   : > { %v2383_v12 = vmul.f32 0.1, %v2253_v1  ;;  %v2049_v13 = vadd.f32 %v11113_v39, %v2048_v9  ;;  %3426 = vmatprep.mubr.bf16.mxu0 %v11162_v10  ;;  %6739 = vmatpush2.bf16.msra.mxu0 %v9716_v6  ;;  %v11171_v36 = vpop.f32.mrf.mxu0 }
 0x2ae   : > { %v2050_v27 = vpop.f32.mrf.mxu1  ;;  %6740 = vmatprep.subr.bf16.mxu0 %v9728_v7  ;;  %6788 = vmatpush1.bf16.msra.mxu1 %v9747_v17 }
 0x2af   : > { %v2427_v19 = vmax.f32 %v2253_v1, %v2383_v12  ;;  %v2258_v20 = vadd.f32 %v2257_v3, %v2049_v13  ;;  %v2273_v47 = vpop.f32.mrf.mxu0  ;;  %6789 = vmatprep.subr.bf16.mxu1 %v9757_v60  ;;  %v9761_v1 = vld [vmem:[#allocation16 + $0x1f0] ss:$8 sps:$4 sm:$0xff]  }
 0x2b0   : > { %v2051_v22 = vpop.f32.mrf.mxu1 }
 0x2b1   : > { %v8935_v56 = vpack.c.bf16 %v2427_v19, %v2426_v16  ;;  %v2052_v63 = vadd.f32 %v11113_v39, %v2051_v22  ;;  %6741 = vmatpush2.bf16.msra.mxu0 %v9726_v14  ;;  %v2384_v30 = vmul.f32 0.1, %v2258_v20 }
 0x2b2   : > { %v2053_v28 = vpop.f32.mrf.mxu1  ;;  %v9664_v29 = vld [vmem:[#allocation3 + $0x40] sm:$0xff]   ;;  %6742 = vmatprep.subr.bf16.mxu0 %v9736_v21  ;;  %6790 = vmatpush1.bf16.msra.mxu1 %v9755_v59 }
 0x2b3   : > { %9036 = vst [vmem:[#allocation3 + $0x48] sm:$0xff] %v8935_v56   ;;  %v2261_v31 = vadd.f32 %v2260_v24, %v2052_v63  ;;  %3670 = vmatmul.mubr.bf16.gmra.mxu1 %v9664_v29  ;;  %v11169_v34 = vld [vmem:[#allocation3 + $0x40] sm:$0xff]   ;;  %v2428_v43 = vmax.f32 %v2258_v20, %v2384_v30  ;;  %6791 = vmatprep.subr.bf16.mxu1 %v9763_v38 }
 0x2b4   : > { %v2056_v32 = vpop.f32.mrf.mxu1  ;;  %3427 = vmatmul.mubr.bf16.gmra.mxu0 %v11142_v23  ;;  %3679 = vmatprep.mubr.bf16.mxu1 %v10674_v0 }
 0x2b5   : > { %v2385_v37 = vmul.f32 0.1, %v2261_v31  ;;  %v2057_v41 = vadd.f32 %v11113_v39, %v2056_v32  ;;  %3436 = vmatprep.mubr.bf16.mxu0 %v11169_v34  ;;  %6743 = vmatpush2.bf16.msra.mxu0 %v9734_v25 }
 0x2b6   : > { %v2058_v42 = vpop.f32.mrf.mxu1  ;;  %6744 = vmatprep.subr.bf16.mxu0 %v9745_v26  ;;  %6792 = vmatpush2.bf16.msra.mxu1 %v9761_v1 }
 0x2b7   : > { %v2429_v44 = vmax.f32 %v2261_v31, %v2385_v37  ;;  %v2266_v45 = vadd.f32 %v11153_v50, %v2057_v41  ;;  %v9274_v50 = vpop.f32.mrf.mxu0  ;;  %v9764_v42 = vld [vmem:[#allocation16 + $0x90] ss:$8 sps:$4 sm:$0xff]  }
 0x2b8   : > { %v2059_v46 = vpop.f32.mrf.mxu1 }
 0x2b9   : > { %v8940_v48 = vpack.c.bf16 %v2429_v44, %v2428_v43  ;;  %v2060_v18 = vadd.f32 %v11113_v39, %v2059_v46  ;;  %6745 = vmatpush2.bf16.msra.mxu0 %v9743_v33  ;;  %v2386_v54 = vmul.f32 0.1, %v2266_v45  ;;  %v2276_v8 = vpop.f32.mrf.mxu0  ;;  %v9766_v33 = vld [vmem:[#allocation16 + $0x94] ss:$8 sps:$4 sm:$0xff]  }
 0x2ba   : > { %v2061_v23 = vpop.f32.mrf.mxu1  ;;  %v9666_v53 = vld [vmem:[#allocation3 + $0x48] sm:$0xff]   ;;  %6746 = vmatprep.subr.bf16.mxu0 %v9753_v35 }
 0x2bb   : > { %9037 = vst [vmem:[#allocation3 + $0x50] sm:$0xff] %v8940_v48   ;;  %v2269_v55 = vadd.f32 %v9270_v11, %v2060_v18  ;;  %3680 = vmatmul.mubr.bf16.gmra.mxu1 %v9666_v53  ;;  %v11179_v58 = vld [vmem:[#allocation3 + $0x48] sm:$0xff]   ;;  %v2430_v6 = vmax.f32 %v2266_v45, %v2386_v54  ;;  %v9277_v15 = vpop.f32.mrf.mxu0 }
 0x2bc   : > { %v2064_v57 = vpop.f32.mrf.mxu1  ;;  %3437 = vmatmul.mubr.bf16.gmra.mxu0 %v11151_v49  ;;  %3689 = vmatprep.mubr.bf16.mxu1 %v10674_v0 }
 0x2bd   : > { %v2387_v61 = vmul.f32 0.1, %v2269_v55  ;;  %v2065_v62 = vadd.f32 %v11113_v39, %v2064_v57  ;;  %3446 = vmatprep.mubr.bf16.mxu0 %v11179_v58  ;;  %6747 = vmatpush2.bf16.msra.mxu0 %v9751_v52  ;;  %v2289_v56 = vpop.f32.mrf.mxu0 }
 0x2be   : > { %v2066_v3 = vpop.f32.mrf.mxu1  ;;  %6748 = vmatprep.subr.bf16.mxu0 %v9760_v2 }
 0x2bf   : > { %v2431_v7 = vmax.f32 %v2269_v55, %v2387_v61  ;;  %v2274_v51 = vadd.f32 %v2273_v47, %v2065_v62  ;;  %v9278_v32 = vpop.f32.mrf.mxu0 }
 0x2c0   : > { %v2067_v4 = vpop.f32.mrf.mxu1 }
 0x2c1   : > { %v8945_v40 = vpack.c.bf16 %v2431_v7, %v2430_v6  ;;  %v2068_v49 = vadd.f32 %v11113_v39, %v2067_v4  ;;  %6749 = vmatpush2.bf16.msra.mxu0 %v9758_v5  ;;  %v2388_v12 = vmul.f32 0.1, %v2274_v51  ;;  %v2292_v46 = vpop.f32.mrf.mxu0  ;;  %v9767_v6 = vld [vmem:[#allocation16 + $0x1e0] ss:$8 sps:$4 sm:$0xff]   ;;  %v9769_v7 = vld [vmem:[#allocation16 + $0x1e4] ss:$8 sps:$4 sm:$0xff]  }
 0x2c2   : > { %v2069_v9 = vpop.f32.mrf.mxu1  ;;  %v9671_v11 = vld [vmem:[#allocation3 + $0x50] sm:$0xff]   ;;  %6750 = vmatprep.subr.bf16.mxu0 %v9766_v33  ;;  %6793 = vmatprep.subr.bf16.mxu1 %v9769_v7 }
 0x2c3   : > { %9038 = vst [vmem:[#allocation3 + $0x58] sm:$0xff] %v8945_v40   ;;  %v2277_v13 = vadd.f32 %v2276_v8, %v2068_v49  ;;  %3690 = vmatmul.mubr.bf16.gmra.mxu1 %v9671_v11  ;;  %v11186_v14 = vld [vmem:[#allocation3 + $0x50] sm:$0xff]   ;;  %v2432_v21 = vmax.f32 %v2274_v51, %v2388_v12  ;;  %v11203_v55 = vpop.f32.mrf.mxu0 }
 0x2c4   : > { %v2072_v27 = vpop.f32.mrf.mxu1  ;;  %3447 = vmatmul.mubr.bf16.gmra.mxu0 %v11162_v10  ;;  %3699 = vmatprep.mubr.bf16.mxu1 %v10674_v0  ;;  %v9775_v12 = vld [vmem:[#allocation16 + $0x1d4] ss:$8 sps:$4 sm:$0xff]  }
 0x2c5   : > { %v2389_v16 = vmul.f32 0.1, %v2277_v13  ;;  %v2073_v19 = vadd.f32 %v11113_v39, %v2072_v27  ;;  %3456 = vmatprep.mubr.bf16.mxu0 %v11186_v14  ;;  %6751 = vmatpush2.bf16.msra.mxu0 %v9764_v42  ;;  %v2305_v3 = vpop.f32.mrf.mxu0  ;;  %v9773_v27 = vld [vmem:[#allocation16 + $0x1d0] ss:$8 sps:$4 sm:$0xff]   ;;  %v9781_v42 = vld [vmem:[#allocation16 + $0x1b4] ss:$8 sps:$4 sm:$0xff]  }
 0x2c6   : > { %v2074_v20 = vpop.f32.mrf.mxu1  ;;  %6794 = vmatpush2.bf16.msra.mxu1 %v9767_v6  ;;  %v9784_v33 = vld [vmem:[#allocation16 + $0x274] ss:$8 sps:$4 sm:$0xff]  }
 0x2c7   : > { %v2433_v17 = vmax.f32 %v2277_v13, %v2389_v16  ;;  %v2282_v22 = vadd.f32 %v11171_v36, %v2073_v19  ;;  %v9282_v1 = vpop.f32.mrf.mxu0  ;;  %v9770_v20 = vld [vmem:[#allocation16 + $0x80] ss:$8 sps:$4 sm:$0xff]   ;;  %6795 = vmatprep.subr.bf16.mxu1 %v9775_v12 }
 0x2c8   : > { %v2075_v24 = vpop.f32.mrf.mxu1 }
 0x2c9   : > { %v8950_v63 = vpack.c.bf16 %v2433_v17, %v2432_v21  ;;  %v2076_v25 = vadd.f32 %v11113_v39, %v2075_v24  ;;  %v2390_v29 = vmul.f32 0.1, %v2282_v22  ;;  %v9772_v21 = vld [vmem:[#allocation16 + $0x84] ss:$8 sps:$4 sm:$0xff]  }
 0x2ca   : > { %v2077_v26 = vpop.f32.mrf.mxu1  ;;  %v9676_v28 = vld [vmem:[#allocation3 + $0x58] sm:$0xff]   ;;  %6752 = vmatprep.subr.bf16.mxu0 %v9772_v21  ;;  %6796 = vmatpush2.bf16.msra.mxu1 %v9773_v27  ;;  %v9797_v27 = vld [vmem:[#allocation16 + $0x180] ss:$8 sps:$4 sm:$0xff]  }
 0x2cb   : > { %9039 = vst [vmem:[#allocation3 + $0x60] sm:$0xff] %v8950_v63   ;;  %v2285_v10 = vadd.f32 %v9274_v50, %v2076_v25  ;;  %3700 = vmatmul.mubr.bf16.gmra.mxu1 %v9676_v28  ;;  %v11194_v31 = vld [vmem:[#allocation3 + $0x58] sm:$0xff]   ;;  %v2434_v43 = vmax.f32 %v2282_v22, %v2390_v29  ;;  %v2308_v22 = vpop.f32.mrf.mxu0  ;;  %v9778_v63 = vld [vmem:[#allocation16 + $0x1c4] ss:$8 sps:$4 sm:$0xff]   ;;  %6753 = vmatpush2.bf16.msra.mxu0 %v9770_v20 }
 0x2cc   : > { %v2080_v30 = vpop.f32.mrf.mxu1  ;;  %3457 = vmatmul.mubr.bf16.gmra.mxu0 %v11169_v34  ;;  %3709 = vmatprep.mubr.bf16.mxu1 %v10674_v0  ;;  %v9808_v20 = vld [vmem:[#allocation16 + $0x374] ss:$8 sps:$4 sm:$0xff]  }
 0x2cd   : > { %v2391_v37 = vmul.f32 0.1, %v2285_v10  ;;  %v2081_v41 = vadd.f32 %v11113_v39, %v2080_v30  ;;  %3466 = vmatprep.mubr.bf16.mxu0 %v11194_v31  ;;  %6797 = vmatprep.subr.bf16.mxu1 %v9778_v63  ;;  %v11219_v30 = vpop.f32.mrf.mxu0 }
 0x2ce   : > { %v2082_v36 = vpop.f32.mrf.mxu1  ;;  %6828 = vmatprep.subr.bf16.mxu0 %v9784_v33 }
 0x2cf   : > { %v2435_v44 = vmax.f32 %v2285_v10, %v2391_v37  ;;  %v2290_v45 = vadd.f32 %v2289_v56, %v2081_v41 }
 0x2d0   : > { %v2083_v35 = vpop.f32.mrf.mxu1 }
 0x2d1   : > { %v8955_v47 = vpack.c.bf16 %v2435_v44, %v2434_v43  ;;  %v2392_v48 = vmul.f32 0.1, %v2290_v45  ;;  %v2084_v18 = vadd.f32 %v11113_v39, %v2083_v35  ;;  %v9779_v44 = vld [vmem:[#allocation16 + $0x1b0] ss:$8 sps:$4 sm:$0xff]  }
 0x2d2   : > { %v2085_v52 = vpop.f32.mrf.mxu1  ;;  %v9678_v34 = vld [vmem:[#allocation3 + $0x60] sm:$0xff]  }
 0x2d3   : > { %9040 = vst [vmem:[#allocation3 + $0x68] sm:$0xff] %v8955_v47   ;;  %v2293_v23 = vadd.f32 %v2292_v46, %v2084_v18  ;;  %3710 = vmatmul.mubr.bf16.gmra.mxu1 %v9678_v34  ;;  %v11201_v54 = vld [vmem:[#allocation3 + $0x60] sm:$0xff]   ;;  %v2436_v57 = vmax.f32 %v2290_v45, %v2392_v48  ;;  %v2321_v47 = vpop.f32.mrf.mxu0 }
 0x2d4   : > { %v2088_v53 = vpop.f32.mrf.mxu1  ;;  %3467 = vmatmul.mubr.bf16.gmra.mxu0 %v11179_v58  ;;  %3719 = vmatprep.mubr.bf16.mxu1 %v10674_v0 }
 0x2d5   : > { %v2393_v50 = vmul.f32 0.1, %v2293_v23  ;;  %v2089_v59 = vadd.f32 %v11113_v39, %v2088_v53  ;;  %3476 = vmatprep.mubr.bf16.mxu0 %v11201_v54 }
 0x2d6   : > { %v2090_v60 = vpop.f32.mrf.mxu1 }
 0x2d7   : > { %v2437_v61 = vmax.f32 %v2293_v23, %v2393_v50  ;;  %v2298_v62 = vadd.f32 %v9277_v15, %v2089_v59  ;;  %v9785_v59 = vld [vmem:[#allocation16 + $0x1a0] ss:$8 sps:$4 sm:$0xff]  }
 0x2d8   : > { %v2091_v2 = vpop.f32.mrf.mxu1 }
 0x2d9   : > { %v8960_v5 = vpack.c.bf16 %v2437_v61, %v2436_v57  ;;  %v2092_v38 = vadd.f32 %v11113_v39, %v2091_v2  ;;  %v2394_v8 = vmul.f32 0.1, %v2298_v62 }
 0x2da   : > { %v2093_v51 = vpop.f32.mrf.mxu1  ;;  %v9683_v4 = vld [vmem:[#allocation3 + $0x68] sm:$0xff]  }
 0x2db   : > { %9041 = vst [vmem:[#allocation3 + $0x70] sm:$0xff] %v8960_v5   ;;  %v2301_v40 = vadd.f32 %v9278_v32, %v2092_v38  ;;  %3720 = vmatmul.mubr.bf16.gmra.mxu1 %v9683_v4  ;;  %v11210_v49 = vld [vmem:[#allocation3 + $0x68] sm:$0xff]   ;;  %v2438_v15 = vmax.f32 %v2298_v62, %v2394_v8  ;;  %v9793_v62 = vld [vmem:[#allocation16 + $0x194] ss:$8 sps:$4 sm:$0xff]  }
 0x2dc   : > { %v2096_v58 = vpop.f32.mrf.mxu1  ;;  %3477 = vmatmul.mubr.bf16.gmra.mxu0 %v11186_v14  ;;  %3729 = vmatprep.mubr.bf16.mxu1 %v10674_v0  ;;  %v9776_v32 = vld [vmem:[#allocation16 + $0x1c0] ss:$8 sps:$4 sm:$0xff]  }
 0x2dd   : > { %v2395_v9 = vmul.f32 0.1, %v2301_v40  ;;  %v2097_v11 = vadd.f32 %v11113_v39, %v2096_v58  ;;  %3486 = vmatprep.mubr.bf16.mxu0 %v11210_v49  ;;  %6798 = vmatpush2.bf16.msra.mxu1 %v9776_v32 }
 0x2de   : > { %v2098_v13 = vpop.f32.mrf.mxu1  ;;  %6799 = vmatprep.subr.bf16.mxu1 %v9781_v42 }
 0x2df   : > { %v2439_v16 = vmax.f32 %v2301_v40, %v2395_v9  ;;  %v2306_v19 = vadd.f32 %v2305_v3, %v2097_v11  ;;  %v9791_v3 = vld [vmem:[#allocation16 + $0x190] ss:$8 sps:$4 sm:$0xff]   ;;  %v11233_v40 = vld [vmem:[#allocation11] ss:$0 sm:$0xff] }
 0x2e0   : > { %v2099_v17 = vpop.f32.mrf.mxu1 }
 0x2e1   : > { %v8965_v24 = vpack.c.bf16 %v2439_v16, %v2438_v15  ;;  %v2396_v56 = vmul.f32 0.1, %v2306_v19  ;;  %v2100_v14 = vadd.f32 %v11113_v39, %v2099_v17  ;;  %6800 = vmatpush2.bf16.msra.mxu1 %v9779_v44 }
 0x2e2   : > { %v2101_v25 = vpop.f32.mrf.mxu1  ;;  %v9688_v26 = vld [vmem:[#allocation3 + $0x70] sm:$0xff]  }
 0x2e3   : > { %9042 = vst [vmem:[#allocation3 + $0x78] sm:$0xff] %v8965_v24   ;;  %v2309_v28 = vadd.f32 %v2308_v22, %v2100_v14  ;;  %3730 = vmatmul.mubr.bf16.gmra.mxu1 %v9688_v26  ;;  %v11217_v10 = vld [vmem:[#allocation3 + $0x70] sm:$0xff]   ;;  %v2440_v37 = vmax.f32 %v2306_v19, %v2396_v56 }
 0x2e4   : > { %v2104_v29 = vpop.f32.mrf.mxu1  ;;  %3487 = vmatmul.mubr.bf16.gmra.mxu0 %v11194_v31  ;;  %3739 = vmatprep.mubr.bf16.mxu1 %v10674_v0  ;;  %v9787_v31 = vld [vmem:[#allocation16 + $0x1a4] ss:$8 sps:$4 sm:$0xff]  }
 0x2e5   : > { %v2397_v41 = vmul.f32 0.1, %v2309_v28  ;;  %v2105_v36 = vadd.f32 %v11113_v39, %v2104_v29  ;;  %3496 = vmatprep.mubr.bf16.mxu0 %v11217_v10  ;;  %6801 = vmatprep.subr.bf16.mxu1 %v9787_v31 }
 0x2e6   : > { %v2106_v43 = vpop.f32.mrf.mxu1  ;;  %6802 = vmatpush2.bf16.msra.mxu1 %v9785_v59 }
 0x2e7   : > { %v2441_v45 = vmax.f32 %v2309_v28, %v2397_v41  ;;  %v2314_v35 = vadd.f32 %v11203_v55, %v2105_v36  ;;  %v9286_v55 = vpop.f32.mrf.mxu0  ;;  %6803 = vmatprep.subr.bf16.mxu1 %v9793_v62 }
 0x2e8   : > { %v2107_v46 = vpop.f32.mrf.mxu1 }
 0x2e9   : > { %v8970_v48 = vpack.c.bf16 %v2441_v45, %v2440_v37  ;;  %v2108_v18 = vadd.f32 %v11113_v39, %v2107_v46  ;;  %v2398_v23 = vmul.f32 0.1, %v2314_v35  ;;  %v2324_v51 = vpop.f32.mrf.mxu0 }
 0x2ea   : > { %v2109_v52 = vpop.f32.mrf.mxu1  ;;  %v9693_v34 = vld [vmem:[#allocation3 + $0x78] sm:$0xff]   ;;  %6804 = vmatpush2.bf16.msra.mxu1 %v9791_v3 }
 0x2eb   : > { %9043 = vst [vmem:[#allocation3 + $0x80] sm:$0xff] %v8970_v48   ;;  %v2317_v53 = vadd.f32 %v9282_v1, %v2108_v18  ;;  %3740 = vmatmul.mubr.bf16.gmra.mxu1 %v9693_v34  ;;  %v11227_v50 = vld [vmem:[#allocation3 + $0x78] sm:$0xff]   ;;  %v2442_v5 = vmax.f32 %v2314_v35, %v2398_v23  ;;  %v9289_v13 = vpop.f32.mrf.mxu0 }
 0x2ec   : > { %v2112_v57 = vpop.f32.mrf.mxu1  ;;  %3497 = vmatmul.mubr.bf16.gmra.mxu0 %v11201_v54  ;;  %3749 = vmatprep.mubr.bf16.mxu1 %v10674_v0  ;;  %v9799_v54 = vld [vmem:[#allocation16 + $0x184] ss:$8 sps:$4 sm:$0xff]  }
 0x2ed   : > { %v2399_v60 = vmul.f32 0.1, %v2317_v53  ;;  %v2113_v61 = vadd.f32 %v11113_v39, %v2112_v57  ;;  %3506 = vmatprep.mubr.bf16.mxu0 %v11227_v50  ;;  %6805 = vmatprep.subr.bf16.mxu1 %v9799_v54  ;;  %v2337_v56 = vpop.f32.mrf.mxu0 }
 0x2ee   : > { %v2114_v2 = vpop.f32.mrf.mxu1  ;;  %6806 = vmatpush2.bf16.msra.mxu1 %v9797_v27 }
 0x2ef   : > { %v2443_v38 = vmax.f32 %v2317_v53, %v2399_v60  ;;  %v2322_v6 = vadd.f32 %v2321_v47, %v2113_v61  ;;  %6881 = vmatprep.subr.bf16.mxu1 %v9808_v20  ;;  %v9290_v37 = vpop.f32.mrf.mxu0 }
 0x2f0   : > { %v2115_v7 = vpop.f32.mrf.mxu1 }
 0x2f1   : > { %v8975_v4 = vpack.c.bf16 %v2443_v38, %v2442_v5  ;;  %v2400_v8 = vmul.f32 0.1, %v2322_v6  ;;  %v2116_v39 = vadd.f32 %v11233_v40, %v2115_v7  ;;  %v2340_v45 = vpop.f32.mrf.mxu0 }
 0x2f2   : > { %v2117_v58 = vpop.f32.mrf.mxu1  ;;  %v9698_v1 = vld [vmem:[#allocation3 + $0x80] sm:$0xff]  }
 0x2f3   : > { %9044 = vst [vmem:[#allocation3 + $0x88] sm:$0xff] %v8975_v4   ;;  %v2325_v9 = vadd.f32 %v2324_v51, %v2116_v39  ;;  %3750 = vmatmul.mubr.bf16.gmra.mxu1 %v9698_v1  ;;  %v11236_v12 = vld [vmem:[#allocation3 + $0x80] sm:$0xff]   ;;  %v2444_v15 = vmax.f32 %v2322_v6, %v2400_v8  ;;  %v9293_v34 = vpop.f32.mrf.mxu0 }
 0x2f4   : > { %v2120_v11 = vpop.f32.mrf.mxu1  ;;  %3507 = vmatmul.mubr.bf16.gmra.mxu0 %v11210_v49  ;;  %3759 = vmatprep.mubr.bf16.mxu1 %v10674_v0 }
 0x2f5   : > { %v2401_v16 = vmul.f32 0.1, %v2325_v9  ;;  %v2121_v19 = vadd.f32 %v11233_v40, %v2120_v11  ;;  %3516 = vmatprep.mubr.bf16.mxu0 %v11236_v12  ;;  %v2353_v62 = vpop.f32.mrf.mxu0 }
 0x2f6   : > { %v2122_v21 = vpop.f32.mrf.mxu1 }
 0x2f7   : > { %v2445_v17 = vmax.f32 %v2325_v9, %v2401_v16  ;;  %v2330_v22 = vadd.f32 %v11219_v30, %v2121_v19  ;;  %v9294_v4 = vpop.f32.mrf.mxu0 }
 0x2f8   : > { %v2123_v24 = vpop.f32.mrf.mxu1 }
 0x2f9   : > { %v8980_v14 = vpack.c.bf16 %v2445_v17, %v2444_v15  ;;  %v2124_v63 = vadd.f32 %v11233_v40, %v2123_v24  ;;  %v2402_v49 = vmul.f32 0.1, %v2330_v22 }
 0x2fa   : > { %v2125_v25 = vpop.f32.mrf.mxu1  ;;  %v9703_v26 = vld [vmem:[#allocation3 + $0x88] sm:$0xff]  }
 0x2fb   : > { %9045 = vst [vmem:[#allocation3 + $0x90] sm:$0xff] %v8980_v14   ;;  %v2333_v28 = vadd.f32 %v9286_v55, %v2124_v63  ;;  %3760 = vmatmul.mubr.bf16.gmra.mxu1 %v9703_v26  ;;  %v11244_v32 = vld [vmem:[#allocation3 + $0x88] sm:$0xff]   ;;  %v2446_v42 = vmax.f32 %v2330_v22, %v2402_v49 }
 0x2fc   : > { %v2128_v29 = vpop.f32.mrf.mxu1  ;;  %3517 = vmatmul.mubr.bf16.gmra.mxu0 %v11217_v10  ;;  %3769 = vmatprep.mubr.bf16.mxu1 %v10674_v0 }
 0x2fd   : > { %v2403_v41 = vmul.f32 0.1, %v2333_v28  ;;  %v2129_v36 = vadd.f32 %v11233_v40, %v2128_v29  ;;  %3526 = vmatprep.mubr.bf16.mxu0 %v11244_v32 }
 0x2fe   : > { %v2130_v30 = vpop.f32.mrf.mxu1 }
 0x2ff   : > { %v2447_v33 = vmax.f32 %v2333_v28, %v2403_v41  ;;  %v2338_v43 = vadd.f32 %v2337_v56, %v2129_v36 }
 0x300   : > { %v2131_v44 = vpop.f32.mrf.mxu1 }
 0x301   : > { %v8985_v35 = vpack.c.bf16 %v2447_v33, %v2446_v42  ;;  %v2404_v46 = vmul.f32 0.1, %v2338_v43  ;;  %v2132_v47 = vadd.f32 %v11233_v40, %v2131_v44 }
 0x302   : > { %v2133_v48 = vpop.f32.mrf.mxu1  ;;  %v9711_v18 = vld [vmem:[#allocation3 + $0x90] sm:$0xff]  }
 0x303   : > { %9046 = vst [vmem:[#allocation3 + $0x98] sm:$0xff] %v8985_v35   ;;  %v2341_v31 = vadd.f32 %v2340_v45, %v2132_v47  ;;  %3770 = vmatmul.mubr.bf16.gmra.mxu1 %v9711_v18  ;;  %v11251_v10 = vld [vmem:[#allocation3 + $0x90] sm:$0xff]   ;;  %v2448_v23 = vmax.f32 %v2338_v43, %v2404_v46  ;;  %v9750_v46 = vld [vmem:[#allocation3 + $0xc0] sm:$0xff]   ;;  %v9754_v47 = vld [vmem:[#allocation3 + $0xc8] sm:$0xff]   ;;  %v12029_v48 = vlaneseq }
 0x304   : > { %v2136_v52 = vpop.f32.mrf.mxu1  ;;  %3527 = vmatmul.mubr.bf16.gmra.mxu0 %v11227_v50  ;;  %3779 = vmatprep.mubr.bf16.mxu1 %v10674_v0 }
 0x305   : > { %v2405_v53 = vmul.f32 0.1, %v2341_v31  ;;  %v2137_v57 = vadd.f32 %v11233_v40, %v2136_v52  ;;  %3536 = vmatprep.mubr.bf16.mxu0 %v11251_v10  ;;  %v11272_v18 = vshrl.u32 %v12029_v48, 7  ;;  %v3092_v52 = vld [vmem:[#allocation14] sm:$0x3] }
 0x306   : > { %v2138_v55 = vpop.f32.mrf.mxu1 }
 0x307   : > { %v2449_v59 = vmax.f32 %v2341_v31, %v2405_v53  ;;  %v2346_v60 = vadd.f32 %v9289_v13, %v2137_v57  ;;  %v2356_v13 = vpop.f32.mrf.mxu0  ;;  %v12030_v31 = vsub.s32 0, %v11272_v18 }
 0x308   : > { %v2139_v61 = vpop.f32.mrf.mxu1 }
 0x309   : > { %v8990_v2 = vpack.c.bf16 %v2449_v59, %v2448_v23  ;;  %v2140_v3 = vadd.f32 %v11233_v40, %v2139_v61  ;;  %v2406_v6 = vmul.f32 0.1, %v2346_v60  ;;  %v11278_v53 = vrot.slane %v3092_v52, %v12030_v31 }
 0x30a   : > { %v2141_v5 = vpop.f32.mrf.mxu1  ;;  %v9719_v38 = vld [vmem:[#allocation3 + $0x98] sm:$0xff]  }
 0x30b   : > { %9047 = vst [vmem:[#allocation3 + $0xa0] sm:$0xff] %v8990_v2   ;;  %v2349_v7 = vadd.f32 %v9290_v37, %v2140_v3  ;;  %3780 = vmatmul.mubr.bf16.gmra.mxu1 %v9719_v38  ;;  %v9720_v50 = vld [vmem:[#allocation3 + $0x98] sm:$0xff]   ;;  %v2450_v58 = vmax.f32 %v2346_v60, %v2406_v6 }
 0x30c   : > { %v2144_v51 = vpop.f32.mrf.mxu1  ;;  %3537 = vmatmul.mubr.bf16.gmra.mxu0 %v11236_v12  ;;  %3789 = vmatprep.mubr.bf16.mxu1 %v10674_v0 }
 0x30d   : > { %v2407_v8 = vmul.f32 0.1, %v2349_v7  ;;  %v2145_v39 = vadd.f32 %v11233_v40, %v2144_v51  ;;  %3546 = vmatprep.mubr.bf16.mxu0 %v9720_v50 }
 0x30e   : > { %v2146_v54 = vpop.f32.mrf.mxu1 }
 0x30f   : > { %v2451_v1 = vmax.f32 %v2349_v7, %v2407_v8  ;;  %v2354_v9 = vadd.f32 %v2353_v62, %v2145_v39 }
 0x310   : > { %v2147_v11 = vpop.f32.mrf.mxu1 }
 0x311   : > { %v8995_v27 = vpack.c.bf16 %v2451_v1, %v2450_v58  ;;  %v2408_v15 = vmul.f32 0.1, %v2354_v9  ;;  %v2148_v16 = vadd.f32 %v11233_v40, %v2147_v11 }
 0x312   : > { %v2149_v19 = vpop.f32.mrf.mxu1  ;;  %v9724_v20 = vld [vmem:[#allocation3 + $0xa0] sm:$0xff]  }
 0x313   : > { %9048 = vst [vmem:[#allocation3 + $0xa8] sm:$0xff] %v8995_v27   ;;  %v2357_v21 = vadd.f32 %v2356_v13, %v2148_v16  ;;  %3790 = vmatmul.mubr.bf16.gmra.mxu1 %v9724_v20  ;;  %v9725_v12 = vld [vmem:[#allocation3 + $0xa0] sm:$0xff]   ;;  %v2452_v22 = vmax.f32 %v2354_v9, %v2408_v15 }
 0x314   : > { %v2152_v17 = vpop.f32.mrf.mxu1  ;;  %3547 = vmatmul.mubr.bf16.gmra.mxu0 %v11244_v32  ;;  %3799 = vmatprep.mubr.bf16.mxu1 %v10674_v0 }
 0x315   : > { %v2409_v24 = vmul.f32 0.1, %v2357_v21  ;;  %v2153_v56 = vadd.f32 %v11233_v40, %v2152_v17  ;;  %3556 = vmatprep.mubr.bf16.mxu0 %v9725_v12 }
 0x316   : > { %v2154_v14 = vpop.f32.mrf.mxu1 }
 0x317   : > { %v2453_v63 = vmax.f32 %v2357_v21, %v2409_v24  ;;  %v2362_v25 = vadd.f32 %v9293_v34, %v2153_v56  ;;  %v12031_v34 = vsub.s32 1, %v11272_v18 }
 0x318   : > { %v2155_v26 = vpop.f32.mrf.mxu1 }
 0x319   : > { %v9000_v49 = vpack.c.bf16 %v2453_v63, %v2452_v22  ;;  %v2156_v28 = vadd.f32 %v11233_v40, %v2155_v26  ;;  %v2410_v41 = vmul.f32 0.1, %v2362_v25 }
 0x31a   : > { %v2157_v29 = vpop.f32.mrf.mxu1  ;;  %v9729_v37 = vld [vmem:[#allocation3 + $0xa8] sm:$0xff]  }
 0x31b   : > { %9049 = vst [vmem:[#allocation3 + $0xb0] sm:$0xff] %v9000_v49   ;;  %v2365_v36 = vadd.f32 %v9294_v4, %v2156_v28  ;;  %3800 = vmatmul.mubr.bf16.gmra.mxu1 %v9729_v37  ;;  %v9733_v30 = vld [vmem:[#allocation3 + $0xa8] sm:$0xff]   ;;  %v2454_v32 = vmax.f32 %v2362_v25, %v2410_v41  ;;  %v9782_v29 = vld [vmem:[#allocation16 + $0x270] ss:$8 sps:$4 sm:$0xff]  }
 0x31c   : > { %3557 = vmatmul.mubr.bf16.gmra.mxu0 %v11251_v10  ;;  %3809 = vmatprep.mubr.bf16.mxu1 %v10674_v0 }
 0x31d   : > { %v2411_v42 = vmul.f32 0.1, %v2365_v36  ;;  %3566 = vmatprep.mubr.bf16.mxu0 %v9733_v30 }
 0x31f   : > { %v2455_v33 = vmax.f32 %v2365_v36, %v2411_v42  ;;  %v9790_v36 = vld [vmem:[#allocation16 + $0x264] ss:$8 sps:$4 sm:$0xff]  }
 0x321   : > { %v9005_v43 = vpack.c.bf16 %v2455_v33, %v2454_v32 }
 0x322   : > { %v9737_v44 = vld [vmem:[#allocation3 + $0xb0] sm:$0xff]  }
 0x323   : > { %9050 = vst [vmem:[#allocation3 + $0xb8] sm:$0xff] %v9005_v43   ;;  %3810 = vmatmul.mubr.bf16.gmra.mxu1 %v9737_v44  ;;  %v9738_v40 = vld [vmem:[#allocation3 + $0xb0] sm:$0xff]  }
 0x324   : > { %3567 = vmatmul.mubr.bf16.gmra.mxu0 %v9720_v50  ;;  %3819 = vmatprep.mubr.bf16.mxu1 %v10674_v0 }
 0x325   : > { %3576 = vmatprep.mubr.bf16.mxu0 %v9738_v40 }
 0x32a   : > { %v9742_v45 = vld [vmem:[#allocation3 + $0xb8] sm:$0xff]  }
 0x32b   : > { %3820 = vmatmul.mubr.bf16.gmra.mxu1 %v9742_v45  ;;  %v9746_v35 = vld [vmem:[#allocation3 + $0xb8] sm:$0xff]  }
 0x32c   : > { %3577 = vmatmul.mubr.bf16.gmra.mxu0 %v9725_v12  ;;  %3829 = vmatprep.mubr.bf16.mxu1 %v10674_v0 }
 0x32d   : > { %3586 = vmatprep.mubr.bf16.mxu0 %v9746_v35 }
 0x333   : > { %3830 = vmatmul.mubr.bf16.gmra.mxu1 %v9750_v46  ;;  %v9788_v46 = vld [vmem:[#allocation16 + $0x260] ss:$8 sps:$4 sm:$0xff]  }
 0x334   : > { %3587 = vmatmul.mubr.bf16.gmra.mxu0 %v9733_v30  ;;  %3839 = vmatprep.mubr.bf16.mxu1 %v10674_v0  ;;  %v11282_v0 = vrot.slane %v3092_v52, %v12031_v34 }
 0x33b   : > { %3840 = vmatmul.mubr.bf16.gmra.mxu1 %v9754_v47 }
 0x34c   : > { %v3378_v10 = vpop.f32.mrf.mxu0 }
 0x34d   : > { %v3379_v59 = vadd.f32 %v3378_v10, %v11278_v53 }
 0x34e   : > { %v3380_v23 = vpop.f32.mrf.mxu0 }
 0x34f   : > { %v3381_v61 = vadd.f32 %v3380_v23, %v11282_v0  ;;  %v9796_v23 = vld [vmem:[#allocation16 + $0x254] ss:$8 sps:$4 sm:$0xff]  }
 0x350   : > { %v3382_v57 = vpop.f32.mrf.mxu0 }
 0x351   : > { %v3383_v3 = vadd.f32 %v3382_v57, %v11278_v53 }
 0x352   : > { %v3384_v55 = vpop.f32.mrf.mxu0 }
 0x353   : > { %v3631_v60 = vpop.f32.mrf.mxu1  ;;  %v3385_v51 = vadd.f32 %v3384_v55, %v11282_v0 }
 0x354   : > { %v3388_v62 = vpop.f32.mrf.mxu0  ;;  %v3632_v6 = vadd.f32 %v3631_v60, %v3379_v59 }
 0x355   : > { %v3633_v2 = vpop.f32.mrf.mxu1  ;;  %v3389_v13 = vadd.f32 %v3388_v62, %v11278_v53 }
 0x356   : > { %v3634_v5 = vadd.f32 %v3633_v2, %v3381_v61  ;;  %v3390_v38 = vpop.f32.mrf.mxu0  ;;  %v3850_v11 = vmul.f32 0.1, %v3632_v6 }
 0x357   : > { %v3635_v7 = vpop.f32.mrf.mxu1  ;;  %v3391_v54 = vadd.f32 %v3390_v38, %v11282_v0 }
 0x358   : > { %v3636_v50 = vadd.f32 %v3635_v7, %v3383_v3  ;;  %v3392_v4 = vpop.f32.mrf.mxu0  ;;  %v3851_v39 = vmul.f32 0.1, %v3634_v5  ;;  %v3938_v14 = vmax.f32 %v3632_v6, %v3850_v11 }
 0x359   : > { %v3637_v8 = vpop.f32.mrf.mxu1  ;;  %v3393_v15 = vadd.f32 %v3392_v4, %v11278_v53 }
 0x35a   : > { %v3852_v58 = vmul.f32 0.1, %v3636_v50  ;;  %v3638_v1 = vadd.f32 %v3637_v8, %v3385_v51  ;;  %v3394_v9 = vpop.f32.mrf.mxu0  ;;  %v3939_v17 = vmax.f32 %v3634_v5, %v3851_v39  ;;  %v9794_v51 = vld [vmem:[#allocation16 + $0x250] ss:$8 sps:$4 sm:$0xff]   ;;  %v9802_v8 = vld [vmem:[#allocation16 + $0x244] ss:$8 sps:$4 sm:$0xff]  }
 0x35b   : > { %v3641_v27 = vpop.f32.mrf.mxu1  ;;  %v3395_v22 = vadd.f32 %v3394_v9, %v11282_v0 }
 0x35c   : > { %v3853_v16 = vmul.f32 0.1, %v3638_v1  ;;  %v3398_v19 = vpop.f32.mrf.mxu0  ;;  %v3940_v20 = vmax.f32 %v3636_v50, %v3852_v58  ;;  %v3642_v63 = vadd.f32 %v3641_v27, %v3389_v13 }
 0x35d   : > { %v3643_v21 = vpop.f32.mrf.mxu1  ;;  %v3399_v47 = vadd.f32 %v3398_v19, %v11278_v53 }
 0x35e   : > { %v3941_v12 = vmax.f32 %v3638_v1, %v3853_v16  ;;  %v3644_v24 = vadd.f32 %v3643_v21, %v3391_v54  ;;  %v3400_v56 = vpop.f32.mrf.mxu0  ;;  %v9051_v37 = vpack.c.bf16 %v3940_v20, %v3938_v14  ;;  %v3854_v43 = vmul.f32 0.1, %v3642_v63  ;;  %v9800_v16 = vld [vmem:[#allocation16 + $0x240] ss:$8 sps:$4 sm:$0xff]  }
 0x35f   : > { %v3645_v25 = vpop.f32.mrf.mxu1  ;;  %v3401_v40 = vadd.f32 %v3400_v56, %v11282_v0 }
 0x360   : > { %v3646_v26 = vadd.f32 %v3645_v25, %v3393_v15  ;;  %v3402_v49 = vpop.f32.mrf.mxu0  ;;  %v9052_v28 = vpack.c.bf16 %v3941_v12, %v3939_v17  ;;  %v3855_v30 = vmul.f32 0.1, %v3644_v24  ;;  %v3942_v62 = vmax.f32 %v3642_v63, %v3854_v43  ;;  %v9805_v17 = vld [vmem:[#allocation16 + $0x234] ss:$8 sps:$4 sm:$0xff]  }
 0x361   : > { %v3647_v41 = vpop.f32.mrf.mxu1  ;;  %v3403_v55 = vadd.f32 %v3402_v49, %v11278_v53 }
 0x362   : > { %v3856_v42 = vmul.f32 0.1, %v3646_v26  ;;  %v3648_v32 = vadd.f32 %v3647_v41, %v3395_v22  ;;  %v3404_v33 = vpop.f32.mrf.mxu0  ;;  %6754 = vmatprep.mubr.bf16.mxu0 %v9052_v28  ;;  %v3943_v57 = vmax.f32 %v3644_v24, %v3855_v30  ;;  %v9803_v41 = vld [vmem:[#allocation16 + $0x230] ss:$8 sps:$4 sm:$0xff]  }
 0x363   : > { %v3651_v44 = vpop.f32.mrf.mxu1  ;;  %6755 = vmatmul.mubr.bf16.vlgmr.msra.gmra.mxu0 %v9051_v37  ;;  %v3405_v5 = vadd.f32 %v3404_v33, %v11282_v0  ;;  %v9814_v33 = vld [vmem:[#allocation16 + $0x364] ss:$8 sps:$4 sm:$0xff]  }
 0x364   : > { %v3857_v45 = vmul.f32 0.1, %v3648_v32  ;;  %6829 = vmatpush1.bf16.msra.mxu0 %v9782_v29  ;;  %v3408_v35 = vpop.f32.mrf.mxu0  ;;  %v3944_v52 = vmax.f32 %v3646_v26, %v3856_v42  ;;  %v3652_v2 = vadd.f32 %v3651_v44, %v3399_v47 }
 0x365   : > { %v3653_v10 = vpop.f32.mrf.mxu1  ;;  %6830 = vmatprep.subr.bf16.mxu0 %v9790_v36  ;;  %v3409_v19 = vadd.f32 %v3408_v35, %v11278_v53  ;;  %v9806_v36 = vld [vmem:[#allocation16 + $0x370] ss:$8 sps:$4 sm:$0xff]  }
 0x366   : > { %v3945_v59 = vmax.f32 %v3648_v32, %v3857_v45  ;;  %v3654_v60 = vadd.f32 %v3653_v10, %v3401_v40  ;;  %v3410_v61 = vpop.f32.mrf.mxu0  ;;  %v9073_v50 = vpack.c.bf16 %v3944_v52, %v3942_v62  ;;  %v3858_v9 = vmul.f32 0.1, %v3652_v2  ;;  %v9811_v32 = vld [vmem:[#allocation16 + $0x224] ss:$8 sps:$4 sm:$0xff]  }
 0x367   : > { %v3655_v3 = vpop.f32.mrf.mxu1  ;;  %v3411_v13 = vadd.f32 %v3410_v61, %v11282_v0  ;;  %v9820_v61 = vld [vmem:[#allocation16 + $0x354] ss:$8 sps:$4 sm:$0xff]  }
 0x368   : > { %v3656_v38 = vadd.f32 %v3655_v3, %v3403_v55  ;;  %6831 = vmatpush1.bf16.msra.mxu0 %v9788_v46  ;;  %v3412_v6 = vpop.f32.mrf.mxu0  ;;  %v9074_v7 = vpack.c.bf16 %v3945_v59, %v3943_v57  ;;  %v3859_v39 = vmul.f32 0.1, %v3654_v60  ;;  %v3946_v63 = vmax.f32 %v3652_v2, %v3858_v9  ;;  %v9812_v57 = vld [vmem:[#allocation16 + $0x360] ss:$8 sps:$4 sm:$0xff]  }
 0x369   : > { %v3657_v4 = vpop.f32.mrf.mxu1  ;;  %6832 = vmatprep.subr.bf16.mxu0 %v9796_v23  ;;  %v3413_v22 = vadd.f32 %v3412_v6, %v11278_v53  ;;  %v9809_v23 = vld [vmem:[#allocation16 + $0x220] ss:$8 sps:$4 sm:$0xff]  }
 0x36a   : > { %v3860_v54 = vmul.f32 0.1, %v3656_v38  ;;  %v3658_v58 = vadd.f32 %v3657_v4, %v3405_v5  ;;  %v3414_v1 = vpop.f32.mrf.mxu0  ;;  %6764 = vmatprep.mubr.bf16.mxu0 %v9074_v7  ;;  %v3947_v12 = vmax.f32 %v3654_v60, %v3859_v39  ;;  %v9817_v60 = vld [vmem:[#allocation16 + $0x214] ss:$8 sps:$4 sm:$0xff]   ;;  %v9815_v4 = vld [vmem:[#allocation16 + $0x210] ss:$8 sps:$4 sm:$0xff]  }
 0x36b   : > { %v3661_v11 = vpop.f32.mrf.mxu1  ;;  %6765 = vmatmul.mubr.bf16.gmra.mxu0 %v9073_v50  ;;  %v3415_v49 = vadd.f32 %v3414_v1, %v11282_v0  ;;  %v9826_v1 = vld [vmem:[#allocation16 + $0x344] ss:$8 sps:$4 sm:$0xff]  }
 0x36c   : > { %v3861_v27 = vmul.f32 0.1, %v3658_v58  ;;  %6833 = vmatpush1.bf16.msra.mxu0 %v9794_v51  ;;  %v11297_v15 = vpop.f32.mrf.mxu0  ;;  %v3948_v20 = vmax.f32 %v3656_v38, %v3860_v54  ;;  %v3662_v25 = vadd.f32 %v3661_v11, %v3409_v19 }
 0x36d   : > { %v3663_v21 = vpop.f32.mrf.mxu1  ;;  %6834 = vmatprep.subr.bf16.mxu0 %v9802_v8  ;;  %v9818_v8 = vld [vmem:[#allocation16 + $0x350] ss:$8 sps:$4 sm:$0xff]  }
 0x36e   : > { %v3949_v24 = vmax.f32 %v3658_v58, %v3861_v27  ;;  %v3664_v56 = vadd.f32 %v3663_v21, %v3411_v13  ;;  %v3420_v14 = vpop.f32.mrf.mxu0  ;;  %v9053_v30 = vpack.c.bf16 %v3948_v20, %v3946_v63  ;;  %v3862_v35 = vmul.f32 0.1, %v3662_v25  ;;  %v9823_v58 = vld [vmem:[#allocation16 + $0x204] ss:$8 sps:$4 sm:$0xff]   ;;  %v9821_v20 = vld [vmem:[#allocation16 + $0x200] ss:$8 sps:$4 sm:$0xff]  }
 0x36f   : > { %v3665_v26 = vpop.f32.mrf.mxu1  ;;  %v3421_v47 = vadd.f32 %v3420_v14, %v11282_v0  ;;  %v9824_v21 = vld [vmem:[#allocation16 + $0x340] ss:$8 sps:$4 sm:$0xff]  }
 0x370   : > { %v3666_v28 = vadd.f32 %v3665_v26, %v3413_v22  ;;  %6835 = vmatpush1.bf16.msra.mxu0 %v9800_v16  ;;  %v11302_v29 = vpop.f32.mrf.mxu0  ;;  %v9054_v37 = vpack.c.bf16 %v3949_v24, %v3947_v12  ;;  %v3863_v43 = vmul.f32 0.1, %v3664_v56  ;;  %v3950_v38 = vmax.f32 %v3662_v25, %v3862_v35  ;;  %v9829_v12 = vld [vmem:[#allocation16 + $0x2f4] ss:$8 sps:$4 sm:$0xff]   ;;  %v9827_v26 = vld [vmem:[#allocation16 + $0x2f0] ss:$8 sps:$4 sm:$0xff]  }
 0x371   : > { %v3667_v42 = vpop.f32.mrf.mxu1  ;;  %6836 = vmatprep.subr.bf16.mxu0 %v9805_v17  ;;  %v9832_v22 = vld [vmem:[#allocation16 + $0x334] ss:$8 sps:$4 sm:$0xff]  }
 0x372   : > { %v3864_v44 = vmul.f32 0.1, %v3666_v28  ;;  %v3668_v40 = vadd.f32 %v3667_v42, %v3415_v49  ;;  %v3424_v45 = vpop.f32.mrf.mxu0  ;;  %6807 = vmatprep.mubr.bf16.mxu1 %v9054_v37  ;;  %v3951_v62 = vmax.f32 %v3664_v56, %v3863_v43  ;;  %v9833_v43 = vld [vmem:[#allocation16 + $0x2e0] ss:$8 sps:$4 sm:$0xff]   ;;  %v9844_v35 = vld [vmem:[#allocation16 + $0x314] ss:$8 sps:$4 sm:$0xff]  }
 0x373   : > { %v11304_v46 = vpop.f32.mrf.mxu1  ;;  %6808 = vmatmul.mubr.bf16.vlgmr.msra.gmra.mxu1 %v9053_v30  ;;  %v3425_v7 = vadd.f32 %v3424_v45, %v11282_v0  ;;  %v9841_v45 = vld [vmem:[#allocation16 + $0x2d4] ss:$8 sps:$4 sm:$0xff]  }
 0x374   : > { %v3865_v52 = vmul.f32 0.1, %v3668_v40  ;;  %6837 = vmatpush1.bf16.msra.mxu0 %v9803_v41  ;;  %6882 = vmatpush1.bf16.msra.mxu1 %v9806_v36  ;;  %v11307_v10 = vpop.f32.mrf.mxu0  ;;  %v3952_v55 = vmax.f32 %v3666_v28, %v3864_v44  ;;  %v9830_v28 = vld [vmem:[#allocation16 + $0x330] ss:$8 sps:$4 sm:$0xff]   ;;  %v9835_v41 = vld [vmem:[#allocation16 + $0x2e4] ss:$8 sps:$4 sm:$0xff]  }
 0x375   : > { %v3673_v59 = vpop.f32.mrf.mxu1  ;;  %6838 = vmatprep.subr.bf16.mxu0 %v9811_v32  ;;  %6883 = vmatprep.subr.bf16.mxu1 %v9814_v33  ;;  %v9838_v36 = vld [vmem:[#allocation16 + $0x324] ss:$8 sps:$4 sm:$0xff]   ;;  %v9836_v44 = vld [vmem:[#allocation16 + $0x320] ss:$8 sps:$4 sm:$0xff]  }
 0x376   : > { %v3953_v2 = vmax.f32 %v3668_v40, %v3865_v52  ;;  %v3674_v3 = vadd.f32 %v3673_v59, %v3421_v47  ;;  %v11309_v5 = vpop.f32.mrf.mxu0  ;;  %v9075_v39 = vpack.c.bf16 %v3952_v55, %v3950_v38  ;;  %v9839_v59 = vld [vmem:[#allocation16 + $0x2d0] ss:$8 sps:$4 sm:$0xff]  }
 0x377   : > { %v11311_v6 = vpop.f32.mrf.mxu1 }
 0x378   : > { %6839 = vmatpush1.bf16.msra.mxu0 %v9809_v23  ;;  %6884 = vmatpush1.bf16.msra.mxu1 %v9812_v57  ;;  %v11314_v51 = vpop.f32.mrf.mxu0  ;;  %v9076_v50 = vpack.c.bf16 %v3953_v2, %v3951_v62  ;;  %v3867_v9 = vmul.f32 0.1, %v3674_v3  ;;  %v9847_v62 = vld [vmem:[#allocation16 + $0x2c4] ss:$8 sps:$4 sm:$0xff]  }
 0x379   : > { %v3677_v54 = vpop.f32.mrf.mxu1  ;;  %6840 = vmatprep.subr.bf16.mxu0 %v9817_v60  ;;  %6885 = vmatprep.subr.bf16.mxu1 %v9820_v61  ;;  %v9842_v60 = vld [vmem:[#allocation16 + $0x310] ss:$8 sps:$4 sm:$0xff]   ;;  %v9850_v2 = vld [vmem:[#allocation16 + $0x304] ss:$8 sps:$4 sm:$0xff]  }
 0x37a   : > { %v3678_v11 = vadd.f32 %v3677_v54, %v3425_v7  ;;  %v11316_v13 = vpop.f32.mrf.mxu0  ;;  %6817 = vmatprep.mubr.bf16.mxu1 %v9076_v50  ;;  %v3955_v24 = vmax.f32 %v3674_v3, %v3867_v9  ;;  %v9848_v54 = vld [vmem:[#allocation16 + $0x300] ss:$8 sps:$4 sm:$0xff]   ;;  %v9856_v9 = vld [vmem:[#allocation16 + $0x3f4] ss:$8 sps:$4 sm:$0xff]  }
 0x37b   : > { %v11318_v27 = vpop.f32.mrf.mxu1  ;;  %6818 = vmatmul.mubr.bf16.gmra.mxu1 %v9075_v39  ;;  %v9845_v39 = vld [vmem:[#allocation16 + $0x2c0] ss:$8 sps:$4 sm:$0xff]  }
 0x37c   : > { %v3869_v16 = vmul.f32 0.1, %v3678_v11  ;;  %6841 = vmatpush1.bf16.msra.mxu0 %v9815_v4  ;;  %6886 = vmatpush1.bf16.msra.mxu1 %v9818_v8  ;;  %v11320_v19 = vpop.f32.mrf.mxu0 }
 0x37d   : > { %v11322_v17 = vpop.f32.mrf.mxu1  ;;  %6842 = vmatprep.subr.bf16.mxu0 %v9823_v58  ;;  %6887 = vmatprep.subr.bf16.mxu1 %v9826_v1  ;;  %v9853_v1 = vld [vmem:[#allocation16 + $0x2b4] ss:$8 sps:$4 sm:$0xff]  }
 0x37e   : > { %v3957_v56 = vmax.f32 %v3678_v11, %v3869_v16  ;;  %v3440_v14 = vpop.f32.mrf.mxu0 }
 0x37f   : > { %v11324_v63 = vpop.f32.mrf.mxu1  ;;  %v3441_v32 = vadd.f32 %v3440_v14, %v11282_v0 }
 0x380   : > { %6843 = vmatpush1.bf16.msra.mxu0 %v9821_v20  ;;  %6888 = vmatpush1.bf16.msra.mxu1 %v9824_v21  ;;  %v11326_v25 = vpop.f32.mrf.mxu0  ;;  %v9056_v49 = vpack.c.bf16 %v3957_v56, %v3955_v24  ;;  %v9854_v24 = vld [vmem:[#allocation16 + $0x3f0] ss:$8 sps:$4 sm:$0xff]  }
 0x381   : > { %v11328_v37 = vpop.f32.mrf.mxu1  ;;  %6844 = vmatprep.subr.bf16.mxu0 %v9829_v12  ;;  %6889 = vmatprep.subr.bf16.mxu1 %v9832_v22  ;;  %v9851_v22 = vld [vmem:[#allocation16 + $0x2b0] ss:$8 sps:$4 sm:$0xff]  }
 0x382   : > { %v3444_v30 = vpop.f32.mrf.mxu0  ;;  %6860 = vmatprep.mubr.bf16.mxu0 %v9056_v49  ;;  %v9862_v49 = vld [vmem:[#allocation16 + $0x3e4] ss:$8 sps:$4 sm:$0xff]  }
 0x383   : > { %v11330_v42 = vpop.f32.mrf.mxu1  ;;  %v3445_v57 = vadd.f32 %v3444_v30, %v11282_v0  ;;  %v3435_v30 = vadd.f32 %v11316_v13, %v11282_v0 }
 0x384   : > { %6845 = vmatpush2.bf16.msra.mxu0 %v9827_v26  ;;  %6890 = vmatpush1.bf16.msra.mxu1 %v9830_v28  ;;  %v11333_v33 = vpop.f32.mrf.mxu0  ;;  %v9859_v26 = vld [vmem:[#allocation16 + $0x2a4] ss:$8 sps:$4 sm:$0xff]  }
 0x385   : > { %v3693_v40 = vpop.f32.mrf.mxu1  ;;  %6846 = vmatprep.subr.bf16.mxu0 %v9835_v41  ;;  %6891 = vmatprep.subr.bf16.mxu1 %v9838_v36  ;;  %v3423_v41 = vadd.f32 %v11302_v29, %v11278_v53  ;;  %v9865_v29 = vld [vmem:[#allocation16 + $0x294] ss:$8 sps:$4 sm:$0xff]   ;;  %v3688_v13 = vadd.f32 %v11328_v37, %v3435_v30  ;;  %v9874_v37 = vld [vmem:[#allocation16 + $0x3c4] ss:$8 sps:$4 sm:$0xff]  }
 0x386   : > { %v3694_v47 = vadd.f32 %v3693_v40, %v3441_v32  ;;  %v11335_v52 = vpop.f32.mrf.mxu0  ;;  %v3419_v40 = vadd.f32 %v11297_v15, %v11278_v53 }
 0x387   : > { %v11337_v23 = vpop.f32.mrf.mxu1 }
 0x388   : > { %6847 = vmatpush2.bf16.msra.mxu0 %v9833_v43  ;;  %6892 = vmatpush1.bf16.msra.mxu1 %v9836_v44  ;;  %v11340_v55 = vpop.f32.mrf.mxu0  ;;  %v3875_v3 = vmul.f32 0.1, %v3694_v47  ;;  %v9857_v43 = vld [vmem:[#allocation16 + $0x2a0] ss:$8 sps:$4 sm:$0xff]  }
 0x389   : > { %v3697_v61 = vpop.f32.mrf.mxu1  ;;  %6848 = vmatprep.subr.bf16.mxu0 %v9841_v45  ;;  %6893 = vmatprep.subr.bf16.mxu1 %v9844_v35  ;;  %v9860_v44 = vld [vmem:[#allocation16 + $0x3e0] ss:$8 sps:$4 sm:$0xff]   ;;  %v3676_v45 = vadd.f32 %v11311_v6, %v3423_v41  ;;  %v9880_v41 = vld [vmem:[#allocation16 + $0x474] ss:$8 sps:$4 sm:$0xff]  }
 0x38a   : > { %v3698_v38 = vadd.f32 %v3697_v61, %v3445_v57  ;;  %v11342_v7 = vpop.f32.mrf.mxu0  ;;  %v3963_v11 = vmax.f32 %v3694_v47, %v3875_v3  ;;  %v9868_v47 = vld [vmem:[#allocation16 + $0x3d4] ss:$8 sps:$4 sm:$0xff]   ;;  %v3431_v57 = vadd.f32 %v11309_v5, %v11282_v0  ;;  %v9871_v5 = vld [vmem:[#allocation16 + $0x284] ss:$8 sps:$4 sm:$0xff]  }
 0x38b   : > { %v11344_v50 = vpop.f32.mrf.mxu1  ;;  %v3868_v3 = vmul.f32 0.1, %v3676_v45 }
 0x38c   : > { %v3877_v4 = vmul.f32 0.1, %v3698_v38  ;;  %6849 = vmatpush2.bf16.msra.mxu0 %v9839_v59  ;;  %6894 = vmatpush1.bf16.msra.mxu1 %v9842_v60  ;;  %v11346_v8 = vpop.f32.mrf.mxu0  ;;  %v3672_v60 = vadd.f32 %v11304_v46, %v3419_v40  ;;  %v3684_v15 = vadd.f32 %v11322_v17, %v3431_v57 }
 0x38d   : > { %v11348_v58 = vpop.f32.mrf.mxu1  ;;  %6850 = vmatprep.subr.bf16.mxu0 %v9847_v62  ;;  %6895 = vmatprep.subr.bf16.mxu1 %v9850_v2  ;;  %v9863_v62 = vld [vmem:[#allocation16 + $0x290] ss:$8 sps:$4 sm:$0xff]  }
 0x38e   : > { %v3965_v16 = vmax.f32 %v3698_v38, %v3877_v4  ;;  %v11350_v20 = vpop.f32.mrf.mxu0  ;;  %v9866_v2 = vld [vmem:[#allocation16 + $0x3d0] ss:$8 sps:$4 sm:$0xff]   ;;  %v3873_v4 = vmul.f32 0.1, %v3688_v13  ;;  %v3866_v46 = vmul.f32 0.1, %v3672_v60 }
 0x38f   : > { %v11352_v21 = vpop.f32.mrf.mxu1 }
 0x390   : > { %6851 = vmatpush2.bf16.msra.mxu0 %v9845_v39  ;;  %6896 = vmatpush1.bf16.msra.mxu1 %v9848_v54  ;;  %v11354_v12 = vpop.f32.mrf.mxu0  ;;  %v9058_v56 = vpack.c.bf16 %v3965_v16, %v3963_v11  ;;  %v3433_v54 = vadd.f32 %v11314_v51, %v11278_v53  ;;  %v9869_v11 = vld [vmem:[#allocation16 + $0x280] ss:$8 sps:$4 sm:$0xff]   ;;  %v9877_v51 = vld [vmem:[#allocation16 + $0x3b4] ss:$8 sps:$4 sm:$0xff]   ;;  %v3961_v30 = vmax.f32 %v3688_v13, %v3873_v4  ;;  %v9878_v13 = vld [vmem:[#allocation16 + $0x470] ss:$8 sps:$4 sm:$0xff]  }
 0x391   : > { %v11356_v14 = vpop.f32.mrf.mxu1  ;;  %6852 = vmatprep.subr.bf16.mxu0 %v9853_v1  ;;  %6897 = vmatprep.subr.bf16.mxu1 %v9856_v9  ;;  %v3871_v1 = vmul.f32 0.1, %v3684_v15  ;;  %v9872_v16 = vld [vmem:[#allocation16 + $0x3c0] ss:$8 sps:$4 sm:$0xff]  }
 0x392   : > { %v3464_v28 = vpop.f32.mrf.mxu0  ;;  %6913 = vmatprep.mubr.bf16.mxu1 %v9058_v56  ;;  %v3686_v56 = vadd.f32 %v11324_v63, %v3433_v54  ;;  %v9881_v4 = vld [vmem:[#allocation16 + $0x3a0] ss:$8 sps:$4 sm:$0xff]  }
 0x393   : > { %v11360_v36 = vpop.f32.mrf.mxu1  ;;  %v3465_v9 = vadd.f32 %v3464_v28, %v11282_v0  ;;  %v3461_v28 = vadd.f32 %v11350_v20, %v11282_v0  ;;  %v9883_v20 = vld [vmem:[#allocation16 + $0x3a4] ss:$8 sps:$4 sm:$0xff]  }
 0x394   : > { %6853 = vmatpush2.bf16.msra.mxu0 %v9851_v22  ;;  %6898 = vmatpush2.bf16.msra.mxu1 %v9854_v24  ;;  %v11364_v32 = vpop.f32.mrf.mxu0  ;;  %v3429_v22 = vadd.f32 %v11307_v10, %v11278_v53  ;;  %v3956_v24 = vmax.f32 %v3676_v45, %v3868_v3  ;;  %v3959_v45 = vmax.f32 %v3684_v15, %v3871_v1  ;;  %v3872_v57 = vmul.f32 0.1, %v3686_v56 }
 0x395   : > { %v3713_v35 = vpop.f32.mrf.mxu1  ;;  %6854 = vmatprep.subr.bf16.mxu0 %v9859_v26  ;;  %6899 = vmatprep.subr.bf16.mxu1 %v9862_v49 }
 0x396   : > { %v11372_v59 = vpop.f32.mrf.mxu0  ;;  %v3682_v40 = vadd.f32 %v11318_v27, %v3429_v22  ;;  %v3714_v63 = vadd.f32 %v3713_v35, %v3461_v28  ;;  %v9078_v3 = vpack.c.bf16 %v3961_v30, %v3959_v45  ;;  %v9886_v27 = vld [vmem:[#allocation16 + $0x464] ss:$8 sps:$4 sm:$0xff]   ;;  %v3443_v35 = vadd.f32 %v11326_v25, %v11278_v53  ;;  %v9887_v28 = vld [vmem:[#allocation16 + $0x390] ss:$8 sps:$4 sm:$0xff]  }
 0x397   : > { %v11375_v61 = vpop.f32.mrf.mxu1  ;;  %v3960_v54 = vmax.f32 %v3686_v56, %v3872_v57 }
 0x398   : > { %6855 = vmatpush2.bf16.msra.mxu0 %v9857_v43  ;;  %6900 = vmatpush2.bf16.msra.mxu1 %v9860_v44  ;;  %v11378_v6 = vpop.f32.mrf.mxu0  ;;  %v3954_v44 = vmax.f32 %v3672_v60, %v3866_v46  ;;  %v3439_v46 = vadd.f32 %v11320_v19, %v11278_v53  ;;  %v3696_v1 = vadd.f32 %v11337_v23, %v3443_v35  ;;  %v9896_v35 = vld [vmem:[#allocation16 + $0x440] ss:$8 sps:$4 sm:$0xff]  }
 0x399   : > { %v3717_v38 = vpop.f32.mrf.mxu1  ;;  %6856 = vmatprep.subr.bf16.mxu0 %v9865_v29  ;;  %6901 = vmatprep.subr.bf16.mxu1 %v9868_v47  ;;  %v9875_v29 = vld [vmem:[#allocation16 + $0x3b0] ss:$8 sps:$4 sm:$0xff]  }
 0x39a   : > { %v11380_v39 = vpop.f32.mrf.mxu0  ;;  %v3718_v43 = vadd.f32 %v3717_v38, %v3465_v9  ;;  %v9055_v47 = vpack.c.bf16 %v3956_v24, %v3954_v44  ;;  %v3870_v38 = vmul.f32 0.1, %v3682_v40  ;;  %v3692_v19 = vadd.f32 %v11330_v42, %v3439_v46  ;;  %v9901_v46 = vld [vmem:[#allocation16 + $0x434] ss:$8 sps:$4 sm:$0xff]  }
 0x39b   : > { %v11384_v17 = vpop.f32.mrf.mxu1  ;;  %v3876_v45 = vmul.f32 0.1, %v3696_v1  ;;  %v3453_v42 = vadd.f32 %v11340_v55, %v11278_v53  ;;  %v9904_v55 = vld [vmem:[#allocation16 + $0x574] ss:$8 sps:$4 sm:$0xff]  }
 0x39c   : > { %6857 = vmatpush2.bf16.msra.mxu0 %v9863_v62  ;;  %6902 = vmatpush2.bf16.msra.mxu1 %v9866_v2  ;;  %v11390_v26 = vpop.f32.mrf.mxu0  ;;  %v3885_v60 = vmul.f32 0.1, %v3718_v43  ;;  %v3874_v57 = vmul.f32 0.1, %v3692_v19 }
 0x39d   : > { %v11392_v49 = vpop.f32.mrf.mxu1  ;;  %6858 = vmatprep.subr.bf16.mxu0 %v9871_v5  ;;  %6903 = vmatprep.subr.bf16.mxu1 %v9874_v37  ;;  %v3455_v5 = vadd.f32 %v11342_v7, %v11282_v0  ;;  %v3883_v37 = vmul.f32 0.1, %v3714_v63  ;;  %v3451_v7 = vadd.f32 %v11335_v52, %v11282_v0  ;;  %v9890_v52 = vld [vmem:[#allocation16 + $0x450] ss:$8 sps:$4 sm:$0xff]  }
 0x39e   : > { %v11399_v62 = vpop.f32.mrf.mxu0  ;;  %v3973_v24 = vmax.f32 %v3718_v43, %v3885_v60  ;;  %v3449_v60 = vadd.f32 %v11333_v33, %v11278_v53 }
 0x39f   : > { %v11397_v10 = vpop.f32.mrf.mxu1  ;;  %v3708_v22 = vadd.f32 %v11356_v14, %v3455_v5  ;;  %v3704_v23 = vadd.f32 %v11348_v58, %v3451_v7  ;;  %v3971_v30 = vmax.f32 %v3714_v63, %v3883_v37  ;;  %v9895_v14 = vld [vmem:[#allocation16 + $0x384] ss:$8 sps:$4 sm:$0xff]   ;;  %v3481_v37 = vadd.f32 %v11399_v62, %v11282_v0 }
 0x3a0   : > { %6859 = vmatpush2.bf16.msra.mxu0 %v9869_v11  ;;  %6904 = vmatpush2.bf16.msra.mxu1 %v9872_v16  ;;  %v11412_v9 = vpop.f32.mrf.mxu0  ;;  %v9884_v11 = vld [vmem:[#allocation16 + $0x460] ss:$8 sps:$4 sm:$0xff]   ;;  %v9889_v16 = vld [vmem:[#allocation16 + $0x394] ss:$8 sps:$4 sm:$0xff]   ;;  %v9910_v62 = vld [vmem:[#allocation16 + $0x564] ss:$8 sps:$4 sm:$0xff]  }
 0x3a1   : > { %v11401_v2 = vpop.f32.mrf.mxu1  ;;  %6905 = vmatprep.subr.bf16.mxu1 %v9877_v51  ;;  %6934 = vmatprep.subr.bf16.mxu0 %v9880_v41  ;;  %v9892_v51 = vld [vmem:[#allocation16 + $0x454] ss:$8 sps:$4 sm:$0xff]   ;;  %v3958_v41 = vmax.f32 %v3682_v40, %v3870_v38  ;;  %v3881_v43 = vmul.f32 0.1, %v3708_v22  ;;  %v9898_v40 = vld [vmem:[#allocation16 + $0x444] ss:$8 sps:$4 sm:$0xff]  }
 0x3a2   : > { %v3879_v58 = vmul.f32 0.1, %v3704_v23 }
 0x3a3   : > { %6861 = vmatmul.mubr.bf16.vlgmr.msra.gmra.mxu0 %v9055_v47  ;;  %v11405_v15 = vpop.f32.mrf.mxu1  ;;  %v9077_v44 = vpack.c.bf16 %v3960_v54, %v3958_v41  ;;  %v9060_v47 = vpack.c.bf16 %v3973_v24, %v3971_v30  ;;  %v3969_v5 = vmax.f32 %v3708_v22, %v3881_v43  ;;  %v3962_v54 = vmax.f32 %v3692_v19, %v3874_v57  ;;  %v9899_v22 = vld [vmem:[#allocation16 + $0x430] ss:$8 sps:$4 sm:$0xff]   ;;  %v9907_v19 = vld [vmem:[#allocation16 + $0x424] ss:$8 sps:$4 sm:$0xff]   ;;  %v9913_v43 = vld [vmem:[#allocation16 + $0x414] ss:$8 sps:$4 sm:$0xff]  }
 0x3a4   : > { %6870 = vmatprep.mubr.bf16.mxu0 %v9078_v3  ;;  %6906 = vmatpush2.bf16.msra.mxu1 %v9875_v29  ;;  %v3484_v29 = vpop.f32.mrf.mxu0  ;;  %v3964_v3 = vmax.f32 %v3696_v1, %v3876_v45  ;;  %v3967_v1 = vmax.f32 %v3704_v23, %v3879_v58 }
 0x3a5   : > { %6935 = vmatpush1.bf16.msra.mxu0 %v9878_v13  ;;  %v3733_v25 = vpop.f32.mrf.mxu1  ;;  %6907 = vmatprep.subr.bf16.mxu1 %v9883_v20  ;;  %v3485_v63 = vadd.f32 %v3484_v29, %v11282_v0  ;;  %v9893_v20 = vld [vmem:[#allocation16 + $0x380] ss:$8 sps:$4 sm:$0xff]  }
 0x3a6   : > { %6936 = vmatprep.subr.bf16.mxu0 %v9886_v27  ;;  %v3706_v27 = vadd.f32 %v11352_v21, %v3453_v42  ;;  %v11427_v38 = vpop.f32.mrf.mxu0  ;;  %v3734_v21 = vadd.f32 %v3733_v25, %v3481_v37  ;;  %v9057_v7 = vpack.c.bf16 %v3964_v3, %v3962_v54  ;;  %v9080_v30 = vpack.c.bf16 %v3969_v5, %v3967_v1  ;;  %v9908_v25 = vld [vmem:[#allocation16 + $0x560] ss:$8 sps:$4 sm:$0xff]   ;;  %v9914_v42 = vld [vmem:[#allocation16 + $0x550] ss:$8 sps:$4 sm:$0xff]   ;;  %v9919_v3 = vld [vmem:[#allocation16 + $0x404] ss:$8 sps:$4 sm:$0xff]  }
 0x3a7   : > { %v11418_v56 = vpop.f32.mrf.mxu1  ;;  %v9905_v29 = vld [vmem:[#allocation16 + $0x420] ss:$8 sps:$4 sm:$0xff]   ;;  %v9928_v37 = vld [vmem:[#allocation16 + $0x534] ss:$8 sps:$4 sm:$0xff]   ;;  %v9926_v54 = vld [vmem:[#allocation16 + $0x530] ss:$8 sps:$4 sm:$0xff]  }
 0x3a8   : > { %6908 = vmatpush2.bf16.msra.mxu1 %v9881_v4  ;;  %v3880_v24 = vmul.f32 0.1, %v3706_v27  ;;  %v3891_v23 = vmul.f32 0.1, %v3734_v21  ;;  %v9917_v5 = vld [vmem:[#allocation16 + $0x400] ss:$8 sps:$4 sm:$0xff]  }
 0x3a9   : > { %6937 = vmatpush1.bf16.msra.mxu0 %v9884_v11  ;;  %6909 = vmatprep.subr.bf16.mxu1 %v9889_v16  ;;  %v3737_v13 = vpop.f32.mrf.mxu1  ;;  %v3702_v11 = vadd.f32 %v11344_v50, %v3449_v60  ;;  %v9902_v16 = vld [vmem:[#allocation16 + $0x570] ss:$8 sps:$4 sm:$0xff]  }
 0x3aa   : > { %6938 = vmatprep.subr.bf16.mxu0 %v9892_v51  ;;  %v3738_v4 = vadd.f32 %v3737_v13, %v3485_v63  ;;  %v11434_v51 = vpop.f32.mrf.mxu0  ;;  %v3979_v57 = vmax.f32 %v3734_v21, %v3891_v23  ;;  %v9911_v63 = vld [vmem:[#allocation16 + $0x410] ss:$8 sps:$4 sm:$0xff]   ;;  %v9934_v21 = vld [vmem:[#allocation16 + $0x524] ss:$8 sps:$4 sm:$0xff]  }
 0x3ab   : > { %6871 = vmatmul.mubr.bf16.gmra.mxu0 %v9077_v44  ;;  %v11432_v33 = vpop.f32.mrf.mxu1  ;;  %v3968_v44 = vmax.f32 %v3706_v27, %v3880_v24  ;;  %v9923_v1 = vld [vmem:[#allocation16 + $0x4f0] ss:$8 sps:$4 sm:$0xff]   ;;  %v9932_v24 = vld [vmem:[#allocation16 + $0x520] ss:$8 sps:$4 sm:$0xff]  }
 0x3ac   : > { %6910 = vmatpush2.bf16.msra.mxu1 %v9887_v28  ;;  %6966 = vmatprep.mubr.bf16.mxu0 %v9060_v47  ;;  %v3893_v41 = vmul.f32 0.1, %v3738_v4  ;;  %v3878_v28 = vmul.f32 0.1, %v3702_v11  ;;  %v11438_v45 = vpop.f32.mrf.mxu0 }
 0x3ad   : > { %6939 = vmatpush1.bf16.msra.mxu0 %v9890_v52  ;;  %6911 = vmatprep.subr.bf16.mxu1 %v9895_v14  ;;  %v11436_v50 = vpop.f32.mrf.mxu1  ;;  %v9916_v52 = vld [vmem:[#allocation16 + $0x554] ss:$8 sps:$4 sm:$0xff]  }
 0x3ae   : > { %6940 = vmatprep.subr.bf16.mxu0 %v9898_v40  ;;  %v3981_v14 = vmax.f32 %v3738_v4, %v3893_v41  ;;  %v3966_v47 = vmax.f32 %v3702_v11, %v3878_v28  ;;  %v11442_v58 = vpop.f32.mrf.mxu0  ;;  %v9925_v4 = vld [vmem:[#allocation16 + $0x4f4] ss:$8 sps:$4 sm:$0xff]   ;;  %v9938_v28 = vld [vmem:[#allocation16 + $0x510] ss:$8 sps:$4 sm:$0xff]  }
 0x3af   : > { %v11440_v40 = vpop.f32.mrf.mxu1  ;;  %v9940_v41 = vld [vmem:[#allocation16 + $0x514] ss:$8 sps:$4 sm:$0xff]  }
 0x3b0   : > { %6912 = vmatpush2.bf16.msra.mxu1 %v9893_v20  ;;  %v9079_v13 = vpack.c.bf16 %v3968_v44, %v3966_v47  ;;  %v9922_v20 = vld [vmem:[#allocation16 + $0x544] ss:$8 sps:$4 sm:$0xff]   ;;  %v9062_v60 = vpack.c.bf16 %v3981_v14, %v3979_v57  ;;  %v9944_v14 = vld [vmem:[#allocation16 + $0x500] ss:$8 sps:$4 sm:$0xff]   ;;  %v9952_v57 = vld [vmem:[#allocation16 + $0x5f4] ss:$8 sps:$4 sm:$0xff]  }
 0x3b1   : > { %6941 = vmatpush1.bf16.msra.mxu0 %v9896_v35  ;;  %6987 = vmatprep.subr.bf16.mxu1 %v9904_v55  ;;  %v11444_v27 = vpop.f32.mrf.mxu1  ;;  %v9920_v35 = vld [vmem:[#allocation16 + $0x540] ss:$8 sps:$4 sm:$0xff]   ;;  %v11446_v55 = vpop.f32.mrf.mxu0  ;;  %v9946_v44 = vld [vmem:[#allocation16 + $0x504] ss:$8 sps:$4 sm:$0xff]  }
 0x3b2   : > { %6942 = vmatprep.subr.bf16.mxu0 %v9901_v46  ;;  %v9941_v47 = vld [vmem:[#allocation16 + $0x4c0] ss:$8 sps:$4 sm:$0xff]  }
 0x3b3   : > { %6914 = vmatmul.mubr.bf16.vlgmr.msra.gmra.mxu1 %v9057_v7  ;;  %v11448_v46 = vpop.f32.mrf.mxu1  ;;  %v11450_v11 = vpop.f32.mrf.mxu0 }
 0x3b4   : > { %6923 = vmatprep.mubr.bf16.mxu1 %v9080_v30  ;;  %6988 = vmatpush1.bf16.msra.mxu1 %v9902_v16  ;;  %v9931_v16 = vld [vmem:[#allocation16 + $0x4e4] ss:$8 sps:$4 sm:$0xff]   ;;  %v9937_v30 = vld [vmem:[#allocation16 + $0x4d4] ss:$8 sps:$4 sm:$0xff]  }
 0x3b5   : > { %6943 = vmatpush1.bf16.msra.mxu0 %v9899_v22  ;;  %6989 = vmatprep.subr.bf16.mxu1 %v9910_v62  ;;  %v11452_v7 = vpop.f32.mrf.mxu1  ;;  %v11454_v22 = vpop.f32.mrf.mxu0  ;;  %v9929_v62 = vld [vmem:[#allocation16 + $0x4e0] ss:$8 sps:$4 sm:$0xff]  }
 0x3b6   : > { %6944 = vmatprep.subr.bf16.mxu0 %v9907_v19 }
 0x3b7   : > { %v11456_v19 = vpop.f32.mrf.mxu1  ;;  %v11458_v23 = vpop.f32.mrf.mxu0 }
 0x3b8   : > { %6990 = vmatpush1.bf16.msra.mxu1 %v9908_v25  ;;  %v9935_v25 = vld [vmem:[#allocation16 + $0x4d0] ss:$8 sps:$4 sm:$0xff]  }
 0x3b9   : > { %6945 = vmatpush1.bf16.msra.mxu0 %v9905_v29  ;;  %6991 = vmatprep.subr.bf16.mxu1 %v9916_v52  ;;  %v9943_v29 = vld [vmem:[#allocation16 + $0x4c4] ss:$8 sps:$4 sm:$0xff]   ;;  %v11460_v52 = vpop.f32.mrf.mxu1 }
 0x3ba   : > { %6946 = vmatprep.subr.bf16.mxu0 %v9913_v43  ;;  %v11462_v43 = vpop.f32.mrf.mxu0 }
 0x3bb   : > { %6924 = vmatmul.mubr.bf16.gmra.mxu1 %v9079_v13  ;;  %v11464_v13 = vpop.f32.mrf.mxu1 }
 0x3bc   : > { %6992 = vmatpush1.bf16.msra.mxu1 %v9914_v42  ;;  %7019 = vmatprep.mubr.bf16.mxu1 %v9062_v60  ;;  %v9949_v42 = vld [vmem:[#allocation16 + $0x4b4] ss:$8 sps:$4 sm:$0xff]   ;;  %v9947_v60 = vld [vmem:[#allocation16 + $0x4b0] ss:$8 sps:$4 sm:$0xff]  }
 0x3bd   : > { %6947 = vmatpush1.bf16.msra.mxu0 %v9911_v63  ;;  %6993 = vmatprep.subr.bf16.mxu1 %v9922_v20  ;;  %v9950_v63 = vld [vmem:[#allocation16 + $0x5f0] ss:$8 sps:$4 sm:$0xff]   ;;  %v11466_v20 = vpop.f32.mrf.mxu0 }
 0x3be   : > { %6948 = vmatprep.subr.bf16.mxu0 %v9919_v3  ;;  %v9958_v3 = vld [vmem:[#allocation16 + $0x5e4] ss:$8 sps:$4 sm:$0xff]  }
 0x3c0   : > { %6994 = vmatpush1.bf16.msra.mxu1 %v9920_v35  ;;  %v9955_v35 = vld [vmem:[#allocation16 + $0x4a4] ss:$8 sps:$4 sm:$0xff]  }
 0x3c1   : > { %6949 = vmatpush1.bf16.msra.mxu0 %v9917_v5  ;;  %6995 = vmatprep.subr.bf16.mxu1 %v9928_v37  ;;  %v11468_v5 = vpop.f32.mrf.mxu1  ;;  %v3463_v37 = vadd.f32 %v11354_v12, %v11278_v53  ;;  %v3471_v12 = vadd.f32 %v11372_v59, %v11282_v0 }
 0x3c2   : > { %6950 = vmatprep.subr.bf16.mxu0 %v9925_v4  ;;  %v9956_v4 = vld [vmem:[#allocation16 + $0x5e0] ss:$8 sps:$4 sm:$0xff]  }
 0x3c4   : > { %6996 = vmatpush1.bf16.msra.mxu1 %v9926_v54  ;;  %v3475_v54 = vadd.f32 %v11380_v39, %v11282_v0 }
 0x3c5   : > { %6951 = vmatpush2.bf16.msra.mxu0 %v9923_v1  ;;  %6997 = vmatprep.subr.bf16.mxu1 %v9934_v21  ;;  %v11474_v1 = vpop.f32.mrf.mxu0  ;;  %v9953_v21 = vld [vmem:[#allocation16 + $0x4a0] ss:$8 sps:$4 sm:$0xff]  }
 0x3c6   : > { %6952 = vmatprep.subr.bf16.mxu0 %v9931_v16  ;;  %v9964_v16 = vld [vmem:[#allocation16 + $0x5d4] ss:$8 sps:$4 sm:$0xff]  }
 0x3c8   : > { %6998 = vmatpush1.bf16.msra.mxu1 %v9932_v24  ;;  %v3459_v24 = vadd.f32 %v11346_v8, %v11278_v53  ;;  %v9959_v8 = vld [vmem:[#allocation16 + $0x490] ss:$8 sps:$4 sm:$0xff]  }
 0x3c9   : > { %6953 = vmatpush2.bf16.msra.mxu0 %v9929_v62  ;;  %6999 = vmatprep.subr.bf16.mxu1 %v9940_v41  ;;  %v3716_v62 = vadd.f32 %v11375_v61, %v3463_v37  ;;  %v9961_v41 = vld [vmem:[#allocation16 + $0x494] ss:$8 sps:$4 sm:$0xff]   ;;  %v9970_v61 = vld [vmem:[#allocation16 + $0x5c4] ss:$8 sps:$4 sm:$0xff]   ;;  %v3469_v37 = vadd.f32 %v11364_v32, %v11278_v53 }
 0x3ca   : > { %6954 = vmatprep.subr.bf16.mxu0 %v9937_v30  ;;  %v3728_v30 = vadd.f32 %v11401_v2, %v3475_v54  ;;  %v3712_v39 = vadd.f32 %v11360_v36, %v3459_v24  ;;  %v3473_v36 = vadd.f32 %v11378_v6, %v11278_v53  ;;  %v9976_v6 = vld [vmem:[#allocation16 + $0x674] ss:$8 sps:$4 sm:$0xff]  }
 0x3cc   : > { %7000 = vmatpush1.bf16.msra.mxu1 %v9938_v28  ;;  %v11482_v28 = vpop.f32.mrf.mxu1  ;;  %v3889_v59 = vmul.f32 0.1, %v3728_v30  ;;  %v3882_v2 = vmul.f32 0.1, %v3712_v39  ;;  %v3726_v54 = vadd.f32 %v11397_v10, %v3473_v36  ;;  %v9974_v10 = vld [vmem:[#allocation16 + $0x670] ss:$8 sps:$4 sm:$0xff]  }
 0x3cd   : > { %6955 = vmatpush2.bf16.msra.mxu0 %v9935_v25  ;;  %7001 = vmatprep.subr.bf16.mxu1 %v9946_v44  ;;  %v9962_v25 = vld [vmem:[#allocation16 + $0x5d0] ss:$8 sps:$4 sm:$0xff]   ;;  %v3724_v44 = vadd.f32 %v11392_v49, %v3471_v12  ;;  %v3505_v49 = vadd.f32 %v11458_v23, %v11282_v0  ;;  %v3722_v12 = vadd.f32 %v11384_v17, %v3469_v37  ;;  %v9988_v37 = vld [vmem:[#allocation16 + $0x654] ss:$8 sps:$4 sm:$0xff]  }
 0x3ce   : > { %6956 = vmatprep.subr.bf16.mxu0 %v9943_v29  ;;  %v11486_v29 = vpop.f32.mrf.mxu0 }
 0x3cf   : > { %v3758_v23 = vadd.f32 %v11460_v52, %v3505_v49  ;;  %v9982_v52 = vld [vmem:[#allocation16 + $0x664] ss:$8 sps:$4 sm:$0xff]   ;;  %v9985_v49 = vld [vmem:[#allocation16 + $0x594] ss:$8 sps:$4 sm:$0xff]  }
 0x3d0   : > { %7002 = vmatpush1.bf16.msra.mxu1 %v9944_v14  ;;  %v3884_v14 = vmul.f32 0.1, %v3716_v62 }
 0x3d1   : > { %6957 = vmatpush2.bf16.msra.mxu0 %v9941_v47  ;;  %7003 = vmatprep.subr.bf16.mxu1 %v9952_v57  ;;  %v9967_v47 = vld [vmem:[#allocation16 + $0x484] ss:$8 sps:$4 sm:$0xff]   ;;  %v11488_v57 = vpop.f32.mrf.mxu1 }
 0x3d2   : > { %6958 = vmatprep.subr.bf16.mxu0 %v9949_v42  ;;  %v9968_v42 = vld [vmem:[#allocation16 + $0x5c0] ss:$8 sps:$4 sm:$0xff]  }
 0x3d3   : > { %v11502_v24 = vpop.f32.mrf.mxu1 }
 0x3d4   : > { %7004 = vmatpush2.bf16.msra.mxu1 %v9950_v63  ;;  %v3887_v63 = vmul.f32 0.1, %v3724_v44 }
 0x3d5   : > { %6959 = vmatpush2.bf16.msra.mxu0 %v9947_v60  ;;  %7005 = vmatprep.subr.bf16.mxu1 %v9958_v3  ;;  %v11494_v60 = vpop.f32.mrf.mxu0  ;;  %v9965_v3 = vld [vmem:[#allocation16 + $0x480] ss:$8 sps:$4 sm:$0xff]   ;;  %v11510_v17 = vpop.f32.mrf.mxu1 }
 0x3d6   : > { %6960 = vmatprep.subr.bf16.mxu0 %v9955_v35  ;;  %v9973_v35 = vld [vmem:[#allocation16 + $0x5b4] ss:$8 sps:$4 sm:$0xff]  }
 0x3d8   : > { %7006 = vmatpush2.bf16.msra.mxu1 %v9956_v4  ;;  %v3972_v4 = vmax.f32 %v3716_v62, %v3884_v14  ;;  %v11506_v62 = vpop.f32.mrf.mxu0  ;;  %v3901_v14 = vmul.f32 0.1, %v3758_v23 }
 0x3d9   : > { %6961 = vmatpush2.bf16.msra.mxu0 %v9953_v21  ;;  %7007 = vmatprep.subr.bf16.mxu1 %v9964_v16  ;;  %v3977_v21 = vmax.f32 %v3728_v30, %v3889_v59  ;;  %v3501_v16 = vadd.f32 %v11450_v11, %v11282_v0  ;;  %v9979_v11 = vld [vmem:[#allocation16 + $0x5a4] ss:$8 sps:$4 sm:$0xff]   ;;  %v9977_v59 = vld [vmem:[#allocation16 + $0x5a0] ss:$8 sps:$4 sm:$0xff]  }
 0x3da   : > { %6962 = vmatprep.subr.bf16.mxu0 %v9961_v41  ;;  %v3970_v41 = vmax.f32 %v3712_v39, %v3882_v2  ;;  %v3483_v39 = vadd.f32 %v11412_v9, %v11278_v53  ;;  %v3479_v2 = vadd.f32 %v11390_v26, %v11278_v53  ;;  %v9980_v9 = vld [vmem:[#allocation16 + $0x660] ss:$8 sps:$4 sm:$0xff]  }
 0x3db   : > { %v3754_v32 = vadd.f32 %v11452_v7, %v3501_v16  ;;  %v3495_v7 = vadd.f32 %v11442_v58, %v11282_v0  ;;  %v9983_v16 = vld [vmem:[#allocation16 + $0x590] ss:$8 sps:$4 sm:$0xff]  }
 0x3dc   : > { %7008 = vmatpush2.bf16.msra.mxu1 %v9962_v25  ;;  %v9971_v25 = vld [vmem:[#allocation16 + $0x5b0] ss:$8 sps:$4 sm:$0xff]   ;;  %v9059_v30 = vpack.c.bf16 %v3972_v4, %v3970_v41  ;;  %v3736_v36 = vadd.f32 %v11418_v56, %v3483_v39  ;;  %v3732_v26 = vadd.f32 %v11405_v15, %v3479_v2  ;;  %v3989_v4 = vmax.f32 %v3758_v23, %v3901_v14  ;;  %v11523_v56 = vpop.f32.mrf.mxu1 }
 0x3dd   : > { %6963 = vmatpush2.bf16.msra.mxu0 %v9959_v8  ;;  %7009 = vmatprep.subr.bf16.mxu1 %v9970_v61  ;;  %v3975_v8 = vmax.f32 %v3724_v44, %v3887_v63  ;;  %v3888_v61 = vmul.f32 0.1, %v3726_v54  ;;  %v3886_v44 = vmul.f32 0.1, %v3722_v12  ;;  %v11517_v63 = vpop.f32.mrf.mxu0  ;;  %v3748_v58 = vadd.f32 %v11444_v27, %v3495_v7 }
 0x3de   : > { %6964 = vmatprep.subr.bf16.mxu0 %v9967_v47  ;;  %v3892_v41 = vmul.f32 0.1, %v3736_v36  ;;  %v3890_v15 = vmul.f32 0.1, %v3732_v26  ;;  %v3493_v23 = vadd.f32 %v11438_v45, %v11278_v53  ;;  %v10000_v45 = vld [vmem:[#allocation16 + $0x774] ss:$8 sps:$4 sm:$0xff]  }
 0x3df   : > { %v9082_v47 = vpack.c.bf16 %v3977_v21, %v3975_v8  ;;  %v3897_v8 = vmul.f32 0.1, %v3748_v58 }
 0x3e0   : > { %7010 = vmatpush2.bf16.msra.mxu1 %v9968_v42  ;;  %v3899_v42 = vmul.f32 0.1, %v3754_v32  ;;  %v3980_v39 = vmax.f32 %v3736_v36, %v3892_v41  ;;  %v3746_v14 = vadd.f32 %v11440_v40, %v3493_v23 }
 0x3e1   : > { %6965 = vmatpush2.bf16.msra.mxu0 %v9965_v3  ;;  %7011 = vmatprep.subr.bf16.mxu1 %v9973_v35  ;;  %v3976_v3 = vmax.f32 %v3726_v54, %v3888_v61  ;;  %v3491_v35 = vadd.f32 %v11434_v51, %v11282_v0  ;;  %v9986_v51 = vld [vmem:[#allocation16 + $0x650] ss:$8 sps:$4 sm:$0xff]   ;;  %v3985_v7 = vmax.f32 %v3748_v58, %v3897_v8 }
 0x3e2   : > { %7040 = vmatprep.subr.bf16.mxu0 %v9976_v6  ;;  %v3974_v6 = vmax.f32 %v3722_v12, %v3886_v44  ;;  %v3987_v54 = vmax.f32 %v3754_v32, %v3899_v42  ;;  %v3777_v12 = vpop.f32.mrf.mxu1  ;;  %v9989_v32 = vld [vmem:[#allocation16 + $0x580] ss:$8 sps:$4 sm:$0xff]   ;;  %v9997_v42 = vld [vmem:[#allocation16 + $0x634] ss:$8 sps:$4 sm:$0xff]  }
 0x3e3   : > { %v3744_v21 = vadd.f32 %v11436_v50, %v3491_v35  ;;  %v9992_v44 = vld [vmem:[#allocation16 + $0x640] ss:$8 sps:$4 sm:$0xff]  }
 0x3e4   : > { %6967 = vmatmul.mubr.bf16.vlgmr.msra.gmra.mxu0 %v9059_v30  ;;  %7012 = vmatpush2.bf16.msra.mxu1 %v9971_v25  ;;  %v3524_v25 = vpop.f32.mrf.mxu0  ;;  %v9081_v27 = vpack.c.bf16 %v3976_v3, %v3974_v6  ;;  %v9994_v30 = vld [vmem:[#allocation16 + $0x644] ss:$8 sps:$4 sm:$0xff]   ;;  %v9064_v61 = vpack.c.bf16 %v3989_v4, %v3987_v54  ;;  %v11537_v36 = vpop.f32.mrf.mxu1  ;;  %v9998_v3 = vld [vmem:[#allocation16 + $0x770] ss:$8 sps:$4 sm:$0xff]  }
 0x3e5   : > { %6976 = vmatprep.mubr.bf16.mxu0 %v9082_v47  ;;  %7041 = vmatpush1.bf16.msra.mxu0 %v9974_v10  ;;  %v9991_v10 = vld [vmem:[#allocation16 + $0x584] ss:$8 sps:$4 sm:$0xff]   ;;  %v3895_v50 = vmul.f32 0.1, %v3744_v21 }
 0x3e6   : > { %7013 = vmatprep.subr.bf16.mxu1 %v9979_v11  ;;  %7042 = vmatprep.subr.bf16.mxu0 %v9982_v52  ;;  %v3525_v11 = vadd.f32 %v3524_v25, %v11282_v0  ;;  %v3489_v52 = vadd.f32 %v11427_v38, %v11278_v53  ;;  %v11532_v47 = vpop.f32.mrf.mxu0  ;;  %v10006_v4 = vld [vmem:[#allocation16 + $0x764] ss:$8 sps:$4 sm:$0xff]   ;;  %v11542_v41 = vpop.f32.mrf.mxu1 }
 0x3e7   : > { %v3983_v40 = vmax.f32 %v3744_v21, %v3895_v50 }
 0x3e8   : > { %7014 = vmatpush2.bf16.msra.mxu1 %v9977_v59  ;;  %v3521_v59 = vadd.f32 %v11506_v62, %v11282_v0  ;;  %v3778_v2 = vadd.f32 %v3777_v12, %v3525_v11  ;;  %v3742_v38 = vadd.f32 %v11432_v33, %v3489_v52  ;;  %v11540_v58 = vpop.f32.mrf.mxu0  ;;  %v9995_v62 = vld [vmem:[#allocation16 + $0x630] ss:$8 sps:$4 sm:$0xff]  }
 0x3e9   : > { %7043 = vmatpush1.bf16.msra.mxu0 %v9980_v9  ;;  %7015 = vmatprep.subr.bf16.mxu1 %v9985_v49  ;;  %v3978_v9 = vmax.f32 %v3732_v26, %v3890_v15  ;;  %v9084_v26 = vpack.c.bf16 %v3985_v7, %v3983_v40  ;;  %v11546_v15 = vpop.f32.mrf.mxu1  ;;  %v10010_v12 = vld [vmem:[#allocation16 + $0x750] ss:$8 sps:$4 sm:$0xff]   ;;  %v10013_v7 = vld [vmem:[#allocation16 + $0x600] ss:$8 sps:$4 sm:$0xff]  }
 0x3ea   : > { %7044 = vmatprep.subr.bf16.mxu0 %v9988_v37  ;;  %v3774_v49 = vadd.f32 %v11510_v17, %v3521_v59  ;;  %v3896_v37 = vmul.f32 0.1, %v3746_v14  ;;  %v3909_v6 = vmul.f32 0.1, %v3778_v2  ;;  %v3894_v33 = vmul.f32 0.1, %v3742_v38  ;;  %v11544_v25 = vpop.f32.mrf.mxu0 }
 0x3eb   : > { %v9061_v35 = vpack.c.bf16 %v3980_v39, %v3978_v9  ;;  %v10004_v17 = vld [vmem:[#allocation16 + $0x760] ss:$8 sps:$4 sm:$0xff]   ;;  %v10007_v11 = vld [vmem:[#allocation16 + $0x610] ss:$8 sps:$4 sm:$0xff]   ;;  %v10015_v39 = vld [vmem:[#allocation16 + $0x604] ss:$8 sps:$4 sm:$0xff]  }
 0x3ec   : > { %6977 = vmatmul.mubr.bf16.gmra.mxu0 %v9081_v27  ;;  %7016 = vmatpush2.bf16.msra.mxu1 %v9983_v16  ;;  %v10003_v16 = vld [vmem:[#allocation16 + $0x624] ss:$8 sps:$4 sm:$0xff]   ;;  %v3907_v21 = vmul.f32 0.1, %v3774_v49  ;;  %v3984_v54 = vmax.f32 %v3746_v14, %v3896_v37  ;;  %v10012_v27 = vld [vmem:[#allocation16 + $0x754] ss:$8 sps:$4 sm:$0xff]   ;;  %v3997_v8 = vmax.f32 %v3778_v2, %v3909_v6  ;;  %v11548_v50 = vpop.f32.mrf.mxu0  ;;  %v11550_v14 = vpop.f32.mrf.mxu1 }
 0x3ed   : > { %7045 = vmatpush1.bf16.msra.mxu0 %v9986_v51  ;;  %7072 = vmatprep.mubr.bf16.mxu0 %v9064_v61  ;;  %v10001_v51 = vld [vmem:[#allocation16 + $0x620] ss:$8 sps:$4 sm:$0xff]   ;;  %v10024_v59 = vld [vmem:[#allocation16 + $0x734] ss:$8 sps:$4 sm:$0xff]   ;;  %v10022_v9 = vld [vmem:[#allocation16 + $0x730] ss:$8 sps:$4 sm:$0xff]  }
 0x3ee   : > { %7017 = vmatprep.subr.bf16.mxu1 %v9991_v10  ;;  %7046 = vmatprep.subr.bf16.mxu0 %v9994_v30  ;;  %v10009_v10 = vld [vmem:[#allocation16 + $0x614] ss:$8 sps:$4 sm:$0xff]   ;;  %v3982_v30 = vmax.f32 %v3742_v38, %v3894_v33  ;;  %v3995_v23 = vmax.f32 %v3774_v49, %v3907_v21  ;;  %v10019_v40 = vld [vmem:[#allocation16 + $0x6f0] ss:$8 sps:$4 sm:$0xff]   ;;  %v10030_v49 = vld [vmem:[#allocation16 + $0x724] ss:$8 sps:$4 sm:$0xff]  }
 0x3ef   : > { %v10021_v2 = vld [vmem:[#allocation16 + $0x6f4] ss:$8 sps:$4 sm:$0xff]   ;;  %v10028_v37 = vld [vmem:[#allocation16 + $0x720] ss:$8 sps:$4 sm:$0xff]   ;;  %v10034_v33 = vld [vmem:[#allocation16 + $0x710] ss:$8 sps:$4 sm:$0xff]  }
 0x3f0   : > { %7018 = vmatpush2.bf16.msra.mxu1 %v9989_v32  ;;  %v9083_v61 = vpack.c.bf16 %v3984_v54, %v3982_v30  ;;  %v10018_v32 = vld [vmem:[#allocation16 + $0x744] ss:$8 sps:$4 sm:$0xff]   ;;  %v9066_v52 = vpack.c.bf16 %v3997_v8, %v3995_v23  ;;  %v10036_v6 = vld [vmem:[#allocation16 + $0x714] ss:$8 sps:$4 sm:$0xff]   ;;  %v10040_v8 = vld [vmem:[#allocation16 + $0x700] ss:$8 sps:$4 sm:$0xff]  }
 0x3f1   : > { %7047 = vmatpush1.bf16.msra.mxu0 %v9992_v44  ;;  %7093 = vmatprep.subr.bf16.mxu1 %v10000_v45  ;;  %v10016_v44 = vld [vmem:[#allocation16 + $0x740] ss:$8 sps:$4 sm:$0xff]   ;;  %v11552_v45 = vpop.f32.mrf.mxu0  ;;  %v10042_v54 = vld [vmem:[#allocation16 + $0x704] ss:$8 sps:$4 sm:$0xff]   ;;  %v10048_v23 = vld [vmem:[#allocation16 + $0x7f4] ss:$8 sps:$4 sm:$0xff]  }
 0x3f2   : > { %7048 = vmatprep.subr.bf16.mxu0 %v9997_v42  ;;  %v11554_v42 = vpop.f32.mrf.mxu1  ;;  %v10037_v30 = vld [vmem:[#allocation16 + $0x6c0] ss:$8 sps:$4 sm:$0xff]  }
 0x3f3   : > { %7020 = vmatmul.mubr.bf16.vlgmr.msra.gmra.mxu1 %v9061_v35  ;;  %v11556_v38 = vpop.f32.mrf.mxu0 }
 0x3f4   : > { %7029 = vmatprep.mubr.bf16.mxu1 %v9084_v26  ;;  %7094 = vmatpush1.bf16.msra.mxu1 %v9998_v3  ;;  %v10027_v3 = vld [vmem:[#allocation16 + $0x6e4] ss:$8 sps:$4 sm:$0xff]   ;;  %v11558_v35 = vpop.f32.mrf.mxu1  ;;  %v10033_v26 = vld [vmem:[#allocation16 + $0x6d4] ss:$8 sps:$4 sm:$0xff]  }
 0x3f5   : > { %7049 = vmatpush1.bf16.msra.mxu0 %v9995_v62  ;;  %7095 = vmatprep.subr.bf16.mxu1 %v10006_v4  ;;  %v11560_v62 = vpop.f32.mrf.mxu0  ;;  %v10025_v4 = vld [vmem:[#allocation16 + $0x6e0] ss:$8 sps:$4 sm:$0xff]  }
 0x3f6   : > { %7050 = vmatprep.subr.bf16.mxu0 %v10003_v16  ;;  %v11562_v16 = vpop.f32.mrf.mxu1 }
 0x3f7   : > { %v11564_v21 = vpop.f32.mrf.mxu0 }
 0x3f8   : > { %7096 = vmatpush1.bf16.msra.mxu1 %v10004_v17  ;;  %v10031_v17 = vld [vmem:[#allocation16 + $0x6d0] ss:$8 sps:$4 sm:$0xff]  }
 0x3f9   : > { %7051 = vmatpush1.bf16.msra.mxu0 %v10001_v51  ;;  %7097 = vmatprep.subr.bf16.mxu1 %v10012_v27  ;;  %v10039_v51 = vld [vmem:[#allocation16 + $0x6c4] ss:$8 sps:$4 sm:$0xff]   ;;  %v11566_v27 = vpop.f32.mrf.mxu1 }
 0x3fa   : > { %7052 = vmatprep.subr.bf16.mxu0 %v10009_v10  ;;  %v11568_v10 = vpop.f32.mrf.mxu0 }
 0x3fb   : > { %7030 = vmatmul.mubr.bf16.gmra.mxu1 %v9083_v61  ;;  %v11570_v61 = vpop.f32.mrf.mxu1 }
 0x3fc   : > { %7098 = vmatpush1.bf16.msra.mxu1 %v10010_v12  ;;  %7125 = vmatprep.mubr.bf16.mxu1 %v9066_v52  ;;  %v10045_v12 = vld [vmem:[#allocation16 + $0x6b4] ss:$8 sps:$4 sm:$0xff]   ;;  %v10043_v52 = vld [vmem:[#allocation16 + $0x6b0] ss:$8 sps:$4 sm:$0xff]  }
 0x3fd   : > { %7053 = vmatpush1.bf16.msra.mxu0 %v10007_v11  ;;  %7099 = vmatprep.subr.bf16.mxu1 %v10018_v32  ;;  %v10046_v11 = vld [vmem:[#allocation16 + $0x7f0] ss:$8 sps:$4 sm:$0xff]   ;;  %v11572_v32 = vpop.f32.mrf.mxu0 }
 0x3fe   : > { %7054 = vmatprep.subr.bf16.mxu0 %v10015_v39  ;;  %v10054_v39 = vld [vmem:[#allocation16 + $0x7e4] ss:$8 sps:$4 sm:$0xff]  }
 0x400   : > { %7100 = vmatpush1.bf16.msra.mxu1 %v10016_v44  ;;  %v10051_v44 = vld [vmem:[#allocation16 + $0x6a4] ss:$8 sps:$4 sm:$0xff]  }
 0x401   : > { %7055 = vmatpush1.bf16.msra.mxu0 %v10013_v7  ;;  %7101 = vmatprep.subr.bf16.mxu1 %v10024_v59  ;;  %v11574_v7 = vpop.f32.mrf.mxu1  ;;  %v3503_v59 = vadd.f32 %v11454_v22, %v11278_v53  ;;  %v3511_v22 = vadd.f32 %v11466_v20, %v11282_v0 }
 0x402   : > { %7056 = vmatprep.subr.bf16.mxu0 %v10021_v2  ;;  %v10052_v2 = vld [vmem:[#allocation16 + $0x7e0] ss:$8 sps:$4 sm:$0xff]  }
 0x404   : > { %7102 = vmatpush1.bf16.msra.mxu1 %v10022_v9  ;;  %v3515_v9 = vadd.f32 %v11486_v29, %v11282_v0 }
 0x405   : > { %7057 = vmatpush2.bf16.msra.mxu0 %v10019_v40  ;;  %7103 = vmatprep.subr.bf16.mxu1 %v10030_v49  ;;  %v11580_v40 = vpop.f32.mrf.mxu0  ;;  %v10049_v49 = vld [vmem:[#allocation16 + $0x6a0] ss:$8 sps:$4 sm:$0xff]  }
 0x406   : > { %7058 = vmatprep.subr.bf16.mxu0 %v10027_v3  ;;  %v10060_v3 = vld [vmem:[#allocation16 + $0x7d4] ss:$8 sps:$4 sm:$0xff]  }
 0x408   : > { %7104 = vmatpush1.bf16.msra.mxu1 %v10028_v37  ;;  %v3499_v37 = vadd.f32 %v11446_v55, %v11278_v53  ;;  %v10055_v55 = vld [vmem:[#allocation16 + $0x690] ss:$8 sps:$4 sm:$0xff]  }
 0x409   : > { %7059 = vmatpush2.bf16.msra.mxu0 %v10025_v4  ;;  %7105 = vmatprep.subr.bf16.mxu1 %v10036_v6  ;;  %v3756_v4 = vadd.f32 %v11456_v19, %v3503_v59  ;;  %v10057_v6 = vld [vmem:[#allocation16 + $0x694] ss:$8 sps:$4 sm:$0xff]   ;;  %v10066_v19 = vld [vmem:[#allocation16 + $0x7c4] ss:$8 sps:$4 sm:$0xff]   ;;  %v3509_v59 = vadd.f32 %v11462_v43, %v11278_v53 }
 0x40a   : > { %7060 = vmatprep.subr.bf16.mxu0 %v10033_v26  ;;  %v3768_v26 = vadd.f32 %v11488_v57, %v3515_v9  ;;  %v3752_v29 = vadd.f32 %v11448_v46, %v3499_v37  ;;  %v3513_v46 = vadd.f32 %v11474_v1, %v11278_v53  ;;  %v10072_v1 = vld [vmem:[#allocation16 + $0x874] ss:$8 sps:$4 sm:$0xff]  }
 0x40c   : > { %7106 = vmatpush1.bf16.msra.mxu1 %v10034_v33  ;;  %v11588_v33 = vpop.f32.mrf.mxu1  ;;  %v3905_v20 = vmul.f32 0.1, %v3768_v26  ;;  %v3898_v57 = vmul.f32 0.1, %v3752_v29  ;;  %v3766_v9 = vadd.f32 %v11482_v28, %v3513_v46  ;;  %v10070_v28 = vld [vmem:[#allocation16 + $0x870] ss:$8 sps:$4 sm:$0xff]  }
 0x40d   : > { %7061 = vmatpush2.bf16.msra.mxu0 %v10031_v17  ;;  %7107 = vmatprep.subr.bf16.mxu1 %v10042_v54  ;;  %v10058_v17 = vld [vmem:[#allocation16 + $0x7d0] ss:$8 sps:$4 sm:$0xff]   ;;  %v3764_v54 = vadd.f32 %v11468_v5, %v3511_v22  ;;  %v3545_v5 = vadd.f32 %v11564_v21, %v11282_v0  ;;  %v3762_v22 = vadd.f32 %v11464_v13, %v3509_v59  ;;  %v10084_v59 = vld [vmem:[#allocation16 + $0x854] ss:$8 sps:$4 sm:$0xff]  }
 0x40e   : > { %7062 = vmatprep.subr.bf16.mxu0 %v10039_v51  ;;  %v11592_v51 = vpop.f32.mrf.mxu0 }
 0x40f   : > { %v3798_v21 = vadd.f32 %v11566_v27, %v3545_v5  ;;  %v10078_v27 = vld [vmem:[#allocation16 + $0x864] ss:$8 sps:$4 sm:$0xff]   ;;  %v10081_v5 = vld [vmem:[#allocation16 + $0x794] ss:$8 sps:$4 sm:$0xff]  }
 0x410   : > { %7108 = vmatpush1.bf16.msra.mxu1 %v10040_v8  ;;  %v3900_v8 = vmul.f32 0.1, %v3756_v4 }
 0x411   : > { %7063 = vmatpush2.bf16.msra.mxu0 %v10037_v30  ;;  %7109 = vmatprep.subr.bf16.mxu1 %v10048_v23  ;;  %v10063_v30 = vld [vmem:[#allocation16 + $0x684] ss:$8 sps:$4 sm:$0xff]   ;;  %v11594_v23 = vpop.f32.mrf.mxu1 }
 0x412   : > { %7064 = vmatprep.subr.bf16.mxu0 %v10045_v12  ;;  %v10064_v12 = vld [vmem:[#allocation16 + $0x7c0] ss:$8 sps:$4 sm:$0xff]  }
 0x413   : > { %v11608_v37 = vpop.f32.mrf.mxu1 }
 0x414   : > { %7110 = vmatpush2.bf16.msra.mxu1 %v10046_v11  ;;  %v3903_v11 = vmul.f32 0.1, %v3764_v54 }
 0x415   : > { %7065 = vmatpush2.bf16.msra.mxu0 %v10043_v52  ;;  %7111 = vmatprep.subr.bf16.mxu1 %v10054_v39  ;;  %v11600_v52 = vpop.f32.mrf.mxu0  ;;  %v10061_v39 = vld [vmem:[#allocation16 + $0x680] ss:$8 sps:$4 sm:$0xff]   ;;  %v11616_v13 = vpop.f32.mrf.mxu1 }
 0x416   : > { %7066 = vmatprep.subr.bf16.mxu0 %v10051_v44  ;;  %v10069_v44 = vld [vmem:[#allocation16 + $0x7b4] ss:$8 sps:$4 sm:$0xff]  }
 0x418   : > { %7112 = vmatpush2.bf16.msra.mxu1 %v10052_v2  ;;  %v3988_v2 = vmax.f32 %v3756_v4, %v3900_v8  ;;  %v11612_v4 = vpop.f32.mrf.mxu0  ;;  %v3917_v8 = vmul.f32 0.1, %v3798_v21 }
 0x419   : > { %7067 = vmatpush2.bf16.msra.mxu0 %v10049_v49  ;;  %7113 = vmatprep.subr.bf16.mxu1 %v10060_v3  ;;  %v3993_v49 = vmax.f32 %v3768_v26, %v3905_v20  ;;  %v3541_v3 = vadd.f32 %v11556_v38, %v11282_v0  ;;  %v10075_v38 = vld [vmem:[#allocation16 + $0x7a4] ss:$8 sps:$4 sm:$0xff]   ;;  %v10073_v20 = vld [vmem:[#allocation16 + $0x7a0] ss:$8 sps:$4 sm:$0xff]  }
 0x41a   : > { %7068 = vmatprep.subr.bf16.mxu0 %v10057_v6  ;;  %v3986_v6 = vmax.f32 %v3752_v29, %v3898_v57  ;;  %v3523_v29 = vadd.f32 %v11517_v63, %v11278_v53  ;;  %v3519_v57 = vadd.f32 %v11494_v60, %v11278_v53  ;;  %v10076_v63 = vld [vmem:[#allocation16 + $0x860] ss:$8 sps:$4 sm:$0xff]  }
 0x41b   : > { %v3794_v43 = vadd.f32 %v11558_v35, %v3541_v3  ;;  %v3535_v35 = vadd.f32 %v11548_v50, %v11282_v0  ;;  %v10079_v3 = vld [vmem:[#allocation16 + $0x790] ss:$8 sps:$4 sm:$0xff]  }
 0x41c   : > { %7114 = vmatpush2.bf16.msra.mxu1 %v10058_v17  ;;  %v10067_v17 = vld [vmem:[#allocation16 + $0x7b0] ss:$8 sps:$4 sm:$0xff]   ;;  %v9063_v26 = vpack.c.bf16 %v3988_v2, %v3986_v6  ;;  %v3776_v46 = vadd.f32 %v11523_v56, %v3523_v29  ;;  %v3772_v60 = vadd.f32 %v11502_v24, %v3519_v57  ;;  %v4005_v2 = vmax.f32 %v3798_v21, %v3917_v8  ;;  %v11629_v56 = vpop.f32.mrf.mxu1  ;;  %v10093_v57 = vld [vmem:[#allocation16 + $0x834] ss:$8 sps:$4 sm:$0xff]  }
 0x41d   : > { %7069 = vmatpush2.bf16.msra.mxu0 %v10055_v55  ;;  %7115 = vmatprep.subr.bf16.mxu1 %v10066_v19  ;;  %v3991_v55 = vmax.f32 %v3764_v54, %v3903_v11  ;;  %v3904_v19 = vmul.f32 0.1, %v3766_v9  ;;  %v3902_v54 = vmul.f32 0.1, %v3762_v22  ;;  %v11623_v11 = vpop.f32.mrf.mxu0  ;;  %v3788_v50 = vadd.f32 %v11550_v14, %v3535_v35 }
 0x41e   : > { %7070 = vmatprep.subr.bf16.mxu0 %v10063_v30  ;;  %v3908_v6 = vmul.f32 0.1, %v3776_v46  ;;  %v3906_v24 = vmul.f32 0.1, %v3772_v60  ;;  %v3533_v21 = vadd.f32 %v11544_v25, %v11278_v53  ;;  %v3561_v25 = vadd.f32 %v11612_v4, %v11282_v0 }
 0x41f   : > { %v9086_v30 = vpack.c.bf16 %v3993_v49, %v3991_v55  ;;  %v3913_v55 = vmul.f32 0.1, %v3788_v50 }
 0x420   : > { %7116 = vmatpush2.bf16.msra.mxu1 %v10064_v12  ;;  %v3915_v12 = vmul.f32 0.1, %v3794_v43  ;;  %v3996_v29 = vmax.f32 %v3776_v46, %v3908_v6  ;;  %v3786_v8 = vadd.f32 %v11546_v15, %v3533_v21  ;;  %v10094_v15 = vld [vmem:[#allocation16 + $0x970] ss:$8 sps:$4 sm:$0xff]   ;;  %v10111_v21 = vld [vmem:[#allocation16 + $0x804] ss:$8 sps:$4 sm:$0xff]  }
 0x421   : > { %7071 = vmatpush2.bf16.msra.mxu0 %v10061_v39  ;;  %7117 = vmatprep.subr.bf16.mxu1 %v10069_v44  ;;  %v3992_v39 = vmax.f32 %v3766_v9, %v3904_v19  ;;  %v3531_v44 = vadd.f32 %v11540_v58, %v11282_v0  ;;  %v10082_v58 = vld [vmem:[#allocation16 + $0x850] ss:$8 sps:$4 sm:$0xff]   ;;  %v4001_v35 = vmax.f32 %v3788_v50, %v3913_v55  ;;  %v10102_v50 = vld [vmem:[#allocation16 + $0x964] ss:$8 sps:$4 sm:$0xff]  }
 0x422   : > { %7146 = vmatprep.subr.bf16.mxu0 %v10072_v1  ;;  %v3990_v1 = vmax.f32 %v3762_v22, %v3902_v54  ;;  %v4003_v9 = vmax.f32 %v3794_v43, %v3915_v12  ;;  %v3817_v22 = vpop.f32.mrf.mxu1  ;;  %v10085_v43 = vld [vmem:[#allocation16 + $0x780] ss:$8 sps:$4 sm:$0xff]   ;;  %v10096_v54 = vld [vmem:[#allocation16 + $0x974] ss:$8 sps:$4 sm:$0xff]   ;;  %v3994_v12 = vmax.f32 %v3772_v60, %v3906_v24 }
 0x423   : > { %v3784_v49 = vadd.f32 %v11542_v41, %v3531_v44  ;;  %v10091_v44 = vld [vmem:[#allocation16 + $0x830] ss:$8 sps:$4 sm:$0xff]  }
 0x424   : > { %7073 = vmatmul.mubr.bf16.vlgmr.msra.gmra.mxu0 %v9063_v26  ;;  %7118 = vmatpush2.bf16.msra.mxu1 %v10067_v17  ;;  %v3564_v17 = vpop.f32.mrf.mxu0  ;;  %v9085_v14 = vpack.c.bf16 %v3992_v39, %v3990_v1  ;;  %v10090_v26 = vld [vmem:[#allocation16 + $0x844] ss:$8 sps:$4 sm:$0xff]   ;;  %v9068_v19 = vpack.c.bf16 %v4005_v2, %v4003_v9  ;;  %v9065_v46 = vpack.c.bf16 %v3996_v29, %v3994_v12  ;;  %v3912_v39 = vmul.f32 0.1, %v3786_v8  ;;  %v10105_v9 = vld [vmem:[#allocation16 + $0x814] ss:$8 sps:$4 sm:$0xff]  }
 0x425   : > { %7082 = vmatprep.mubr.bf16.mxu0 %v9086_v30  ;;  %7147 = vmatpush1.bf16.msra.mxu0 %v10070_v28  ;;  %v10087_v28 = vld [vmem:[#allocation16 + $0x784] ss:$8 sps:$4 sm:$0xff]   ;;  %v3911_v41 = vmul.f32 0.1, %v3784_v49  ;;  %v10088_v30 = vld [vmem:[#allocation16 + $0x840] ss:$8 sps:$4 sm:$0xff]  }
 0x426   : > { %7119 = vmatprep.subr.bf16.mxu1 %v10075_v38  ;;  %7148 = vmatprep.subr.bf16.mxu0 %v10078_v27  ;;  %v3565_v38 = vadd.f32 %v3564_v17, %v11282_v0  ;;  %v3529_v27 = vadd.f32 %v11532_v47, %v11278_v53  ;;  %v3814_v47 = vadd.f32 %v11616_v13, %v3561_v25  ;;  %v10099_v2 = vld [vmem:[#allocation16 + $0x824] ss:$8 sps:$4 sm:$0xff]   ;;  %v10097_v13 = vld [vmem:[#allocation16 + $0x820] ss:$8 sps:$4 sm:$0xff]   ;;  %v10118_v29 = vld [vmem:[#allocation16 + $0x930] ss:$8 sps:$4 sm:$0xff]  }
 0x427   : > { %v10132_v12 = vld [vmem:[#allocation16 + $0x914] ss:$8 sps:$4 sm:$0xff]  }
 0x428   : > { %7120 = vmatpush2.bf16.msra.mxu1 %v10073_v20  ;;  %v3818_v20 = vadd.f32 %v3817_v22, %v3565_v38  ;;  %v3923_v60 = vmul.f32 0.1, %v3814_v47  ;;  %v10112_v22 = vld [vmem:[#allocation16 + $0x940] ss:$8 sps:$4 sm:$0xff]   ;;  %v11642_v38 = vpop.f32.mrf.mxu0 }
 0x429   : > { %7149 = vmatpush1.bf16.msra.mxu0 %v10076_v63  ;;  %7121 = vmatprep.subr.bf16.mxu1 %v10081_v5  ;;  %v3782_v63 = vadd.f32 %v11537_v36, %v3529_v27  ;;  %v3999_v5 = vmax.f32 %v3784_v49, %v3911_v41  ;;  %v10100_v36 = vld [vmem:[#allocation16 + $0x960] ss:$8 sps:$4 sm:$0xff]   ;;  %v4000_v49 = vmax.f32 %v3786_v8, %v3912_v39  ;;  %v10120_v41 = vld [vmem:[#allocation16 + $0x934] ss:$8 sps:$4 sm:$0xff]   ;;  %v11644_v27 = vpop.f32.mrf.mxu1  ;;  %v10115_v8 = vld [vmem:[#allocation16 + $0x8f0] ss:$8 sps:$4 sm:$0xff]  }
 0x42a   : > { %7150 = vmatprep.subr.bf16.mxu0 %v10084_v59  ;;  %v3925_v59 = vmul.f32 0.1, %v3818_v20  ;;  %v10138_v39 = vld [vmem:[#allocation16 + $0x904] ss:$8 sps:$4 sm:$0xff]  }
 0x42b   : > { %v9088_v4 = vpack.c.bf16 %v4001_v35, %v3999_v5  ;;  %v3910_v1 = vmul.f32 0.1, %v3782_v63  ;;  %v10123_v35 = vld [vmem:[#allocation16 + $0x8e4] ss:$8 sps:$4 sm:$0xff]   ;;  %v11648_v25 = vpop.f32.mrf.mxu1  ;;  %v10129_v5 = vld [vmem:[#allocation16 + $0x8d4] ss:$8 sps:$4 sm:$0xff]  }
 0x42c   : > { %7083 = vmatmul.mubr.bf16.gmra.mxu0 %v9085_v14  ;;  %7122 = vmatpush2.bf16.msra.mxu1 %v10079_v3  ;;  %v10108_v3 = vld [vmem:[#allocation16 + $0x954] ss:$8 sps:$4 sm:$0xff]   ;;  %v4013_v6 = vmax.f32 %v3818_v20, %v3925_v59  ;;  %v10106_v14 = vld [vmem:[#allocation16 + $0x950] ss:$8 sps:$4 sm:$0xff]   ;;  %v10124_v20 = vld [vmem:[#allocation16 + $0x920] ss:$8 sps:$4 sm:$0xff]  }
 0x42d   : > { %7151 = vmatpush1.bf16.msra.mxu0 %v10082_v58  ;;  %7178 = vmatprep.mubr.bf16.mxu0 %v9068_v19  ;;  %v3998_v17 = vmax.f32 %v3782_v63, %v3910_v1  ;;  %v4011_v58 = vmax.f32 %v3814_v47, %v3923_v60  ;;  %v10109_v19 = vld [vmem:[#allocation16 + $0x800] ss:$8 sps:$4 sm:$0xff]   ;;  %v11652_v47 = vpop.f32.mrf.mxu1  ;;  %v10144_v1 = vld [vmem:[#allocation16 + $0x9f4] ss:$8 sps:$4 sm:$0xff]  }
 0x42e   : > { %7123 = vmatprep.subr.bf16.mxu1 %v10087_v28  ;;  %7152 = vmatprep.subr.bf16.mxu0 %v10090_v26  ;;  %v10103_v28 = vld [vmem:[#allocation16 + $0x810] ss:$8 sps:$4 sm:$0xff]   ;;  %v10114_v26 = vld [vmem:[#allocation16 + $0x944] ss:$8 sps:$4 sm:$0xff]  }
 0x42f   : > { %v9087_v55 = vpack.c.bf16 %v4000_v49, %v3998_v17  ;;  %v9070_v24 = vpack.c.bf16 %v4013_v6, %v4011_v58  ;;  %v11656_v59 = vpop.f32.mrf.mxu1  ;;  %v10150_v6 = vld [vmem:[#allocation16 + $0x9e4] ss:$8 sps:$4 sm:$0xff]   ;;  %v3543_v58 = vadd.f32 %v11560_v62, %v11278_v53  ;;  %v3551_v62 = vadd.f32 %v11572_v32, %v11282_v0 }
 0x430   : > { %7124 = vmatpush2.bf16.msra.mxu1 %v10085_v43  ;;  %v10117_v43 = vld [vmem:[#allocation16 + $0x8f4] ss:$8 sps:$4 sm:$0xff]   ;;  %v10147_v17 = vld [vmem:[#allocation16 + $0x8a4] ss:$8 sps:$4 sm:$0xff]  }
 0x431   : > { %7153 = vmatpush1.bf16.msra.mxu0 %v10088_v30  ;;  %7199 = vmatprep.subr.bf16.mxu1 %v10096_v54  ;;  %v10126_v30 = vld [vmem:[#allocation16 + $0x924] ss:$8 sps:$4 sm:$0xff]   ;;  %v11646_v54 = vpop.f32.mrf.mxu0  ;;  %v11660_v49 = vpop.f32.mrf.mxu1 }
 0x432   : > { %7154 = vmatprep.subr.bf16.mxu0 %v10093_v57  ;;  %v10121_v57 = vld [vmem:[#allocation16 + $0x8e0] ss:$8 sps:$4 sm:$0xff]  }
 0x433   : > { %7126 = vmatmul.mubr.bf16.vlgmr.msra.gmra.mxu1 %v9065_v46  ;;  %v11650_v63 = vpop.f32.mrf.mxu0  ;;  %v10127_v46 = vld [vmem:[#allocation16 + $0x8d0] ss:$8 sps:$4 sm:$0xff]  }
 0x434   : > { %7135 = vmatprep.mubr.bf16.mxu1 %v9088_v4  ;;  %7200 = vmatpush1.bf16.msra.mxu1 %v10094_v15  ;;  %v10130_v15 = vld [vmem:[#allocation16 + $0x910] ss:$8 sps:$4 sm:$0xff]   ;;  %v10136_v4 = vld [vmem:[#allocation16 + $0x900] ss:$8 sps:$4 sm:$0xff]  }
 0x435   : > { %7155 = vmatpush1.bf16.msra.mxu0 %v10091_v44  ;;  %7201 = vmatprep.subr.bf16.mxu1 %v10102_v50  ;;  %v11654_v44 = vpop.f32.mrf.mxu0  ;;  %v10135_v50 = vld [vmem:[#allocation16 + $0x8c4] ss:$8 sps:$4 sm:$0xff]  }
 0x436   : > { %7156 = vmatprep.subr.bf16.mxu0 %v10099_v2  ;;  %v10133_v2 = vld [vmem:[#allocation16 + $0x8c0] ss:$8 sps:$4 sm:$0xff]  }
 0x437   : > { %v11658_v60 = vpop.f32.mrf.mxu0 }
 0x438   : > { %7202 = vmatpush1.bf16.msra.mxu1 %v10100_v36  ;;  %v10141_v36 = vld [vmem:[#allocation16 + $0x8b4] ss:$8 sps:$4 sm:$0xff]  }
 0x439   : > { %7157 = vmatpush1.bf16.msra.mxu0 %v10097_v13  ;;  %7203 = vmatprep.subr.bf16.mxu1 %v10108_v3  ;;  %v10142_v13 = vld [vmem:[#allocation16 + $0x9f0] ss:$8 sps:$4 sm:$0xff]  }
 0x43a   : > { %7158 = vmatprep.subr.bf16.mxu0 %v10105_v9  ;;  %v10139_v3 = vld [vmem:[#allocation16 + $0x8b0] ss:$8 sps:$4 sm:$0xff]   ;;  %v3580_v9 = vpop.f32.mrf.mxu0 }
 0x43b   : > { %7136 = vmatmul.mubr.bf16.gmra.mxu1 %v9087_v55  ;;  %v10148_v55 = vld [vmem:[#allocation16 + $0x9e0] ss:$8 sps:$4 sm:$0xff]  }
 0x43c   : > { %7204 = vmatpush1.bf16.msra.mxu1 %v10106_v14  ;;  %7231 = vmatprep.mubr.bf16.mxu1 %v9070_v24  ;;  %v3833_v14 = vpop.f32.mrf.mxu1  ;;  %v10156_v24 = vld [vmem:[#allocation16 + $0x9d4] ss:$8 sps:$4 sm:$0xff]  }
 0x43d   : > { %7159 = vmatpush1.bf16.msra.mxu0 %v10103_v28  ;;  %7205 = vmatprep.subr.bf16.mxu1 %v10114_v26  ;;  %v3555_v28 = vadd.f32 %v11592_v51, %v11282_v0  ;;  %v10145_v26 = vld [vmem:[#allocation16 + $0x8a0] ss:$8 sps:$4 sm:$0xff]  }
 0x43e   : > { %7160 = vmatprep.subr.bf16.mxu0 %v10111_v21  ;;  %v3539_v21 = vadd.f32 %v11552_v45, %v11278_v53  ;;  %v10151_v45 = vld [vmem:[#allocation16 + $0x890] ss:$8 sps:$4 sm:$0xff]  }
 0x440   : > { %7206 = vmatpush1.bf16.msra.mxu1 %v10112_v22  ;;  %v3796_v22 = vadd.f32 %v11562_v16, %v3543_v58  ;;  %v3792_v51 = vadd.f32 %v11554_v42, %v3539_v21  ;;  %v10162_v16 = vld [vmem:[#allocation16 + $0x9c4] ss:$8 sps:$4 sm:$0xff]   ;;  %v3563_v21 = vadd.f32 %v11623_v11, %v11278_v53 }
 0x441   : > { %7161 = vmatpush1.bf16.msra.mxu0 %v10109_v19  ;;  %7207 = vmatprep.subr.bf16.mxu1 %v10120_v41  ;;  %v11669_v19 = vpop.f32.mrf.mxu0  ;;  %v10153_v41 = vld [vmem:[#allocation16 + $0x894] ss:$8 sps:$4 sm:$0xff]  }
 0x442   : > { %7162 = vmatprep.subr.bf16.mxu0 %v10117_v43  ;;  %v3808_v43 = vadd.f32 %v11594_v23, %v3555_v28  ;;  %v3914_v32 = vmul.f32 0.1, %v3792_v51  ;;  %v3553_v23 = vadd.f32 %v11580_v40, %v11278_v53  ;;  %v3581_v40 = vadd.f32 %v3580_v9, %v11282_v0  ;;  %v10166_v28 = vld [vmem:[#allocation16 + $0xa70] ss:$8 sps:$4 sm:$0xff]  }
 0x444   : > { %7208 = vmatpush1.bf16.msra.mxu1 %v10118_v29  ;;  %v11675_v29 = vpop.f32.mrf.mxu1 }
 0x445   : > { %7163 = vmatpush2.bf16.msra.mxu0 %v10115_v8  ;;  %7209 = vmatprep.subr.bf16.mxu1 %v10126_v30  ;;  %v10154_v8 = vld [vmem:[#allocation16 + $0x9d0] ss:$8 sps:$4 sm:$0xff]   ;;  %v3804_v30 = vadd.f32 %v11574_v7, %v3551_v62  ;;  %v10157_v7 = vld [vmem:[#allocation16 + $0x880] ss:$8 sps:$4 sm:$0xff]   ;;  %v3559_v62 = vadd.f32 %v11600_v52, %v11278_v53 }
 0x446   : > { %7164 = vmatprep.subr.bf16.mxu0 %v10123_v35  ;;  %v3916_v35 = vmul.f32 0.1, %v3796_v22  ;;  %v3837_v42 = vpop.f32.mrf.mxu1 }
 0x448   : > { %7210 = vmatpush1.bf16.msra.mxu1 %v10124_v20  ;;  %v3584_v20 = vpop.f32.mrf.mxu0 }
 0x449   : > { %7165 = vmatpush2.bf16.msra.mxu0 %v10121_v57  ;;  %7211 = vmatprep.subr.bf16.mxu1 %v10132_v12  ;;  %v10159_v57 = vld [vmem:[#allocation16 + $0x884] ss:$8 sps:$4 sm:$0xff]   ;;  %v3921_v12 = vmul.f32 0.1, %v3808_v43 }
 0x44a   : > { %7166 = vmatprep.subr.bf16.mxu0 %v10129_v5  ;;  %v10160_v5 = vld [vmem:[#allocation16 + $0x9c0] ss:$8 sps:$4 sm:$0xff]  }
 0x44c   : > { %7212 = vmatpush1.bf16.msra.mxu1 %v10130_v15  ;;  %v3919_v15 = vmul.f32 0.1, %v3804_v30 }
 0x44d   : > { %7167 = vmatpush2.bf16.msra.mxu0 %v10127_v46  ;;  %7213 = vmatprep.subr.bf16.mxu1 %v10138_v39  ;;  %v3585_v46 = vadd.f32 %v3584_v20, %v11282_v0  ;;  %v10165_v39 = vld [vmem:[#allocation16 + $0x9b4] ss:$8 sps:$4 sm:$0xff]  }
 0x44e   : > { %7168 = vmatprep.subr.bf16.mxu0 %v10135_v50  ;;  %v3549_v50 = vadd.f32 %v11568_v10, %v11278_v53  ;;  %v4007_v58 = vmax.f32 %v3804_v30, %v3919_v15  ;;  %v10177_v30 = vld [vmem:[#allocation16 + $0x994] ss:$8 sps:$4 sm:$0xff]  }
 0x450   : > { %7214 = vmatpush1.bf16.msra.mxu1 %v10136_v4  ;;  %v4004_v4 = vmax.f32 %v3796_v22, %v3916_v35  ;;  %v3812_v35 = vadd.f32 %v11608_v37, %v3559_v62  ;;  %v3573_v37 = vadd.f32 %v11650_v63, %v11278_v53  ;;  %v10207_v62 = vld [vmem:[#allocation16 + $0xad4] ss:$8 sps:$4 sm:$0xff]  }
 0x451   : > { %7169 = vmatpush2.bf16.msra.mxu0 %v10133_v2  ;;  %7215 = vmatprep.subr.bf16.mxu1 %v10144_v1  ;;  %v3806_v2 = vadd.f32 %v11588_v33, %v3553_v23  ;;  %v10168_v1 = vld [vmem:[#allocation16 + $0xa74] ss:$8 sps:$4 sm:$0xff]   ;;  %v10171_v33 = vld [vmem:[#allocation16 + $0x9a4] ss:$8 sps:$4 sm:$0xff]   ;;  %v10178_v23 = vld [vmem:[#allocation16 + $0xa50] ss:$8 sps:$4 sm:$0xff]  }
 0x452   : > { %7170 = vmatprep.subr.bf16.mxu0 %v10141_v36  ;;  %v4009_v36 = vmax.f32 %v3808_v43, %v3921_v12  ;;  %v3816_v43 = vadd.f32 %v11629_v56, %v3563_v21  ;;  %v3922_v15 = vmul.f32 0.1, %v3812_v35  ;;  %v10196_v21 = vld [vmem:[#allocation16 + $0xa00] ss:$8 sps:$4 sm:$0xff]  }
 0x454   : > { %7216 = vmatpush2.bf16.msra.mxu1 %v10142_v13  ;;  %v3838_v13 = vadd.f32 %v3837_v42, %v3585_v46  ;;  %v9090_v22 = vpack.c.bf16 %v4009_v36, %v4007_v58  ;;  %v3924_v12 = vmul.f32 0.1, %v3816_v43  ;;  %v10189_v36 = vld [vmem:[#allocation16 + $0xa34] ss:$8 sps:$4 sm:$0xff]   ;;  %v10192_v58 = vld [vmem:[#allocation16 + $0xa24] ss:$8 sps:$4 sm:$0xff]  }
 0x455   : > { %7171 = vmatpush2.bf16.msra.mxu0 %v10139_v3  ;;  %7217 = vmatprep.subr.bf16.mxu1 %v10150_v6  ;;  %v4002_v3 = vmax.f32 %v3792_v51, %v3914_v32  ;;  %v3802_v6 = vadd.f32 %v11570_v61, %v3549_v50  ;;  %v3575_v61 = vadd.f32 %v11654_v44, %v11282_v0  ;;  %v10180_v44 = vld [vmem:[#allocation16 + $0xa54] ss:$8 sps:$4 sm:$0xff]  }
 0x456   : > { %7172 = vmatprep.subr.bf16.mxu0 %v10147_v17  ;;  %v10163_v17 = vld [vmem:[#allocation16 + $0x9b0] ss:$8 sps:$4 sm:$0xff]   ;;  %v3933_v9 = vmul.f32 0.1, %v3838_v13  ;;  %v4012_v50 = vmax.f32 %v3816_v43, %v3924_v12  ;;  %v3841_v43 = vpop.f32.mrf.mxu1 }
 0x457   : > { %v9067_v10 = vpack.c.bf16 %v4004_v4, %v4002_v3  ;;  %v3826_v4 = vadd.f32 %v11652_v47, %v3573_v37 }
 0x458   : > { %7218 = vmatpush2.bf16.msra.mxu1 %v10148_v55  ;;  %v3834_v55 = vadd.f32 %v3833_v14, %v3581_v40  ;;  %v10169_v14 = vld [vmem:[#allocation16 + $0x9a0] ss:$8 sps:$4 sm:$0xff]   ;;  %v4021_v20 = vmax.f32 %v3838_v13, %v3933_v9  ;;  %v4010_v40 = vmax.f32 %v3812_v35, %v3922_v15  ;;  %v10201_v9 = vld [vmem:[#allocation16 + $0xaf4] ss:$8 sps:$4 sm:$0xff]  }
 0x459   : > { %7173 = vmatpush2.bf16.msra.mxu0 %v10145_v26  ;;  %7219 = vmatprep.subr.bf16.mxu1 %v10156_v24  ;;  %v3920_v26 = vmul.f32 0.1, %v3806_v2  ;;  %v10174_v24 = vld [vmem:[#allocation16 + $0xa64] ss:$8 sps:$4 sm:$0xff]  }
 0x45a   : > { %7174 = vmatprep.subr.bf16.mxu0 %v10153_v41  ;;  %v3918_v41 = vmul.f32 0.1, %v3802_v6  ;;  %v3931_v51 = vmul.f32 0.1, %v3834_v55  ;;  %v9069_v3 = vpack.c.bf16 %v4012_v50, %v4010_v40 }
 0x45b   : > { %v4008_v11 = vmax.f32 %v3806_v2, %v3920_v26  ;;  %v10184_v2 = vld [vmem:[#allocation16 + $0xa40] ss:$8 sps:$4 sm:$0xff]  }
 0x45c   : > { %7220 = vmatpush2.bf16.msra.mxu1 %v10154_v8  ;;  %v10172_v8 = vld [vmem:[#allocation16 + $0xa60] ss:$8 sps:$4 sm:$0xff]   ;;  %v4006_v52 = vmax.f32 %v3802_v6, %v3918_v41  ;;  %v4019_v32 = vmax.f32 %v3834_v55, %v3931_v51  ;;  %v3928_v6 = vmul.f32 0.1, %v3826_v4  ;;  %v10204_v41 = vld [vmem:[#allocation16 + $0xae4] ss:$8 sps:$4 sm:$0xff]  }
 0x45d   : > { %7175 = vmatpush2.bf16.msra.mxu0 %v10151_v45  ;;  %7221 = vmatprep.subr.bf16.mxu1 %v10162_v16  ;;  %v3571_v45 = vadd.f32 %v11646_v54, %v11282_v0  ;;  %v3828_v16 = vadd.f32 %v11656_v59, %v3575_v61  ;;  %v10183_v59 = vld [vmem:[#allocation16 + $0x984] ss:$8 sps:$4 sm:$0xff]   ;;  %v10202_v61 = vld [vmem:[#allocation16 + $0xae0] ss:$8 sps:$4 sm:$0xff]   ;;  %v10205_v51 = vld [vmem:[#allocation16 + $0xad0] ss:$8 sps:$4 sm:$0xff]  }
 0x45e   : > { %7176 = vmatprep.subr.bf16.mxu0 %v10159_v57  ;;  %v10175_v57 = vld [vmem:[#allocation16 + $0x990] ss:$8 sps:$4 sm:$0xff]   ;;  %v9089_v42 = vpack.c.bf16 %v4008_v11, %v4006_v52  ;;  %v9072_v46 = vpack.c.bf16 %v4021_v20, %v4019_v32  ;;  %v4016_v55 = vmax.f32 %v3826_v4, %v3928_v6  ;;  %v3843_v11 = vpop.f32.mrf.mxu1 }
 0x45f   : > { %v3824_v56 = vadd.f32 %v11648_v25, %v3571_v45  ;;  %v3929_v54 = vmul.f32 0.1, %v3828_v16  ;;  %v10181_v25 = vld [vmem:[#allocation16 + $0x980] ss:$8 sps:$4 sm:$0xff]   ;;  %v10211_v20 = vld [vmem:[#allocation16 + $0xab0] ss:$8 sps:$4 sm:$0xff]  }
 0x460   : > { %7222 = vmatpush2.bf16.msra.mxu1 %v10160_v5  ;;  %v10186_v5 = vld [vmem:[#allocation16 + $0xa44] ss:$8 sps:$4 sm:$0xff]   ;;  %v10208_v45 = vld [vmem:[#allocation16 + $0xac0] ss:$8 sps:$4 sm:$0xff]   ;;  %v3845_v35 = vpop.f32.mrf.mxu1 }
 0x461   : > { %7177 = vmatpush2.bf16.msra.mxu0 %v10157_v7  ;;  %7223 = vmatprep.subr.bf16.mxu1 %v10165_v39  ;;  %v3927_v7 = vmul.f32 0.1, %v3824_v56  ;;  %v3569_v39 = vadd.f32 %v11642_v38, %v11278_v53 }
 0x462   : > { %7252 = vmatprep.subr.bf16.mxu0 %v10168_v1  ;;  %v4017_v1 = vmax.f32 %v3828_v16, %v3929_v54  ;;  %v3847_v12 = vpop.f32.mrf.mxu1 }
 0x463   : > { %v3822_v63 = vadd.f32 %v11644_v27, %v3569_v39  ;;  %v4015_v13 = vmax.f32 %v3824_v56, %v3927_v7  ;;  %v10193_v27 = vld [vmem:[#allocation16 + $0xa10] ss:$8 sps:$4 sm:$0xff]   ;;  %v10216_v56 = vld [vmem:[#allocation16 + $0xaa4] ss:$8 sps:$4 sm:$0xff]  }
 0x464   : > { %7179 = vmatmul.mubr.bf16.vlgmr.msra.gmra.mxu0 %v9067_v10  ;;  %7224 = vmatpush2.bf16.msra.mxu1 %v10163_v17  ;;  %v10187_v17 = vld [vmem:[#allocation16 + $0xa30] ss:$8 sps:$4 sm:$0xff]   ;;  %v10195_v10 = vld [vmem:[#allocation16 + $0xa14] ss:$8 sps:$4 sm:$0xff]  }
 0x465   : > { %7188 = vmatprep.mubr.bf16.mxu0 %v9090_v22  ;;  %7253 = vmatpush1.bf16.msra.mxu0 %v10166_v28  ;;  %v9092_v38 = vpack.c.bf16 %v4017_v1, %v4015_v13  ;;  %v3926_v47 = vmul.f32 0.1, %v3822_v63  ;;  %v10190_v28 = vld [vmem:[#allocation16 + $0xa20] ss:$8 sps:$4 sm:$0xff]   ;;  %v10199_v22 = vld [vmem:[#allocation16 + $0xaf0] ss:$8 sps:$4 sm:$0xff]  }
 0x466   : > { %7225 = vmatprep.subr.bf16.mxu1 %v10171_v33  ;;  %7254 = vmatprep.subr.bf16.mxu0 %v10174_v24  ;;  %v10198_v24 = vld [vmem:[#allocation16 + $0xa04] ss:$8 sps:$4 sm:$0xff]  }
 0x467   : > { %v4014_v26 = vmax.f32 %v3822_v63, %v3926_v47 }
 0x468   : > { %7226 = vmatpush2.bf16.msra.mxu1 %v10169_v14  ;;  %v3588_v14 = vpop.f32.mrf.mxu0 }
 0x469   : > { %7255 = vmatpush1.bf16.msra.mxu0 %v10172_v8  ;;  %7227 = vmatprep.subr.bf16.mxu1 %v10177_v30  ;;  %v9091_v33 = vpack.c.bf16 %v4016_v55, %v4014_v26  ;;  %v10210_v30 = vld [vmem:[#allocation16 + $0xac4] ss:$8 sps:$4 sm:$0xff]   ;;  %v10223_v55 = vld [vmem:[#allocation19 + $0x78] sm:$0xff]  }
 0x46a   : > { %7256 = vmatprep.subr.bf16.mxu0 %v10180_v44  ;;  %v3590_v8 = vpop.f32.mrf.mxu0  ;;  %v10213_v44 = vld [vmem:[#allocation16 + $0xab4] ss:$8 sps:$4 sm:$0xff]   ;;  %v10227_v26 = vld [vmem:[#allocation19 + $0x68] sm:$0xff]  }
 0x46c   : > { %7189 = vmatmul.mubr.bf16.gmra.mxu0 %v9089_v42  ;;  %7228 = vmatpush2.bf16.msra.mxu1 %v10175_v57  ;;  %v3592_v16 = vpop.f32.mrf.mxu0  ;;  %v3583_v57 = vadd.f32 %v11669_v19, %v11278_v53  ;;  %v3579_v42 = vadd.f32 %v11658_v60, %v11278_v53  ;;  %v10217_v19 = vld [vmem:[#allocation16 + $0xa90] ss:$8 sps:$4 sm:$0xff]  }
 0x46d   : > { %7257 = vmatpush1.bf16.msra.mxu0 %v10178_v23  ;;  %7284 = vmatprep.mubr.bf16.mxu0 %v9072_v46  ;;  %v10214_v23 = vld [vmem:[#allocation16 + $0xaa0] ss:$8 sps:$4 sm:$0xff]   ;;  %v3593_v4 = vadd.f32 %v3592_v16, %v11278_v53 }
 0x46e   : > { %7229 = vmatprep.subr.bf16.mxu1 %v10183_v59  ;;  %7258 = vmatprep.subr.bf16.mxu0 %v10186_v5  ;;  %v3594_v52 = vpop.f32.mrf.mxu0  ;;  %v3836_v54 = vadd.f32 %v11675_v29, %v3583_v57  ;;  %v10219_v59 = vld [vmem:[#allocation16 + $0xa94] ss:$8 sps:$4 sm:$0xff]   ;;  %v3591_v5 = vadd.f32 %v3590_v8, %v11282_v0  ;;  %v3832_v37 = vadd.f32 %v11660_v49, %v3579_v42  ;;  %v10220_v29 = vld [vmem:[#allocation16 + $0xa80] ss:$8 sps:$4 sm:$0xff]  }
 0x46f   : > { %v3595_v32 = vadd.f32 %v3594_v52, %v11282_v0  ;;  %v3846_v0 = vadd.f32 %v3845_v35, %v3593_v4  ;;  %v10235_v35 = vld [vmem:[#allocation19 + $0x48] sm:$0xff]  }
 0x470   : > { %7230 = vmatpush2.bf16.msra.mxu1 %v10181_v25  ;;  %v3844_v46 = vadd.f32 %v3843_v11, %v3591_v5  ;;  %v3932_v7 = vmul.f32 0.1, %v3836_v54  ;;  %v10222_v25 = vld [vmem:[#allocation16 + $0xa84] ss:$8 sps:$4 sm:$0xff]   ;;  %v3930_v50 = vmul.f32 0.1, %v3832_v37 }
 0x471   : > { %7259 = vmatpush1.bf16.msra.mxu0 %v10184_v2  ;;  %v3848_v15 = vadd.f32 %v3847_v12, %v3595_v32  ;;  %v3589_v2 = vadd.f32 %v3588_v14, %v11278_v53  ;;  %v10224_v53 = vld [vmem:[#allocation19 + $0x38] sm:$0xff]   ;;  %9149 = vmatprep.subr.bf16.mxu1 %v10223_v55  ;;  %v10233_v11 = vld [vmem:[#allocation19 + $0x50] sm:$0xff]   ;;  %v10237_v12 = vld [vmem:[#allocation19 + $0x40] sm:$0xff]  }
 0x472   : > { %7260 = vmatprep.subr.bf16.mxu0 %v10189_v36  ;;  %v3935_v60 = vmul.f32 0.1, %v3844_v46  ;;  %v4020_v1 = vmax.f32 %v3836_v54, %v3932_v7  ;;  %v4018_v49 = vmax.f32 %v3832_v37, %v3930_v50  ;;  %v10238_v32 = vld [vmem:[#allocation19] sm:$0xff]  }
 0x473   : > { %7232 = vmatmul.mubr.bf16.vlgmr.msra.gmra.mxu1 %v9069_v3  ;;  %v3937_v39 = vmul.f32 0.1, %v3848_v15  ;;  %v3842_v40 = vadd.f32 %v3841_v43, %v3589_v2  ;;  %v3936_v3 = vmul.f32 0.1, %v3846_v0 }
 0x474   : > { %7241 = vmatprep.mubr.bf16.mxu1 %v9092_v38  ;;  %v4023_v63 = vmax.f32 %v3844_v46, %v3935_v60  ;;  %v9071_v13 = vpack.c.bf16 %v4020_v1, %v4018_v49  ;;  %9150 = vmatpush3.bf16.msra.mxu1 %v10224_v53  ;;  %v10239_v46 = vld [vmem:[#allocation22 + $0x38] sm:$0xff]  }
 0x475   : > { %7261 = vmatpush1.bf16.msra.mxu0 %v10187_v17  ;;  %v4025_v36 = vmax.f32 %v3848_v15, %v3937_v39  ;;  %v3934_v17 = vmul.f32 0.1, %v3842_v40  ;;  %v4024_v38 = vmax.f32 %v3846_v0, %v3936_v3  ;;  %v10241_v39 = vld [vmem:[#allocation22 + $0x28] sm:$0xff]  }
 0x476   : > { %7262 = vmatprep.subr.bf16.mxu0 %v10192_v58 }
 0x477   : > { %v9094_v6 = vpack.c.bf16 %v4025_v36, %v4023_v63  ;;  %v4022_v58 = vmax.f32 %v3842_v40, %v3934_v17 }
 0x479   : > { %7263 = vmatpush1.bf16.msra.mxu0 %v10190_v28  ;;  %v9093_v47 = vpack.c.bf16 %v4024_v38, %v4022_v58  ;;  %v10225_v28 = vld [vmem:[#allocation19 + $0x70] sm:$0xff]  }
 0x47a   : > { %7264 = vmatprep.subr.bf16.mxu0 %v10195_v10  ;;  %v10226_v10 = vld [vmem:[#allocation19 + $0x30] sm:$0xff]   ;;  %9151 = vmatprep.subr.bf16.mxu1 %v10225_v28 }
 0x47b   : > { %7242 = vmatmul.mubr.bf16.gmra.mxu1 %v9091_v33  ;;  %v10228_v33 = vld [vmem:[#allocation19 + $0x28] sm:$0xff]  }
 0x47c   : > { %9152 = vmatpush3.bf16.msra.mxu1 %v10226_v10 }
 0x47d   : > { %7265 = vmatpush1.bf16.msra.mxu0 %v10193_v27  ;;  %9153 = vmatprep.subr.bf16.mxu1 %v10227_v26  ;;  %v10229_v27 = vld [vmem:[#allocation19 + $0x60] sm:$0xff]  }
 0x47e   : > { %7266 = vmatprep.subr.bf16.mxu0 %v10198_v24  ;;  %v10230_v24 = vld [vmem:[#allocation19 + $0x20] sm:$0xff]  }
 0x480   : > { %9154 = vmatpush3.bf16.msra.mxu1 %v10228_v33 }
 0x481   : > { %7267 = vmatpush1.bf16.msra.mxu0 %v10196_v21  ;;  %v11714_v21 = vpop.f32.mrf.mxu0  ;;  %9155 = vmatprep.subr.bf16.mxu1 %v10229_v27 }
 0x482   : > { %7268 = vmatprep.subr.bf16.mxu0 %v10201_v9  ;;  %v10231_v9 = vld [vmem:[#allocation19 + $0x58] sm:$0xff]  }
 0x484   : > { %9156 = vmatpush3.bf16.msra.mxu1 %v10230_v24 }
 0x485   : > { %7269 = vmatpush2.bf16.msra.mxu0 %v10199_v22  ;;  %v10232_v22 = vld [vmem:[#allocation19 + $0x18] sm:$0xff]   ;;  %9157 = vmatprep.subr.bf16.mxu1 %v10231_v9 }
 0x486   : > { %7270 = vmatprep.subr.bf16.mxu0 %v10204_v41  ;;  %v11716_v41 = vpop.f32.mrf.mxu0 }
 0x488   : > { %9158 = vmatpush3.bf16.msra.mxu1 %v10232_v22 }
 0x489   : > { %7271 = vmatpush2.bf16.msra.mxu0 %v10202_v61  ;;  %v11718_v61 = vpop.f32.mrf.mxu0  ;;  %9159 = vmatprep.subr.bf16.mxu1 %v10233_v11 }
 0x48a   : > { %7272 = vmatprep.subr.bf16.mxu0 %v10207_v62  ;;  %v11722_v62 = vpop.f32.mrf.mxu1 }
 0x48b   : > { %v11720_v14 = vpop.f32.mrf.mxu0 }
 0x48d   : > { %7273 = vmatpush2.bf16.msra.mxu0 %v10205_v51  ;;  %v11724_v43 = vpop.f32.mrf.mxu0  ;;  %v11726_v51 = vpop.f32.mrf.mxu1 }
 0x48e   : > { %7274 = vmatprep.subr.bf16.mxu0 %v10210_v30 }
 0x48f   : > { %v11728_v8 = vpop.f32.mrf.mxu0  ;;  %v11730_v30 = vpop.f32.mrf.mxu1 }
 0x491   : > { %7275 = vmatpush2.bf16.msra.mxu0 %v10208_v45  ;;  %v10234_v45 = vld [vmem:[#allocation19 + $0x10] sm:$0xff]   ;;  %v11732_v16 = vpop.f32.mrf.mxu0 }
 0x492   : > { %7276 = vmatprep.subr.bf16.mxu0 %v10213_v44  ;;  %v11734_v44 = vpop.f32.mrf.mxu1  ;;  %9160 = vmatpush3.bf16.msra.mxu1 %v10234_v45 }
 0x493   : > { %v11736_v52 = vpop.f32.mrf.mxu0  ;;  %9161 = vmatprep.subr.bf16.mxu1 %v10235_v35 }
 0x495   : > { %7277 = vmatpush2.bf16.msra.mxu0 %v10211_v20  ;;  %v10236_v20 = vld [vmem:[#allocation19 + $0x8] sm:$0xff]   ;;  %v11740_v57 = vpop.f32.mrf.mxu0 }
 0x496   : > { %7278 = vmatprep.subr.bf16.mxu0 %v10216_v56  ;;  %v11738_v56 = vpop.f32.mrf.mxu1  ;;  %9162 = vmatpush3.bf16.msra.mxu1 %v10236_v20 }
 0x497   : > { %9163 = vmatprep.subr.bf16.mxu1 %v10237_v12  ;;  %v11744_v42 = vpop.f32.mrf.mxu0 }
 0x499   : > { %7279 = vmatpush2.bf16.msra.mxu0 %v10214_v23  ;;  %v11742_v23 = vpop.f32.mrf.mxu1 }
 0x49a   : > { %7280 = vmatprep.subr.bf16.mxu0 %v10219_v59  ;;  %9164 = vmatpush3.bf16.msra.mxu1 %v10238_v32  ;;  %v11748_v59 = vpop.f32.mrf.mxu0 }
 0x49b   : > { %v11746_v54 = vpop.f32.mrf.mxu1 }
 0x49c   : > { %v11752_v15 = vpop.f32.mrf.mxu0 }
 0x49d   : > { %7281 = vmatpush2.bf16.msra.mxu0 %v10217_v19  ;;  %v11750_v5 = vpop.f32.mrf.mxu1  ;;  %v10240_v19 = vld [vmem:[#allocation22 + $0x30] sm:$0xff]  }
 0x49e   : > { %7282 = vmatprep.subr.bf16.mxu0 %v10222_v25  ;;  %v11756_v7 = vpop.f32.mrf.mxu0 }
 0x49f   : > { %v11754_v37 = vpop.f32.mrf.mxu1 }
 0x4a0   : > { %v11760_v50 = vpop.f32.mrf.mxu0 }
 0x4a1   : > { %7283 = vmatpush2.bf16.msra.mxu0 %v10220_v29  ;;  %v11758_v25 = vpop.f32.mrf.mxu1 }
 0x4a2   : > { %9295 = vmatprep.subr.bf16.mxu0 %v10239_v46  ;;  %v11764_v60 = vpop.f32.mrf.mxu0 }
 0x4a3   : > { %v11762_v4 = vpop.f32.mrf.mxu1 }
 0x4a4   : > { %7285 = vmatmul.mubr.bf16.vlgmr.msra.gmra.mxu0 %v9071_v13  ;;  %v11768_v2 = vpop.f32.mrf.mxu0 }
 0x4a5   : > { %7294 = vmatprep.mubr.bf16.mxu0 %v9094_v6  ;;  %9296 = vmatpush3.bf16.msra.mxu0 %v10239_v46  ;;  %v11766_v29 = vpop.f32.mrf.mxu1 }
 0x4a6   : > { %9297 = vmatprep.subr.bf16.mxu0 %v10240_v19  ;;  %v11772_v0 = vpop.f32.mrf.mxu0 }
 0x4a7   : > { %v11770_v1 = vpop.f32.mrf.mxu1 }
 0x4a8   : > { %v11776_v49 = vpop.f32.mrf.mxu0 }
 0x4a9   : > { %9298 = vmatpush3.bf16.msra.mxu0 %v10240_v19  ;;  %v11774_v36 = vpop.f32.mrf.mxu1 }
 0x4aa   : > { %9299 = vmatprep.subr.bf16.mxu0 %v10241_v39  ;;  %v6972_v63 = vpop.f32.mrf.mxu0 }
 0x4ab   : > { %v11778_v40 = vpop.f32.mrf.mxu1 }
 0x4ac   : > { %7295 = vmatmul.mubr.bf16.gmra.mxu0 %v9093_v47  ;;  %v11782_v3 = vpop.f32.mrf.mxu0 }
 0x4ad   : > { %9300 = vmatpush3.bf16.msra.mxu0 %v10241_v39  ;;  %v11780_v13 = vpop.f32.mrf.mxu1 }
 0x4ae   : > { %v11786_v17 = vpop.f32.mrf.mxu0 }
 0x4af   : > { %12062 = vst [vmem:[#allocation38_spill] sm:$0xff] %v11786_v17 }
 0x4b0   : > { %v11790_v58 = vpop.f32.mrf.mxu0 }
 0x4b1   : > { %12063 = vst [vmem:[#allocation39_spill] sm:$0xff] %v11790_v58 }
 0x4b2   : > { %v11794_v55 = vpop.f32.mrf.mxu0 }
 0x4b3   : > { %v11784_v6 = vpop.f32.mrf.mxu1 }
 0x4b4   : > { %v11798_v28 = vpop.f32.mrf.mxu0 }
 0x4b5   : > { %v11788_v38 = vpop.f32.mrf.mxu1  ;;  %12064 = vst [vmem:[#allocation40_spill] sm:$0xff] %v11798_v28 }
 0x4b7   : > { %v11792_v47 = vpop.f32.mrf.mxu1 }
 0x4b9   : > { %v11796_v53 = vpop.f32.mrf.mxu1 }
 0x4bb   : > { %v11800_v10 = vpop.f32.mrf.mxu1 }
 0x4bc   : > { %12065 = vst [vmem:[#allocation41_spill] sm:$0xff] %v11800_v10 }
 0x4bd   : > { %v11804_v33 = vpop.f32.mrf.mxu1 }
 0x4be   : > { %12066 = vst [vmem:[#allocation42_spill] sm:$0xff] %v11804_v33  ;;  %v4730_v33 = vld [vmem:[#allocation17] sm:$0x3] }
 0x4bf   : > { %v11808_v24 = vpop.f32.mrf.mxu1 }
 0x4c0   : > { %12067 = vst [vmem:[#allocation43_spill] sm:$0xff] %v11808_v24 }
 0x4c1   : > { %v11810_v22 = vpop.f32.mrf.mxu1 }
 0x4c2   : > { %12068 = vst [vmem:[#allocation44_spill] sm:$0xff] %v11810_v22 }
 0x4e4   : > { %v11802_v26 = vpop.f32.mrf.mxu0 }
 0x4e6   : > { %v11806_v27 = vpop.f32.mrf.mxu0 }
 0x4e8   : > { %v7078_v9 = vpop.f32.mrf.mxu0 }
 0x4ea   : > { %v11812_v11 = vpop.f32.mrf.mxu0 }
 0x4ec   : > { %v11816_v35 = vpop.f32.mrf.mxu0 }
 0x4ed   : > { %12069 = vst [vmem:[#allocation45_spill] sm:$0xff] %v11816_v35 }
 0x4ee   : > { %v11820_v12 = vpop.f32.mrf.mxu0 }
 0x4ef   : > { %12070 = vst [vmem:[#allocation46_spill] sm:$0xff] %v11820_v12 }
 0x4f0   : > { %v11824_v46 = vpop.f32.mrf.mxu0 }
 0x4f1   : > { %12071 = vst [vmem:[#allocation47_spill] sm:$0xff] %v11824_v46 }
 0x4f2   : > { %v11828_v39 = vpop.f32.mrf.mxu0 }
 0x4f3   : > { %v11814_v45 = vpop.f32.mrf.mxu1  ;;  %12072 = vst [vmem:[#allocation48_spill] sm:$0xff] %v11828_v39  ;;  %v12081_v39 = vsub.s32 1, %v11272_v18 }
 0x4f5   : > { %v11818_v20 = vpop.f32.mrf.mxu1 }
 0x4f7   : > { %v11822_v32 = vpop.f32.mrf.mxu1 }
 0x4f9   : > { %v11826_v19 = vpop.f32.mrf.mxu1 }
 0x4fb   : > { %v11830_v48 = vpop.f32.mrf.mxu1 }
 0x4fc   : > { %12073 = vst [vmem:[#allocation49_spill] sm:$0xff] %v11830_v48  ;;  %v4739_v48 = vrot.slane %v4730_v33, %v12081_v39 }
 0x4fd   : > { %v11834_v34 = vpop.f32.mrf.mxu1 }
 0x4fe   : > { %12075 = vst [vmem:[#allocation51_spill] sm:$0xff] %v11834_v34  ;;  %v6759_v28 = vadd.f32 %v11716_v41, %v4739_v48 }
 0x4ff   : > { %v11838_v35 = vpop.f32.mrf.mxu1 }
 0x500   : > { %12077 = vst [vmem:[#allocation53_spill] sm:$0xff] %v11838_v35  ;;  %v6812_v58 = vadd.f32 %v11726_v51, %v6759_v28 }
 0x501   : > { %v11842_v12 = vpop.f32.mrf.mxu1 }
 0x502   : > { %12078 = vst [vmem:[#allocation54_spill] sm:$0xff] %v11842_v12  ;;  %v6763_v12 = vadd.f32 %v11720_v14, %v4739_v48 }
 0x504   : > { %v6816_v39 = vadd.f32 %v11734_v44, %v6763_v12  ;;  %v12084_v12 = vld [vmem:[#allocation39_spill] sm:$0xff] }
 0x506   : > { %v6869_v41 = vadd.f32 %v11752_v15, %v6816_v39  ;;  %v6773_v15 = vadd.f32 %v11736_v52, %v4739_v48 }
 0x508   : > { %v6922_v51 = vadd.f32 %v11766_v29, %v6869_v41  ;;  %v12089_v41 = vld [vmem:[#allocation43_spill] sm:$0xff] }
 0x524   : > { %v11832_v31 = vpop.f32.mrf.mxu0 }
 0x525   : > { %12074 = vst [vmem:[#allocation50_spill] sm:$0xff] %v11832_v31  ;;  %v12082_v31 = vsub.s32 0, %v11272_v18 }
 0x526   : > { %v11836_v10 = vpop.f32.mrf.mxu0 }
 0x527   : > { %12076 = vst [vmem:[#allocation52_spill] sm:$0xff] %v11836_v10  ;;  %v4735_v17 = vrot.slane %v4730_v33, %v12082_v31 }
 0x528   : > { %v11840_v22 = vpop.f32.mrf.mxu0 }
 0x529   : > { %v6761_v34 = vadd.f32 %v11718_v61, %v4735_v17 }
 0x52a   : > { %v11844_v46 = vpop.f32.mrf.mxu0 }
 0x52b   : > { %12079 = vst [vmem:[#allocation55_spill] sm:$0xff] %v11844_v46  ;;  %v6757_v46 = vadd.f32 %v11714_v21, %v4735_v17 }
 0x52c   : > { %v11853_v10 = vpop.f32.mrf.mxu0 }
 0x52d   : > { %12083 = vst [vmem:[#allocation57_spill] sm:$0xff] %v11853_v10  ;;  %v6810_v18 = vadd.f32 %v11722_v62, %v6757_v46  ;;  %v6865_v10 = vadd.f32 %v11744_v42, %v6812_v58  ;;  %v6769_v42 = vadd.f32 %v11728_v8, %v4739_v48  ;;  %v6826_v58 = vadd.f32 %v11750_v5, %v6773_v15  ;;  %v12085_v46 = vld [vmem:[#allocation40_spill] sm:$0xff] }
 0x52e   : > { %v11865_v61 = vpop.f32.mrf.mxu0  ;;  %v12086_v39 = vld [vmem:[#allocation52_spill] sm:$0xff] }
 0x52f   : > { %v6863_v14 = vadd.f32 %v11740_v57, %v6810_v18 }
 0x531   : > { %v6916_v62 = vadd.f32 %v11754_v37, %v6863_v14  ;;  %v12090_v14 = vld [vmem:[#allocation50_spill] sm:$0xff] }
 0x532   : > { %v12087_v18 = vld [vmem:[#allocation55_spill] sm:$0xff] }
 0x533   : > { %v11846_v24 = vpop.f32.mrf.mxu1 }
 0x534   : > { %12080 = vst [vmem:[#allocation56_spill] sm:$0xff] %v11846_v24  ;;  %v6814_v24 = vadd.f32 %v11730_v30, %v6761_v34  ;;  %v6918_v34 = vadd.f32 %v11758_v25, %v6865_v10  ;;  %v6771_v30 = vadd.f32 %v11732_v16, %v4735_v17  ;;  %v6767_v25 = vadd.f32 %v11724_v43, %v4735_v17 }
 0x535   : > { %v11855_v35 = vpop.f32.mrf.mxu1  ;;  %v6969_v16 = vadd.f32 %v11772_v0, %v6916_v62 }
 0x536   : > { %v6867_v31 = vadd.f32 %v11748_v59, %v6814_v24  ;;  %v11875_v59 = vpop.f32.mrf.mxu0  ;;  %v6971_v57 = vadd.f32 %v11776_v49, %v6918_v34  ;;  %v6824_v29 = vadd.f32 %v11746_v54, %v6771_v30  ;;  %v6820_v52 = vadd.f32 %v11738_v56, %v6767_v25  ;;  %v12091_v34 = vld [vmem:[#allocation42_spill] sm:$0xff] }
 0x537   : > { %v7237_v33 = vpop.f32.mrf.mxu1  ;;  %v7022_v43 = vadd.f32 %v11784_v6, %v6969_v16 }
 0x538   : > { %v6920_v21 = vadd.f32 %v11762_v4, %v6867_v31  ;;  %v6975_v4 = vadd.f32 %v11782_v3, %v6922_v51  ;;  %v7024_v8 = vadd.f32 %v11788_v38, %v6971_v57  ;;  %v6877_v49 = vadd.f32 %v11764_v60, %v6824_v29  ;;  %v7196_v54 = vpop.f32.mrf.mxu0  ;;  %v12088_v31 = vld [vmem:[#allocation38_spill] sm:$0xff]  ;;  %v12092_v51 = vld [vmem:[#allocation44_spill] sm:$0xff]  ;;  %v12094_v57 = vld [vmem:[#allocation47_spill] sm:$0xff] }
 0x539   : > { %v7239_v28 = vpop.f32.mrf.mxu1  ;;  %v7075_v60 = vadd.f32 %v11802_v26, %v7022_v43  ;;  %v12098_v43 = vld [vmem:[#allocation45_spill] sm:$0xff] }
 0x53a   : > { %v6973_v44 = vadd.f32 %v6972_v63, %v6920_v21  ;;  %v6822_v63 = vadd.f32 %v11742_v23, %v6769_v42  ;;  %v7028_v48 = vadd.f32 %v11796_v53, %v6975_v4  ;;  %v6879_v23 = vadd.f32 %v11768_v2, %v6826_v58  ;;  %v12093_v42 = vld [vmem:[#allocation41_spill] sm:$0xff]  ;;  %v12096_v58 = vld [vmem:[#allocation46_spill] sm:$0xff] }
 0x53b   : > { %v11892_v17 = vpop.f32.mrf.mxu1  ;;  %v7077_v5 = vadd.f32 %v11806_v27, %v7024_v8  ;;  %v6930_v56 = vadd.f32 %v11778_v40, %v6877_v49  ;;  %v12095_v25 = vld [vmem:[#allocation56_spill] sm:$0xff] }
 0x53c   : > { %v7026_v37 = vadd.f32 %v11792_v47, %v6973_v44  ;;  %v6875_v0 = vadd.f32 %v11760_v50, %v6822_v63  ;;  %v7081_v38 = vadd.f32 %v11812_v11, %v7028_v48  ;;  %v6873_v47 = vadd.f32 %v11756_v7, %v6820_v52 }
 0x53d   : > { %v6932_v24 = vadd.f32 %v11780_v13, %v6879_v23  ;;  %v7130_v50 = vadd.f32 %v11818_v20, %v7077_v5  ;;  %v7128_v7 = vadd.f32 %v11814_v45, %v7075_v60  ;;  %v7245_v26 = vpop.f32.mrf.mxu1  ;;  %v12100_v5 = vld [vmem:[#allocation51_spill] sm:$0xff] }
 0x53e   : > { %v7079_v3 = vadd.f32 %v7078_v9, %v7026_v37  ;;  %v6928_v10 = vadd.f32 %v11774_v36, %v6875_v0  ;;  %v7134_v2 = vadd.f32 %v11826_v19, %v7081_v38  ;;  %v6926_v27 = vadd.f32 %v11770_v1, %v6873_v47  ;;  %v12099_v0 = vld [vmem:[#allocation53_spill] sm:$0xff]  ;;  %v12101_v47 = vld [vmem:[#allocation54_spill] sm:$0xff] }
 0x53f   : > { %v6983_v9 = vadd.f32 %v11794_v55, %v6930_v56  ;;  %v6985_v36 = vadd.f32 %v12085_v46, %v6932_v24  ;;  %v7183_v13 = vadd.f32 %v12086_v39, %v7130_v50  ;;  %v7181_v55 = vadd.f32 %v12090_v14, %v7128_v7  ;;  %v7247_v16 = vpop.f32.mrf.mxu1 }
 0x540   : > { %v7132_v6 = vadd.f32 %v11822_v32, %v7079_v3  ;;  %v6981_v32 = vadd.f32 %v12084_v12, %v6928_v10  ;;  %v7187_v20 = vadd.f32 %v12087_v18, %v7134_v2  ;;  %v6979_v19 = vadd.f32 %v12088_v31, %v6926_v27 }
 0x541   : > { %v7036_v1 = vadd.f32 %v12089_v41, %v6983_v9  ;;  %v7038_v30 = vadd.f32 %v12092_v51, %v6985_v36  ;;  %v7236_v62 = vadd.f32 %v11855_v35, %v7183_v13  ;;  %v7234_v29 = vadd.f32 %v12095_v25, %v7181_v55  ;;  %v7249_v50 = vpop.f32.mrf.mxu1  ;;  %v10244_v41 = vld [vmem:[#allocation22 + $0x10] sm:$0xff]  }
 0x542   : > { %v7185_v40 = vadd.f32 %v11840_v22, %v7132_v6  ;;  %v7034_v22 = vadd.f32 %v12091_v34, %v6981_v32  ;;  %v7240_v44 = vadd.f32 %v7239_v28, %v7187_v20  ;;  %v7032_v15 = vadd.f32 %v12093_v42, %v6979_v19  ;;  %v12102_v6 = vld [vmem:[#allocation49_spill] sm:$0xff] }
 0x543   : > { %v7089_v4 = vadd.f32 %v12094_v57, %v7036_v1 }
 0x544   : > { %v7238_v21 = vadd.f32 %v7237_v33, %v7185_v40  ;;  %v7087_v8 = vadd.f32 %v12096_v58, %v7034_v22  ;;  %v12097_v33 = vld [vmem:[#allocation48_spill] sm:$0xff]  ;;  %v7085_v3 = vadd.f32 %v12098_v43, %v7032_v15  ;;  %v12103_v40 = vld [vmem:[#allocation57_spill] sm:$0xff] }
 0x545   : > { %v7091_v48 = vadd.f32 %v12097_v33, %v7038_v30  ;;  %v7142_v35 = vadd.f32 %v12099_v0, %v7089_v4 }
 0x546   : > { %v7140_v38 = vadd.f32 %v12100_v5, %v7087_v8  ;;  %v7138_v10 = vadd.f32 %v12102_v6, %v7085_v3 }
 0x547   : > { %v7144_v56 = vadd.f32 %v12101_v47, %v7091_v48  ;;  %v7195_v24 = vadd.f32 %v11875_v59, %v7142_v35  ;;  %v12104_v48 = vlaneseq }
 0x548   : > { %v7193_v9 = vadd.f32 %v11865_v61, %v7140_v38  ;;  %v10242_v61 = vld [vmem:[#allocation22 + $0x20] sm:$0xff]  }
 0x549   : > { %v7197_v7 = vadd.f32 %v7196_v54, %v7144_v56  ;;  %9301 = vmatprep.subr.bf16.mxu0 %v10242_v61  ;;  %v10243_v54 = vld [vmem:[#allocation22 + $0x18] sm:$0xff]  }
 0x54a   : > { %v7246_v32 = vadd.f32 %v7245_v26, %v7193_v9  ;;  %9302 = vmatpush3.bf16.msra.mxu0 %v10242_v61  ;;  %v10245_v26 = vld [vmem:[#allocation22 + $0x8] sm:$0xff]  }
 0x54b   : > { %v7250_v46 = vadd.f32 %v7249_v50, %v7197_v7  ;;  %9303 = vmatprep.subr.bf16.mxu0 %v10243_v54 }
 0x54e   : > { %9304 = vmatpush3.bf16.msra.mxu0 %v10243_v54 }
 0x54f   : > { %9305 = vmatprep.subr.bf16.mxu0 %v10244_v41 }
 0x552   : > { %9306 = vmatpush3.bf16.msra.mxu0 %v10244_v41 }
 0x553   : > { %9307 = vmatprep.subr.bf16.mxu0 %v10245_v26 }
 0x556   : > { %9308 = vmatpush3.bf16.msra.mxu0 %v10245_v26 }
 0x564   : > { %v7286_v53 = vpop.f32.mrf.mxu0 }
 0x565   : > { %v7287_v28 = vadd.f32 %v7286_v53, %v7234_v29  ;;  %v7248_v53 = vadd.f32 %v7247_v16, %v7195_v24 }
 0x566   : > { %v7288_v11 = vpop.f32.mrf.mxu0 }
 0x567   : > { %v7289_v52 = vadd.f32 %v7288_v11, %v7236_v62  ;;  %v7191_v11 = vadd.f32 %v12103_v40, %v7138_v10 }
 0x568   : > { %v7290_v45 = vpop.f32.mrf.mxu0 }
 0x569   : > { %v7291_v37 = vadd.f32 %v7290_v45, %v7238_v21  ;;  %v7244_v36 = vadd.f32 %v11892_v17, %v7191_v11  ;;  %v10246_v17 = vld [vmem:[#allocation22] sm:$0xff]   ;;  %v8623_v21 = vld [vmem:[#allocation20] ss:$0 sm:$0xff] }
 0x56a   : > { %v7292_v63 = vpop.f32.mrf.mxu0  ;;  %9309 = vmatprep.subr.bf16.mxu0 %v10246_v17 }
 0x56b   : > { %v7293_v49 = vadd.f32 %v7292_v63, %v7240_v44  ;;  %v7305_v2 = vpack.c.bf16 %v7291_v37, %v7287_v28  ;;  %9310 = vmatpush3.bf16.msra.mxu0 %v10246_v17 }
 0x56c   : > { %v7296_v23 = vpop.f32.mrf.mxu0 }
 0x56d   : > { %v7306_v60 = vpack.c.bf16 %v7293_v49, %v7289_v52  ;;  %v7297_v20 = vadd.f32 %v7296_v23, %v7244_v36  ;;  %v7620_v52 = vand.u32 127, %v12104_v48  ;;  %v8640_v49 = vld [vmem:[#allocation23] ss:$0 sm:$0xff] }
 0x56e   : > { %v7298_v27 = vpop.f32.mrf.mxu0 }
 0x56f   : > { %7476 = vmatprep.mubr.bf16.mxu1 %v7306_v60  ;;  %v7299_v18 = vadd.f32 %v7298_v27, %v7246_v32  ;;  %vm7621_vm2 = vcmp.ge.s32.totalorder %v7620_v52, 3  ;;  %vm7622_vm3 = vcmp.lt.s32.totalorder %v7620_v52, 7 }
 0x570   : > { %v7300_v12 = vpop.f32.mrf.mxu0  ;;  %7477 = vmatmul.mubr.bf16.vlgmr.msra.gmra.mxu1 %v7305_v2  ;;  %vm11935_vm4 = vmand %vm7621_vm2, %vm7622_vm3 }
 0x571   : > { %v7301_v39 = vadd.f32 %v7300_v12, %v7248_v53 }
 0x572   : > { %v7302_v13 = vpop.f32.mrf.mxu0 }
 0x573   : > { %v7303_v59 = vadd.f32 %v7302_v13, %v7250_v46  ;;  %v7307_v19 = vpack.c.bf16 %v7301_v39, %v7297_v20 }
 0x575   : > { %v7308_v31 = vpack.c.bf16 %v7303_v59, %v7299_v18 }
 0x577   : > { %7484 = vmatprep.mubr.bf16.mxu1 %v7308_v31 }
 0x578   : > { %7485 = vmatmul.mubr.bf16.gmra.mxu1 %v7307_v19 }
 0x630   : > { %v9165_v1 = vpop.f32.mrf.mxu1 }
 0x632   : > { %v9166_v14 = vpop.f32.mrf.mxu1 }
 0x633   : > { %v9167_v55 = vadd.f32 %v9166_v14, %v9165_v1 }
 0x634   : > { %v9168_v45 = vpop.f32.mrf.mxu1 }
 0x635   : > { %v7479_v22 = vadd.f32 %v9167_v55, %v8623_v21 }
 0x636   : > { %v9169_v34 = vpop.f32.mrf.mxu1 }
 0x637   : > { %v9170_v51 = vadd.f32 %v9169_v34, %v9168_v45  ;;  %v7493_v42 = vmax.f32 %v7479_v22, 0.0 }
 0x638   : > { %v9171_v30 = vpop.f32.mrf.mxu1 }
 0x639   : > { %v7482_v62 = vadd.f32 %v9170_v51, %v8623_v21 }
 0x63a   : > { %v9172_v44 = vpop.f32.mrf.mxu1 }
 0x63b   : > { %v7494_v15 = vmax.f32 %v7482_v62, 0.0  ;;  %v9173_v57 = vadd.f32 %v9172_v44, %v9171_v30 }
 0x63c   : > { %v9174_v4 = vpop.f32.mrf.mxu1 }
 0x63d   : > { %v7497_v25 = vpack.c.bf16 %v7494_v15, %v7493_v42  ;;  %v7487_v16 = vadd.f32 %v9173_v57, %v8623_v21 }
 0x63e   : > { %v9175_v29 = vpop.f32.mrf.mxu1 }
 0x63f   : > { %v9176_v37 = vadd.f32 %v9175_v29, %v9174_v4  ;;  %9311 = vmatprep.mubr.bf16.mxu0 %v7497_v25  ;;  %v7495_v58 = vmax.f32 %v7487_v16, 0.0 }
 0x641   : > { %v7490_v63 = vadd.f32 %v9176_v37, %v8623_v21 }
 0x643   : > { %v7496_v8 = vmax.f32 %v7490_v63, 0.0 }
 0x645   : > { %v7498_v33 = vpack.c.bf16 %v7496_v8, %v7495_v58 }
 0x647   : > { %9312 = vmatmul.mubr.bf16.vlgmr.msra.gmra.mxu0 %v7498_v33 }
 0x707   : > { %v9313_v43 = vpop.f32.mrf.mxu0 }
 0x708   : > { %v7613_v3 = vadd.f32 %v9313_v43, %v8640_v49 }
 0x709   : > { %v7604_v0 = vpop.f32.mrf.mxu0 }
 0x70a   : > { %v7605_v28 = vadd.f32 %v8640_v49, %v7604_v0  ;;  %v7626_v23 = vmul.f32 %v7613_v3, %v7613_v3 }
 0x70b   : > { %v9314_v5 = vpop.f32.mrf.mxu0 }
 0x70c   : > { %v7616_v38 = vadd.f32 %v9314_v5, %v8640_v49  ;;  %v7630_v47 = vsel %vm11935_vm4, %v7626_v23, 0.0  ;;  %v7624_v56 = vmul.f32 %v7605_v28, %v7605_v28 }
 0x70d   : > { %7636 = vadd.xlane.f32.xlu1 %v7630_v47  ;;  %v7607_v60 = vpop.f32.mrf.mxu0 }
 0x70e   : > { %v7608_v6 = vadd.f32 %v8640_v49, %v7607_v60  ;;  %v7628_v10 = vsel %vm11935_vm4, %v7624_v56, 0.0  ;;  %v7627_v24 = vmul.f32 %v7616_v38, %v7616_v38 }
 0x70f   : > { %7632 = vadd.xlane.f32.xlu0 %v7628_v10 }
 0x710   : > { %v7631_v50 = vsel %vm11935_vm4, %v7627_v24, 0.0  ;;  %v7625_v2 = vmul.f32 %v7608_v6, %v7608_v6 }
 0x711   : > { %7638 = vadd.xlane.f32.xlu1 %v7631_v50 }
 0x712   : > { %v7629_v27 = vsel %vm11935_vm4, %v7625_v2, 0.0 }
 0x713   : > { %7634 = vadd.xlane.f32.xlu0 %v7629_v27 }
 0x796   : > { %v7637_v9 = vpop.xlane.xlu1 %7636 }
 0x797   : > { %v7642_v7 = vmax.f32 %v7637_v9, 1e-24 }
 0x798   : > { %v7633_v40 = vpop.xlane.xlu0 %7632 }
 0x799   : > { %10247 = vrsqrt.f32 %v7642_v7  ;;  %v7640_v11 = vmax.f32 %v7633_v40, 1e-24 }
 0x79a   : > { %v7639_v53 = vpop.xlane.xlu1 %7638 }
 0x79b   : > { %10249 = vrsqrt.f32 %v7640_v11  ;;  %v7643_v12 = vmax.f32 %v7639_v53, 1e-24 }
 0x79c   : > { %v7635_v32 = vpop.xlane.xlu0 %7634 }
 0x79d   : > { %10251 = vrsqrt.f32 %v7643_v12  ;;  %v7641_v46 = vmax.f32 %v7635_v32, 1e-24 }
 0x79f   : > { %10253 = vrsqrt.f32 %v7641_v46 }
 0x7a6   : > { %v10248_v36 = vpop.eup %10247 }
 0x7a7   : > { %v7650_v39 = vmul.f32 %v10248_v36, %v7613_v3 }
 0x7a8   : > { %v10250_v13 = vpop.eup %10249 }
 0x7a9   : > { %v7654_v18 = vsel %vm11935_vm4, %v7650_v39, %v7613_v3  ;;  %v7648_v59 = vmul.f32 %v10250_v13, %v7605_v28 }
 0x7aa   : > { %v10252_v20 = vpop.eup %10251  ;;  %7658 = vst [vmem:[%s597_s2 + $0x10] sm:$0xff] %v7654_v18 }
 0x7ab   : > { %v7652_v31 = vsel %vm11935_vm4, %v7648_v59, %v7605_v28  ;;  %v7651_v19 = vmul.f32 %v10252_v20, %v7616_v38 }
 0x7ac   : > { %v10254_v61 = vpop.eup %10253  ;;  %7656 = vst [vmem:[%s597_s2] sm:$0xff] %v7652_v31 }
 0x7ad   : > { %v7655_v54 = vsel %vm11935_vm4, %v7651_v19, %v7616_v38  ;;  %v7649_v41 = vmul.f32 %v10254_v61, %v7608_v6 }
 0x7ae   : > { %7659 = vst [vmem:[%s597_s2 + $0x18] sm:$0xff] %v7655_v54 }
 0x7af   : > { %v7653_v26 = vsel %vm11935_vm4, %v7649_v41, %v7608_v6 }
 0x7b0   : > { %7657 = vst [vmem:[%s597_s2 + $0x8] sm:$0xff] %v7653_v26 }
 0x7b1   : > { %10581 = shalt.err (!%p10578_p5)
}
 0x7b2   : > { %s10582_s16 = scalar_lea.hbm %s11958_s22, 512  ;;  %s10586_s1 = scalar_lea.hbm %s12017_s13, 1024 }
 0x7b3   : > { %p10583_p6 = scmp.ne.s32.totalorder %s11958_s22, %s10582_s16  ;;  %p10587_p11 = scmp.lt.s32.totalorder %s11958_s22, %s12017_s13 }
 0x7b4   : > { %p10588_p0 = scmp.lt.s32.totalorder %s10586_s1, %s10582_s16 }
 0x7b5   : > { %p10584_p10 = pnand %p10583_p6, %p12107_p2 }
 0x7b6   : > { %p10589_p1 = por %p10588_p0, %p10587_p11 }
 0x7b7   : > { %p10585_p8 = pneg %p10584_p10 }
 0x7b9   : > { %p10590_p13 = pnand %p10589_p1, %p10585_p8 }
 0x7bb   : > { %10593 = shalt.err (!%p10590_p13)
}
 0x7bc   : > { %s10676_s15 = smov 128   ;;  %s10677_s21 = smov 8  }
 0x7bd   : > { %9364 = dma.vmem_to_hbm [thread:$0]  (%p12107_p2), %s11960_s19, 512, %s11958_s22, %s11964_s29, %s10676_s15, %s10676_s15, %s10677_s21  }
 0x7be PF: > { %s12108_s23 = sld [smem:[#allocation37_spill]]  ;;  %p9431_p9 = scmp.ge.s32.totalorder %s10656_s28, 2 }
 0x7bf   : > { %s7689_s17 = sand.u32 1, %s10644_s25  }
 0x7c0   : > { %s7690_s20 = scalar_lea.sflag [#allocation7], %s7689_s17 }
 0x7c4   : > { %p12109_p3 = scmp.ne.s32.totalorder %s12108_s23, 0 }
 0x7c6   : > { %p9404_p12 = pnand %p9431_p9, %p12109_p3 }
 0x7c8   : > { %p9405_p4 = pneg %p9404_p12 }
 0x7ca   : > { %10639 = dma.done.wait (%p9405_p4), %s7690_s20, 512  }
 0x7cb   : > { %10641 = vsyncadd (%p9405_p4), %s7690_s20, 4294966784  ;;  %s12110_s28 = sld [smem:[#allocation35_spill]]  ;;  %s12113_s25 = smov %s10648_s26 }
 0x7cc   : > { %s12111_s30 = sld [smem:[#allocation34_spill]] }
 0x7cd   : > { %s12112_s27 = sld [smem:[#allocation36_spill]] }
 0x7d1   : > { %p30_p7 = scmp.ge.s32.totalorder %s12110_s28, 4  }
 0x7d2   : > { %s12114_s26 = smov %s12111_s30 }
 0x7d3   :  { %32 = sbr.rel (!%p30_p7) target bundleno = 13 (0xd), region = 156 }
 0x7d8   :  { %7695 = vsyncpa [#allocation6], 1 }
 0x7d9   :  { %7697 = vsyncpa [#allocation6 + $0x1], 1 }
 0x7da   :  { %7698 = vsyncpa [#allocation9], 1 }
 0x7db   :  { %7699 = vsyncpa [#allocation12], 1 }
 0x7dc   :  { %7700 = vsyncpa [#allocation15], 1 }
 0x7dd   :  { %7701 = vsyncpa [#allocation18], 1 }
 0x7de   :  { %7702 = vsyncpa [#allocation21], 1 }
 0x7df   :  { %7703 = vsyncpa [#allocation24], 1 }
 0x7e0   :  { %7704 = vsyncpa [#allocation7], 1 }
 0x7e1   :  { %7706 = vsyncpa [#allocation7 + $0x1], 1 }

</bundles_post_ra>
